<compile_context>
chip_gen: v7x
topology: tpu7x:2x2x1
jax: 0.10.0
libtpu: 0.0.40
codegen_flags: <defaults>
</compile_context>

<pallas_src>
import numpy as np
import jax
import jax.numpy as jnp
from jax.experimental import pallas as pl
from jax.experimental.pallas import tpu as pltpu


# ----------------------------------------------------------------------------
# Static LeNet geometry (3x32x32 input, 5x5 convs, 2x2/s2 pools).
# ----------------------------------------------------------------------------
_KK = 5
_H0 = 32                        # input spatial size
_L0 = _H0 * _H0                 # 1024  flattened 32-grid
_LC1 = (27 * _H0 + 27) + 1      # 892   conv1 valid region embedded on 32-grid
_LP1 = (64 * 13 + 2 * 13) + 1   # 859   pool1 read region on 32-grid
_H1 = 14                        # pool1 output spatial size
_L1 = _H1 * _H1                 # 196   flattened 14-grid
_LC2 = (9 * _H1 + 9) + 1        # 136   conv2 valid region embedded on 14-grid
_LP2 = (28 * 4 + 2 * 4) + 1     # 121   pool2 read region on 14-grid


def _pool_selector(n_out, src_w, n_rows):
    """0/1 matrix (n_rows, n_out*n_out): column po*n_out+pw selects the flat
    source index 2*po*src_w + 2*pw (exact gather when used as RHS of a dot)."""
    sel = np.zeros((n_rows, n_out * n_out), np.float32)
    for po in range(n_out):
        for pw in range(n_out):
            sel[2 * po * src_w + 2 * pw, po * n_out + pw] = 1.0
    return sel


_SEL1 = _pool_selector(_H1, _H0, _LP1)   # (859, 196)
_SEL2 = _pool_selector(5, _H1, _LP2)     # (121, 25)


# ----------------------------------------------------------------------------
# The fused kernel (one grid step == one image).
# ----------------------------------------------------------------------------
def _lenet_kernel(x_ref, w1_ref, b1_ref, w2_ref, b2_ref, sel1_ref, sel2_ref,
                  f1w_ref, f1b_ref, f2w_ref, f2b_ref, f3w_ref, f3b_ref,
                  out_ref):
    # ---- conv1 (5x5, 3->6) + ReLU: 25 shifted-slice matmuls ----------------
    acc1 = None
    for kh in range(_KK):
        for kw in range(_KK):
            s = kh * _H0 + kw
            t = jnp.dot(w1_ref[kh * _KK + kw], x_ref[:, s:s + _LC1],
                        preferred_element_type=jnp.float32)
            acc1 = t if acc1 is None else acc1 + t
    c1 = jnp.maximum(acc1 + b1_ref[...], 0.0)                  # (6, 892)

    # ---- maxpool 2x2/2 + compaction to dense (6, 196) on the 14-grid -------
    m1 = jnp.maximum(jnp.maximum(c1[:, 0:_LP1], c1[:, 1:1 + _LP1]),
                     jnp.maximum(c1[:, _H0:_H0 + _LP1],
                                 c1[:, _H0 + 1:_H0 + 1 + _LP1]))
    p1 = jnp.dot(m1, sel1_ref[...], preferred_element_type=jnp.float32)

    # ---- conv2 (5x5, 6->16) + ReLU ------------------------------------------
    acc2 = None
    for kh in range(_KK):
        for kw in range(_KK):
            s = kh * _H1 + kw
            t = jnp.dot(w2_ref[kh * _KK + kw], p1[:, s:s + _LC2],
                        preferred_element_type=jnp.float32)
            acc2 = t if acc2 is None else acc2 + t
    c2 = jnp.maximum(acc2 + b2_ref[...], 0.0)                  # (16, 136)

    # ---- maxpool 2x2/2 + compaction to (16, 25) == x.view(-1, 400) order ---
    m2 = jnp.maximum(jnp.maximum(c2[:, 0:_LP2], c2[:, 1:1 + _LP2]),
                     jnp.maximum(c2[:, _H1:_H1 + _LP2],
                                 c2[:, _H1 + 1:_H1 + 1 + _LP2]))
    feat = jnp.dot(m2, sel2_ref[...], preferred_element_type=jnp.float32)

    # ---- fc1 + ReLU: contract (16, 25) features with (16, 25, 120) ---------
    z1 = f1b_ref[...]
    for c in range(16):
        z1 = z1 + jnp.dot(feat[c:c + 1, :], f1w_ref[c],
                          preferred_element_type=jnp.float32)
    a1 = jnp.maximum(z1, 0.0)                                  # (1, 120)

    # ---- fc2 + ReLU, fc3 + log_softmax --------------------------------------
    a2 = jnp.maximum(
        jnp.dot(a1, f2w_ref[...], preferred_element_type=jnp.float32)
        + f2b_ref[...], 0.0)                                   # (1, 84)
    z3 = jnp.dot(a2, f3w_ref[...],
                 preferred_element_type=jnp.float32) + f3b_ref[...]  # (1, 10)
    zs = z3 - jnp.max(z3, axis=-1, keepdims=True)
    lse = jnp.log(jnp.sum(jnp.exp(zs), axis=-1, keepdims=True))
    out_ref[...] = (zs - lse).astype(out_ref.dtype)


def _const_spec(shape):
    zero = (0,) * len(shape)
    return pl.BlockSpec(shape, lambda b, _z=zero: _z)


# ----------------------------------------------------------------------------
# Wrapper: weight re-layout (tiny, outside the kernel) + single pallas_call.
# ----------------------------------------------------------------------------
def lenet_forward(x, p):
    """x: (B, 3, 32, 32) float32 -> (B, 10) log-probabilities."""
    B = x.shape[0]
    x_flat = x.reshape(B, 3, _L0)

    w1 = p["conv1_w"].transpose(2, 3, 0, 1).reshape(_KK * _KK, 6, 3)
    b1 = p["conv1_b"].reshape(6, 1)
    w2 = p["conv2_w"].transpose(2, 3, 0, 1).reshape(_KK * _KK, 16, 6)
    b2 = p["conv2_b"].reshape(16, 1)
    f1w = p["fc1_w"].reshape(120, 16, 25).transpose(1, 2, 0)    # (16, 25, 120)
    f1b = p["fc1_b"].reshape(1, 120)
    f2w = p["fc2_w"].T                                           # (120, 84)
    f2b = p["fc2_b"].reshape(1, 84)
    f3w = p["fc3_w"].T                                           # (84, 10)
    f3b = p["fc3_b"].reshape(1, 10)
    sel1 = jnp.asarray(_SEL1)
    sel2 = jnp.asarray(_SEL2)

    operands = (x_flat, w1, b1, w2, b2, sel1, sel2,
                f1w, f1b, f2w, f2b, f3w, f3b)

    in_specs = [pl.BlockSpec((None, 3, _L0), lambda b: (b, 0, 0))]
    in_specs += [_const_spec(tuple(op.shape)) for op in operands[1:]]

    out = pl.pallas_call(
        _lenet_kernel,
        out_shape=jax.ShapeDtypeStruct((B, 1, 10), jnp.float32),
        grid=(B,),
        in_specs=in_specs,
        out_specs=pl.BlockSpec((None, 1, 10), lambda b: (b, 0, 0)),
        compiler_params=pltpu.CompilerParams(
            dimension_semantics=("parallel",)),
    )(*operands)
    return out.reshape(B, 10)


# ----------------------------------------------------------------------------
# Pure-JAX reference (correctness check only).
# ----------------------------------------------------------------------------
def reference_forward(x, p):
    def conv(x, w, b):
        out = jax.lax.conv_general_dilated(
            x, w, (1, 1), "VALID", dimension_numbers=("NCHW", "OIHW", "NCHW"))
        return out + b.reshape(1, -1, 1, 1)

    def pool(x):
        return jax.lax.reduce_window(
            x, -jnp.inf, jax.lax.max, (1, 1, 2, 2), (1, 1, 2, 2), "VALID")

    x = jax.nn.relu(conv(x, p["conv1_w"], p["conv1_b"]))
    x = pool(x)
    x = jax.nn.relu(conv(x, p["conv2_w"], p["conv2_b"]))
    x = pool(x)
    x = x.reshape(x.shape[0], 400)
    x = jax.nn.relu(x @ p["fc1_w"].T + p["fc1_b"])
    x = jax.nn.relu(x @ p["fc2_w"].T + p["fc2_b"])
    x = x @ p["fc3_w"].T + p["fc3_b"]
    return jax.nn.log_softmax(x, axis=1)


# ----------------------------------------------------------------------------
# Deterministic parameter init (PyTorch-style uniform(-1/sqrt(fan_in), ...)).
# ----------------------------------------------------------------------------
def init_params(key):
    ks = jax.random.split(key, 10)

    def uni(k, shape, fan_in):
        bound = 1.0 / float(fan_in) ** 0.5
        return jax.random.uniform(k, shape, jnp.float32, -bound, bound)

    return {
        "conv1_w": uni(ks[0], (6, 3, 5, 5), 3 * 5 * 5),
        "conv1_b": uni(ks[1], (6,), 3 * 5 * 5),
        "conv2_w": uni(ks[2], (16, 6, 5, 5), 6 * 5 * 5),
        "conv2_b": uni(ks[3], (16,), 6 * 5 * 5),
        "fc1_w": uni(ks[4], (120, 400), 400),
        "fc1_b": uni(ks[5], (120,), 400),
        "fc2_w": uni(ks[6], (84, 120), 120),
        "fc2_b": uni(ks[7], (84,), 120),
        "fc3_w": uni(ks[8], (10, 84), 84),
        "fc3_b": uni(ks[9], (10,), 84),
    }


if __name__ == "__main__":
    key = jax.random.PRNGKey(0)
    pkey, xkey = jax.random.split(key)
    params = init_params(pkey)

    # LeNet's fc1(400) implies 3x32x32 input; small batch of 2.
    x = jax.random.normal(xkey, (2, 3, 32, 32), jnp.float32)

    out = jax.jit(lenet_forward)(x, params)
    out = jax.block_until_ready(out)

    ref = reference_forward(x, params)
    assert out.shape == (2, 10), out.shape
    assert jnp.allclose(out, ref, atol=5e-3, rtol=5e-3), "mismatch vs reference"

    print("KERNEL_OK")
</pallas_src>

<mosaic_0001>
module attributes {stable_mosaic.version = 11 : i64} {
  func.func @_lenet_kernel(%arg0: i32, %arg1: memref<1x3x1024xf32, #tpu.memory_space<vmem>>, %arg2: memref<25x6x3xf32, #tpu.memory_space<vmem>>, %arg3: memref<6x1xf32, #tpu.memory_space<vmem>>, %arg4: memref<25x16x6xf32, #tpu.memory_space<vmem>>, %arg5: memref<16x1xf32, #tpu.memory_space<vmem>>, %arg6: memref<859x196xf32, #tpu.memory_space<vmem>>, %arg7: memref<121x25xf32, #tpu.memory_space<vmem>>, %arg8: memref<16x25x120xf32, #tpu.memory_space<vmem>>, %arg9: memref<1x120xf32, #tpu.memory_space<vmem>>, %arg10: memref<120x84xf32, #tpu.memory_space<vmem>>, %arg11: memref<1x84xf32, #tpu.memory_space<vmem>>, %arg12: memref<84x10xf32, #tpu.memory_space<vmem>>, %arg13: memref<1x10xf32, #tpu.memory_space<vmem>>, %arg14: memref<1x1x10xf32, #tpu.memory_space<vmem>>) attributes {dimension_semantics = [#tpu.dimension_semantics<parallel>], iteration_bounds = array<i64: 2>, scalar_prefetch = 0 : i64, scratch_operands = 0 : i64, tpu.core_type = #tpu.core_type<tc>, window_params = [{transform_indices = @transform_0, window_bounds = array<i64: 1, 3, 1024>}, {pipeline_mode = #tpu.pipeline_mode<synchronous>, transform_indices = @transform_1, window_bounds = array<i64: 25, 6, 3>}, {pipeline_mode = #tpu.pipeline_mode<synchronous>, transform_indices = @transform_2, window_bounds = array<i64: 6, 1>}, {pipeline_mode = #tpu.pipeline_mode<synchronous>, transform_indices = @transform_3, window_bounds = array<i64: 25, 16, 6>}, {pipeline_mode = #tpu.pipeline_mode<synchronous>, transform_indices = @transform_4, window_bounds = array<i64: 16, 1>}, {pipeline_mode = #tpu.pipeline_mode<synchronous>, transform_indices = @transform_5, window_bounds = array<i64: 859, 196>}, {pipeline_mode = #tpu.pipeline_mode<synchronous>, transform_indices = @transform_6, window_bounds = array<i64: 121, 25>}, {pipeline_mode = #tpu.pipeline_mode<synchronous>, transform_indices = @transform_7, window_bounds = array<i64: 16, 25, 120>}, {pipeline_mode = #tpu.pipeline_mode<synchronous>, transform_indices = @transform_8, window_bounds = array<i64: 1, 120>}, {pipeline_mode = #tpu.pipeline_mode<synchronous>, transform_indices = @transform_9, window_bounds = array<i64: 120, 84>}, {pipeline_mode = #tpu.pipeline_mode<synchronous>, transform_indices = @transform_10, window_bounds = array<i64: 1, 84>}, {pipeline_mode = #tpu.pipeline_mode<synchronous>, transform_indices = @transform_11, window_bounds = array<i64: 84, 10>}, {pipeline_mode = #tpu.pipeline_mode<synchronous>, transform_indices = @transform_12, window_bounds = array<i64: 1, 10>}, {transform_indices = @transform_13, window_bounds = array<i64: 1, 1, 10>}]} {
    %c0 = arith.constant 0 : index
    %c0_0 = arith.constant 0 : index
    %c0_1 = arith.constant 0 : index
    %0 = vector.load %arg2[%c0, %c0_0, %c0_1] : memref<25x6x3xf32, #tpu.memory_space<vmem>>, vector<1x6x3xf32>
    %1 = vector.shape_cast %0 : vector<1x6x3xf32> to vector<6x3xf32>
    %c0_2 = arith.constant 0 : index
    %c0_3 = arith.constant 0 : index
    %c0_4 = arith.constant 0 : index
    %2 = vector.load %arg1[%c0_2, %c0_3, %c0_4] : memref<1x3x1024xf32, #tpu.memory_space<vmem>>, vector<1x3x892xf32>
    %3 = vector.shape_cast %2 : vector<1x3x892xf32> to vector<3x892xf32>
    %cst = arith.constant dense<0.000000e+00> : vector<6x892xf32>
    %4 = tpu.matmul %1, %3, %cst {dimension_numbers = #tpu.dot_dimension_numbers<[1], [0], [0], [1], [0, 0, 1, 1], [], []>} : vector<6x3xf32>, vector<3x892xf32>, vector<6x892xf32> -> vector<6x892xf32>
    %c1 = arith.constant 1 : index
    %c0_5 = arith.constant 0 : index
    %c0_6 = arith.constant 0 : index
    %5 = vector.load %arg2[%c1, %c0_5, %c0_6] : memref<25x6x3xf32, #tpu.memory_space<vmem>>, vector<1x6x3xf32>
    %6 = vector.shape_cast %5 : vector<1x6x3xf32> to vector<6x3xf32>
    %c0_7 = arith.constant 0 : index
    %c0_8 = arith.constant 0 : index
    %c1_9 = arith.constant 1 : index
    %7 = vector.load %arg1[%c0_7, %c0_8, %c1_9] : memref<1x3x1024xf32, #tpu.memory_space<vmem>>, vector<1x3x892xf32>
    %8 = vector.shape_cast %7 : vector<1x3x892xf32> to vector<3x892xf32>
    %cst_10 = arith.constant dense<0.000000e+00> : vector<6x892xf32>
    %9 = tpu.matmul %6, %8, %cst_10 {dimension_numbers = #tpu.dot_dimension_numbers<[1], [0], [0], [1], [0, 0, 1, 1], [], []>} : vector<6x3xf32>, vector<3x892xf32>, vector<6x892xf32> -> vector<6x892xf32>
    %10 = arith.addf %4, %9 : vector<6x892xf32>
    %c2 = arith.constant 2 : index
    %c0_11 = arith.constant 0 : index
    %c0_12 = arith.constant 0 : index
    %11 = vector.load %arg2[%c2, %c0_11, %c0_12] : memref<25x6x3xf32, #tpu.memory_space<vmem>>, vector<1x6x3xf32>
    %12 = vector.shape_cast %11 : vector<1x6x3xf32> to vector<6x3xf32>
    %c0_13 = arith.constant 0 : index
    %c0_14 = arith.constant 0 : index
    %c2_15 = arith.constant 2 : index
    %13 = vector.load %arg1[%c0_13, %c0_14, %c2_15] : memref<1x3x1024xf32, #tpu.memory_space<vmem>>, vector<1x3x892xf32>
    %14 = vector.shape_cast %13 : vector<1x3x892xf32> to vector<3x892xf32>
    %cst_16 = arith.constant dense<0.000000e+00> : vector<6x892xf32>
    %15 = tpu.matmul %12, %14, %cst_16 {dimension_numbers = #tpu.dot_dimension_numbers<[1], [0], [0], [1], [0, 0, 1, 1], [], []>} : vector<6x3xf32>, vector<3x892xf32>, vector<6x892xf32> -> vector<6x892xf32>
    %16 = arith.addf %10, %15 : vector<6x892xf32>
    %c3 = arith.constant 3 : index
    %c0_17 = arith.constant 0 : index
    %c0_18 = arith.constant 0 : index
    %17 = vector.load %arg2[%c3, %c0_17, %c0_18] : memref<25x6x3xf32, #tpu.memory_space<vmem>>, vector<1x6x3xf32>
    %18 = vector.shape_cast %17 : vector<1x6x3xf32> to vector<6x3xf32>
    %c0_19 = arith.constant 0 : index
    %c0_20 = arith.constant 0 : index
    %c3_21 = arith.constant 3 : index
    %19 = vector.load %arg1[%c0_19, %c0_20, %c3_21] : memref<1x3x1024xf32, #tpu.memory_space<vmem>>, vector<1x3x892xf32>
    %20 = vector.shape_cast %19 : vector<1x3x892xf32> to vector<3x892xf32>
    %cst_22 = arith.constant dense<0.000000e+00> : vector<6x892xf32>
    %21 = tpu.matmul %18, %20, %cst_22 {dimension_numbers = #tpu.dot_dimension_numbers<[1], [0], [0], [1], [0, 0, 1, 1], [], []>} : vector<6x3xf32>, vector<3x892xf32>, vector<6x892xf32> -> vector<6x892xf32>
    %22 = arith.addf %16, %21 : vector<6x892xf32>
    %c4 = arith.constant 4 : index
    %c0_23 = arith.constant 0 : index
    %c0_24 = arith.constant 0 : index
    %23 = vector.load %arg2[%c4, %c0_23, %c0_24] : memref<25x6x3xf32, #tpu.memory_space<vmem>>, vector<1x6x3xf32>
    %24 = vector.shape_cast %23 : vector<1x6x3xf32> to vector<6x3xf32>
    %c0_25 = arith.constant 0 : index
    %c0_26 = arith.constant 0 : index
    %c4_27 = arith.constant 4 : index
    %25 = vector.load %arg1[%c0_25, %c0_26, %c4_27] : memref<1x3x1024xf32, #tpu.memory_space<vmem>>, vector<1x3x892xf32>
    %26 = vector.shape_cast %25 : vector<1x3x892xf32> to vector<3x892xf32>
    %cst_28 = arith.constant dense<0.000000e+00> : vector<6x892xf32>
    %27 = tpu.matmul %24, %26, %cst_28 {dimension_numbers = #tpu.dot_dimension_numbers<[1], [0], [0], [1], [0, 0, 1, 1], [], []>} : vector<6x3xf32>, vector<3x892xf32>, vector<6x892xf32> -> vector<6x892xf32>
    %28 = arith.addf %22, %27 : vector<6x892xf32>
    %c5 = arith.constant 5 : index
    %c0_29 = arith.constant 0 : index
    %c0_30 = arith.constant 0 : index
    %29 = vector.load %arg2[%c5, %c0_29, %c0_30] : memref<25x6x3xf32, #tpu.memory_space<vmem>>, vector<1x6x3xf32>
    %30 = vector.shape_cast %29 : vector<1x6x3xf32> to vector<6x3xf32>
    %c0_31 = arith.constant 0 : index
    %c0_32 = arith.constant 0 : index
    %c32 = arith.constant 32 : index
    %31 = vector.load %arg1[%c0_31, %c0_32, %c32] : memref<1x3x1024xf32, #tpu.memory_space<vmem>>, vector<1x3x892xf32>
    %32 = vector.shape_cast %31 : vector<1x3x892xf32> to vector<3x892xf32>
    %cst_33 = arith.constant dense<0.000000e+00> : vector<6x892xf32>
    %33 = tpu.matmul %30, %32, %cst_33 {dimension_numbers = #tpu.dot_dimension_numbers<[1], [0], [0], [1], [0, 0, 1, 1], [], []>} : vector<6x3xf32>, vector<3x892xf32>, vector<6x892xf32> -> vector<6x892xf32>
    %34 = arith.addf %28, %33 : vector<6x892xf32>
    %c6 = arith.constant 6 : index
    %c0_34 = arith.constant 0 : index
    %c0_35 = arith.constant 0 : index
    %35 = vector.load %arg2[%c6, %c0_34, %c0_35] : memref<25x6x3xf32, #tpu.memory_space<vmem>>, vector<1x6x3xf32>
    %36 = vector.shape_cast %35 : vector<1x6x3xf32> to vector<6x3xf32>
    %c0_36 = arith.constant 0 : index
    %c0_37 = arith.constant 0 : index
    %c33 = arith.constant 33 : index
    %37 = vector.load %arg1[%c0_36, %c0_37, %c33] : memref<1x3x1024xf32, #tpu.memory_space<vmem>>, vector<1x3x892xf32>
    %38 = vector.shape_cast %37 : vector<1x3x892xf32> to vector<3x892xf32>
    %cst_38 = arith.constant dense<0.000000e+00> : vector<6x892xf32>
    %39 = tpu.matmul %36, %38, %cst_38 {dimension_numbers = #tpu.dot_dimension_numbers<[1], [0], [0], [1], [0, 0, 1, 1], [], []>} : vector<6x3xf32>, vector<3x892xf32>, vector<6x892xf32> -> vector<6x892xf32>
    %40 = arith.addf %34, %39 : vector<6x892xf32>
    %c7 = arith.constant 7 : index
    %c0_39 = arith.constant 0 : index
    %c0_40 = arith.constant 0 : index
    %41 = vector.load %arg2[%c7, %c0_39, %c0_40] : memref<25x6x3xf32, #tpu.memory_space<vmem>>, vector<1x6x3xf32>
    %42 = vector.shape_cast %41 : vector<1x6x3xf32> to vector<6x3xf32>
    %c0_41 = arith.constant 0 : index
    %c0_42 = arith.constant 0 : index
    %c34 = arith.constant 34 : index
    %43 = vector.load %arg1[%c0_41, %c0_42, %c34] : memref<1x3x1024xf32, #tpu.memory_space<vmem>>, vector<1x3x892xf32>
    %44 = vector.shape_cast %43 : vector<1x3x892xf32> to vector<3x892xf32>
    %cst_43 = arith.constant dense<0.000000e+00> : vector<6x892xf32>
    %45 = tpu.matmul %42, %44, %cst_43 {dimension_numbers = #tpu.dot_dimension_numbers<[1], [0], [0], [1], [0, 0, 1, 1], [], []>} : vector<6x3xf32>, vector<3x892xf32>, vector<6x892xf32> -> vector<6x892xf32>
    %46 = arith.addf %40, %45 : vector<6x892xf32>
    %c8 = arith.constant 8 : index
    %c0_44 = arith.constant 0 : index
    %c0_45 = arith.constant 0 : index
    %47 = vector.load %arg2[%c8, %c0_44, %c0_45] : memref<25x6x3xf32, #tpu.memory_space<vmem>>, vector<1x6x3xf32>
    %48 = vector.shape_cast %47 : vector<1x6x3xf32> to vector<6x3xf32>
    %c0_46 = arith.constant 0 : index
    %c0_47 = arith.constant 0 : index
    %c35 = arith.constant 35 : index
    %49 = vector.load %arg1[%c0_46, %c0_47, %c35] : memref<1x3x1024xf32, #tpu.memory_space<vmem>>, vector<1x3x892xf32>
    %50 = vector.shape_cast %49 : vector<1x3x892xf32> to vector<3x892xf32>
    %cst_48 = arith.constant dense<0.000000e+00> : vector<6x892xf32>
    %51 = tpu.matmul %48, %50, %cst_48 {dimension_numbers = #tpu.dot_dimension_numbers<[1], [0], [0], [1], [0, 0, 1, 1], [], []>} : vector<6x3xf32>, vector<3x892xf32>, vector<6x892xf32> -> vector<6x892xf32>
    %52 = arith.addf %46, %51 : vector<6x892xf32>
    %c9 = arith.constant 9 : index
    %c0_49 = arith.constant 0 : index
    %c0_50 = arith.constant 0 : index
    %53 = vector.load %arg2[%c9, %c0_49, %c0_50] : memref<25x6x3xf32, #tpu.memory_space<vmem>>, vector<1x6x3xf32>
    %54 = vector.shape_cast %53 : vector<1x6x3xf32> to vector<6x3xf32>
    %c0_51 = arith.constant 0 : index
    %c0_52 = arith.constant 0 : index
    %c36 = arith.constant 36 : index
    %55 = vector.load %arg1[%c0_51, %c0_52, %c36] : memref<1x3x1024xf32, #tpu.memory_space<vmem>>, vector<1x3x892xf32>
    %56 = vector.shape_cast %55 : vector<1x3x892xf32> to vector<3x892xf32>
    %cst_53 = arith.constant dense<0.000000e+00> : vector<6x892xf32>
    %57 = tpu.matmul %54, %56, %cst_53 {dimension_numbers = #tpu.dot_dimension_numbers<[1], [0], [0], [1], [0, 0, 1, 1], [], []>} : vector<6x3xf32>, vector<3x892xf32>, vector<6x892xf32> -> vector<6x892xf32>
    %58 = arith.addf %52, %57 : vector<6x892xf32>
    %c10 = arith.constant 10 : index
    %c0_54 = arith.constant 0 : index
    %c0_55 = arith.constant 0 : index
    %59 = vector.load %arg2[%c10, %c0_54, %c0_55] : memref<25x6x3xf32, #tpu.memory_space<vmem>>, vector<1x6x3xf32>
    %60 = vector.shape_cast %59 : vector<1x6x3xf32> to vector<6x3xf32>
    %c0_56 = arith.constant 0 : index
    %c0_57 = arith.constant 0 : index
    %c64 = arith.constant 64 : index
    %61 = vector.load %arg1[%c0_56, %c0_57, %c64] : memref<1x3x1024xf32, #tpu.memory_space<vmem>>, vector<1x3x892xf32>
    %62 = vector.shape_cast %61 : vector<1x3x892xf32> to vector<3x892xf32>
    %cst_58 = arith.constant dense<0.000000e+00> : vector<6x892xf32>
    %63 = tpu.matmul %60, %62, %cst_58 {dimension_numbers = #tpu.dot_dimension_numbers<[1], [0], [0], [1], [0, 0, 1, 1], [], []>} : vector<6x3xf32>, vector<3x892xf32>, vector<6x892xf32> -> vector<6x892xf32>
    %64 = arith.addf %58, %63 : vector<6x892xf32>
    %c11 = arith.constant 11 : index
    %c0_59 = arith.constant 0 : index
    %c0_60 = arith.constant 0 : index
    %65 = vector.load %arg2[%c11, %c0_59, %c0_60] : memref<25x6x3xf32, #tpu.memory_space<vmem>>, vector<1x6x3xf32>
    %66 = vector.shape_cast %65 : vector<1x6x3xf32> to vector<6x3xf32>
    %c0_61 = arith.constant 0 : index
    %c0_62 = arith.constant 0 : index
    %c65 = arith.constant 65 : index
    %67 = vector.load %arg1[%c0_61, %c0_62, %c65] : memref<1x3x1024xf32, #tpu.memory_space<vmem>>, vector<1x3x892xf32>
    %68 = vector.shape_cast %67 : vector<1x3x892xf32> to vector<3x892xf32>
    %cst_63 = arith.constant dense<0.000000e+00> : vector<6x892xf32>
    %69 = tpu.matmul %66, %68, %cst_63 {dimension_numbers = #tpu.dot_dimension_numbers<[1], [0], [0], [1], [0, 0, 1, 1], [], []>} : vector<6x3xf32>, vector<3x892xf32>, vector<6x892xf32> -> vector<6x892xf32>
    %70 = arith.addf %64, %69 : vector<6x892xf32>
    %c12 = arith.constant 12 : index
    %c0_64 = arith.constant 0 : index
    %c0_65 = arith.constant 0 : index
    %71 = vector.load %arg2[%c12, %c0_64, %c0_65] : memref<25x6x3xf32, #tpu.memory_space<vmem>>, vector<1x6x3xf32>
    %72 = vector.shape_cast %71 : vector<1x6x3xf32> to vector<6x3xf32>
    %c0_66 = arith.constant 0 : index
    %c0_67 = arith.constant 0 : index
    %c66 = arith.constant 66 : index
    %73 = vector.load %arg1[%c0_66, %c0_67, %c66] : memref<1x3x1024xf32, #tpu.memory_space<vmem>>, vector<1x3x892xf32>
    %74 = vector.shape_cast %73 : vector<1x3x892xf32> to vector<3x892xf32>
    %cst_68 = arith.constant dense<0.000000e+00> : vector<6x892xf32>
    %75 = tpu.matmul %72, %74, %cst_68 {dimension_numbers = #tpu.dot_dimension_numbers<[1], [0], [0], [1], [0, 0, 1, 1], [], []>} : vector<6x3xf32>, vector<3x892xf32>, vector<6x892xf32> -> vector<6x892xf32>
    %76 = arith.addf %70, %75 : vector<6x892xf32>
    %c13 = arith.constant 13 : index
    %c0_69 = arith.constant 0 : index
    %c0_70 = arith.constant 0 : index
    %77 = vector.load %arg2[%c13, %c0_69, %c0_70] : memref<25x6x3xf32, #tpu.memory_space<vmem>>, vector<1x6x3xf32>
    %78 = vector.shape_cast %77 : vector<1x6x3xf32> to vector<6x3xf32>
    %c0_71 = arith.constant 0 : index
    %c0_72 = arith.constant 0 : index
    %c67 = arith.constant 67 : index
    %79 = vector.load %arg1[%c0_71, %c0_72, %c67] : memref<1x3x1024xf32, #tpu.memory_space<vmem>>, vector<1x3x892xf32>
    %80 = vector.shape_cast %79 : vector<1x3x892xf32> to vector<3x892xf32>
    %cst_73 = arith.constant dense<0.000000e+00> : vector<6x892xf32>
    %81 = tpu.matmul %78, %80, %cst_73 {dimension_numbers = #tpu.dot_dimension_numbers<[1], [0], [0], [1], [0, 0, 1, 1], [], []>} : vector<6x3xf32>, vector<3x892xf32>, vector<6x892xf32> -> vector<6x892xf32>
    %82 = arith.addf %76, %81 : vector<6x892xf32>
    %c14 = arith.constant 14 : index
    %c0_74 = arith.constant 0 : index
    %c0_75 = arith.constant 0 : index
    %83 = vector.load %arg2[%c14, %c0_74, %c0_75] : memref<25x6x3xf32, #tpu.memory_space<vmem>>, vector<1x6x3xf32>
    %84 = vector.shape_cast %83 : vector<1x6x3xf32> to vector<6x3xf32>
    %c0_76 = arith.constant 0 : index
    %c0_77 = arith.constant 0 : index
    %c68 = arith.constant 68 : index
    %85 = vector.load %arg1[%c0_76, %c0_77, %c68] : memref<1x3x1024xf32, #tpu.memory_space<vmem>>, vector<1x3x892xf32>
    %86 = vector.shape_cast %85 : vector<1x3x892xf32> to vector<3x892xf32>
    %cst_78 = arith.constant dense<0.000000e+00> : vector<6x892xf32>
    %87 = tpu.matmul %84, %86, %cst_78 {dimension_numbers = #tpu.dot_dimension_numbers<[1], [0], [0], [1], [0, 0, 1, 1], [], []>} : vector<6x3xf32>, vector<3x892xf32>, vector<6x892xf32> -> vector<6x892xf32>
    %88 = arith.addf %82, %87 : vector<6x892xf32>
    %c15 = arith.constant 15 : index
    %c0_79 = arith.constant 0 : index
    %c0_80 = arith.constant 0 : index
    %89 = vector.load %arg2[%c15, %c0_79, %c0_80] : memref<25x6x3xf32, #tpu.memory_space<vmem>>, vector<1x6x3xf32>
    %90 = vector.shape_cast %89 : vector<1x6x3xf32> to vector<6x3xf32>
    %c0_81 = arith.constant 0 : index
    %c0_82 = arith.constant 0 : index
    %c96 = arith.constant 96 : index
    %91 = vector.load %arg1[%c0_81, %c0_82, %c96] : memref<1x3x1024xf32, #tpu.memory_space<vmem>>, vector<1x3x892xf32>
    %92 = vector.shape_cast %91 : vector<1x3x892xf32> to vector<3x892xf32>
    %cst_83 = arith.constant dense<0.000000e+00> : vector<6x892xf32>
    %93 = tpu.matmul %90, %92, %cst_83 {dimension_numbers = #tpu.dot_dimension_numbers<[1], [0], [0], [1], [0, 0, 1, 1], [], []>} : vector<6x3xf32>, vector<3x892xf32>, vector<6x892xf32> -> vector<6x892xf32>
    %94 = arith.addf %88, %93 : vector<6x892xf32>
    %c16 = arith.constant 16 : index
    %c0_84 = arith.constant 0 : index
    %c0_85 = arith.constant 0 : index
    %95 = vector.load %arg2[%c16, %c0_84, %c0_85] : memref<25x6x3xf32, #tpu.memory_space<vmem>>, vector<1x6x3xf32>
    %96 = vector.shape_cast %95 : vector<1x6x3xf32> to vector<6x3xf32>
    %c0_86 = arith.constant 0 : index
    %c0_87 = arith.constant 0 : index
    %c97 = arith.constant 97 : index
    %97 = vector.load %arg1[%c0_86, %c0_87, %c97] : memref<1x3x1024xf32, #tpu.memory_space<vmem>>, vector<1x3x892xf32>
    %98 = vector.shape_cast %97 : vector<1x3x892xf32> to vector<3x892xf32>
    %cst_88 = arith.constant dense<0.000000e+00> : vector<6x892xf32>
    %99 = tpu.matmul %96, %98, %cst_88 {dimension_numbers = #tpu.dot_dimension_numbers<[1], [0], [0], [1], [0, 0, 1, 1], [], []>} : vector<6x3xf32>, vector<3x892xf32>, vector<6x892xf32> -> vector<6x892xf32>
    %100 = arith.addf %94, %99 : vector<6x892xf32>
    %c17 = arith.constant 17 : index
    %c0_89 = arith.constant 0 : index
    %c0_90 = arith.constant 0 : index
    %101 = vector.load %arg2[%c17, %c0_89, %c0_90] : memref<25x6x3xf32, #tpu.memory_space<vmem>>, vector<1x6x3xf32>
    %102 = vector.shape_cast %101 : vector<1x6x3xf32> to vector<6x3xf32>
    %c0_91 = arith.constant 0 : index
    %c0_92 = arith.constant 0 : index
    %c98 = arith.constant 98 : index
    %103 = vector.load %arg1[%c0_91, %c0_92, %c98] : memref<1x3x1024xf32, #tpu.memory_space<vmem>>, vector<1x3x892xf32>
    %104 = vector.shape_cast %103 : vector<1x3x892xf32> to vector<3x892xf32>
    %cst_93 = arith.constant dense<0.000000e+00> : vector<6x892xf32>
    %105 = tpu.matmul %102, %104, %cst_93 {dimension_numbers = #tpu.dot_dimension_numbers<[1], [0], [0], [1], [0, 0, 1, 1], [], []>} : vector<6x3xf32>, vector<3x892xf32>, vector<6x892xf32> -> vector<6x892xf32>
    %106 = arith.addf %100, %105 : vector<6x892xf32>
    %c18 = arith.constant 18 : index
    %c0_94 = arith.constant 0 : index
    %c0_95 = arith.constant 0 : index
    %107 = vector.load %arg2[%c18, %c0_94, %c0_95] : memref<25x6x3xf32, #tpu.memory_space<vmem>>, vector<1x6x3xf32>
    %108 = vector.shape_cast %107 : vector<1x6x3xf32> to vector<6x3xf32>
    %c0_96 = arith.constant 0 : index
    %c0_97 = arith.constant 0 : index
    %c99 = arith.constant 99 : index
    %109 = vector.load %arg1[%c0_96, %c0_97, %c99] : memref<1x3x1024xf32, #tpu.memory_space<vmem>>, vector<1x3x892xf32>
    %110 = vector.shape_cast %109 : vector<1x3x892xf32> to vector<3x892xf32>
    %cst_98 = arith.constant dense<0.000000e+00> : vector<6x892xf32>
    %111 = tpu.matmul %108, %110, %cst_98 {dimension_numbers = #tpu.dot_dimension_numbers<[1], [0], [0], [1], [0, 0, 1, 1], [], []>} : vector<6x3xf32>, vector<3x892xf32>, vector<6x892xf32> -> vector<6x892xf32>
    %112 = arith.addf %106, %111 : vector<6x892xf32>
    %c19 = arith.constant 19 : index
    %c0_99 = arith.constant 0 : index
    %c0_100 = arith.constant 0 : index
    %113 = vector.load %arg2[%c19, %c0_99, %c0_100] : memref<25x6x3xf32, #tpu.memory_space<vmem>>, vector<1x6x3xf32>
    %114 = vector.shape_cast %113 : vector<1x6x3xf32> to vector<6x3xf32>
    %c0_101 = arith.constant 0 : index
    %c0_102 = arith.constant 0 : index
    %c100 = arith.constant 100 : index
    %115 = vector.load %arg1[%c0_101, %c0_102, %c100] : memref<1x3x1024xf32, #tpu.memory_space<vmem>>, vector<1x3x892xf32>
    %116 = vector.shape_cast %115 : vector<1x3x892xf32> to vector<3x892xf32>
    %cst_103 = arith.constant dense<0.000000e+00> : vector<6x892xf32>
    %117 = tpu.matmul %114, %116, %cst_103 {dimension_numbers = #tpu.dot_dimension_numbers<[1], [0], [0], [1], [0, 0, 1, 1], [], []>} : vector<6x3xf32>, vector<3x892xf32>, vector<6x892xf32> -> vector<6x892xf32>
    %118 = arith.addf %112, %117 : vector<6x892xf32>
    %c20 = arith.constant 20 : index
    %c0_104 = arith.constant 0 : index
    %c0_105 = arith.constant 0 : index
    %119 = vector.load %arg2[%c20, %c0_104, %c0_105] : memref<25x6x3xf32, #tpu.memory_space<vmem>>, vector<1x6x3xf32>
    %120 = vector.shape_cast %119 : vector<1x6x3xf32> to vector<6x3xf32>
    %c0_106 = arith.constant 0 : index
    %c0_107 = arith.constant 0 : index
    %c128 = arith.constant 128 : index
    %121 = vector.load %arg1[%c0_106, %c0_107, %c128] : memref<1x3x1024xf32, #tpu.memory_space<vmem>>, vector<1x3x892xf32>
    %122 = vector.shape_cast %121 : vector<1x3x892xf32> to vector<3x892xf32>
    %cst_108 = arith.constant dense<0.000000e+00> : vector<6x892xf32>
    %123 = tpu.matmul %120, %122, %cst_108 {dimension_numbers = #tpu.dot_dimension_numbers<[1], [0], [0], [1], [0, 0, 1, 1], [], []>} : vector<6x3xf32>, vector<3x892xf32>, vector<6x892xf32> -> vector<6x892xf32>
    %124 = arith.addf %118, %123 : vector<6x892xf32>
    %c21 = arith.constant 21 : index
    %c0_109 = arith.constant 0 : index
    %c0_110 = arith.constant 0 : index
    %125 = vector.load %arg2[%c21, %c0_109, %c0_110] : memref<25x6x3xf32, #tpu.memory_space<vmem>>, vector<1x6x3xf32>
    %126 = vector.shape_cast %125 : vector<1x6x3xf32> to vector<6x3xf32>
    %c0_111 = arith.constant 0 : index
    %c0_112 = arith.constant 0 : index
    %c129 = arith.constant 129 : index
    %127 = vector.load %arg1[%c0_111, %c0_112, %c129] : memref<1x3x1024xf32, #tpu.memory_space<vmem>>, vector<1x3x892xf32>
    %128 = vector.shape_cast %127 : vector<1x3x892xf32> to vector<3x892xf32>
    %cst_113 = arith.constant dense<0.000000e+00> : vector<6x892xf32>
    %129 = tpu.matmul %126, %128, %cst_113 {dimension_numbers = #tpu.dot_dimension_numbers<[1], [0], [0], [1], [0, 0, 1, 1], [], []>} : vector<6x3xf32>, vector<3x892xf32>, vector<6x892xf32> -> vector<6x892xf32>
    %130 = arith.addf %124, %129 : vector<6x892xf32>
    %c22 = arith.constant 22 : index
    %c0_114 = arith.constant 0 : index
    %c0_115 = arith.constant 0 : index
    %131 = vector.load %arg2[%c22, %c0_114, %c0_115] : memref<25x6x3xf32, #tpu.memory_space<vmem>>, vector<1x6x3xf32>
    %132 = vector.shape_cast %131 : vector<1x6x3xf32> to vector<6x3xf32>
    %c0_116 = arith.constant 0 : index
    %c0_117 = arith.constant 0 : index
    %c130 = arith.constant 130 : index
    %133 = vector.load %arg1[%c0_116, %c0_117, %c130] : memref<1x3x1024xf32, #tpu.memory_space<vmem>>, vector<1x3x892xf32>
    %134 = vector.shape_cast %133 : vector<1x3x892xf32> to vector<3x892xf32>
    %cst_118 = arith.constant dense<0.000000e+00> : vector<6x892xf32>
    %135 = tpu.matmul %132, %134, %cst_118 {dimension_numbers = #tpu.dot_dimension_numbers<[1], [0], [0], [1], [0, 0, 1, 1], [], []>} : vector<6x3xf32>, vector<3x892xf32>, vector<6x892xf32> -> vector<6x892xf32>
    %136 = arith.addf %130, %135 : vector<6x892xf32>
    %c23 = arith.constant 23 : index
    %c0_119 = arith.constant 0 : index
    %c0_120 = arith.constant 0 : index
    %137 = vector.load %arg2[%c23, %c0_119, %c0_120] : memref<25x6x3xf32, #tpu.memory_space<vmem>>, vector<1x6x3xf32>
    %138 = vector.shape_cast %137 : vector<1x6x3xf32> to vector<6x3xf32>
    %c0_121 = arith.constant 0 : index
    %c0_122 = arith.constant 0 : index
    %c131 = arith.constant 131 : index
    %139 = vector.load %arg1[%c0_121, %c0_122, %c131] : memref<1x3x1024xf32, #tpu.memory_space<vmem>>, vector<1x3x892xf32>
    %140 = vector.shape_cast %139 : vector<1x3x892xf32> to vector<3x892xf32>
    %cst_123 = arith.constant dense<0.000000e+00> : vector<6x892xf32>
    %141 = tpu.matmul %138, %140, %cst_123 {dimension_numbers = #tpu.dot_dimension_numbers<[1], [0], [0], [1], [0, 0, 1, 1], [], []>} : vector<6x3xf32>, vector<3x892xf32>, vector<6x892xf32> -> vector<6x892xf32>
    %142 = arith.addf %136, %141 : vector<6x892xf32>
    %c24 = arith.constant 24 : index
    %c0_124 = arith.constant 0 : index
    %c0_125 = arith.constant 0 : index
    %143 = vector.load %arg2[%c24, %c0_124, %c0_125] : memref<25x6x3xf32, #tpu.memory_space<vmem>>, vector<1x6x3xf32>
    %144 = vector.shape_cast %143 : vector<1x6x3xf32> to vector<6x3xf32>
    %c0_126 = arith.constant 0 : index
    %c0_127 = arith.constant 0 : index
    %c132 = arith.constant 132 : index
    %145 = vector.load %arg1[%c0_126, %c0_127, %c132] : memref<1x3x1024xf32, #tpu.memory_space<vmem>>, vector<1x3x892xf32>
    %146 = vector.shape_cast %145 : vector<1x3x892xf32> to vector<3x892xf32>
    %cst_128 = arith.constant dense<0.000000e+00> : vector<6x892xf32>
    %147 = tpu.matmul %144, %146, %cst_128 {dimension_numbers = #tpu.dot_dimension_numbers<[1], [0], [0], [1], [0, 0, 1, 1], [], []>} : vector<6x3xf32>, vector<3x892xf32>, vector<6x892xf32> -> vector<6x892xf32>
    %148 = arith.addf %142, %147 : vector<6x892xf32>
    %c0_129 = arith.constant 0 : index
    %c0_130 = arith.constant 0 : index
    %149 = vector.load %arg3[%c0_129, %c0_130] : memref<6x1xf32, #tpu.memory_space<vmem>>, vector<6x1xf32>
    %150 = vector.broadcast %149 : vector<6x1xf32> to vector<6x892xf32>
    %151 = arith.addf %148, %150 : vector<6x892xf32>
    %cst_131 = arith.constant 0.000000e+00 : f32
    %152 = vector.broadcast %cst_131 : f32 to vector<6x892xf32>
    %153 = arith.maximumf %151, %152 : vector<6x892xf32>
    %154 = vector.extract_strided_slice %153 {offsets = [0, 0], sizes = [6, 859], strides = [1, 1]} : vector<6x892xf32> to vector<6x859xf32>
    %155 = vector.extract_strided_slice %153 {offsets = [0, 1], sizes = [6, 859], strides = [1, 1]} : vector<6x892xf32> to vector<6x859xf32>
    %156 = arith.maximumf %154, %155 : vector<6x859xf32>
    %157 = vector.extract_strided_slice %153 {offsets = [0, 32], sizes = [6, 859], strides = [1, 1]} : vector<6x892xf32> to vector<6x859xf32>
    %158 = vector.extract_strided_slice %153 {offsets = [0, 33], sizes = [6, 859], strides = [1, 1]} : vector<6x892xf32> to vector<6x859xf32>
    %159 = arith.maximumf %157, %158 : vector<6x859xf32>
    %160 = arith.maximumf %156, %159 : vector<6x859xf32>
    %c0_132 = arith.constant 0 : index
    %c0_133 = arith.constant 0 : index
    %161 = vector.load %arg6[%c0_132, %c0_133] : memref<859x196xf32, #tpu.memory_space<vmem>>, vector<859x196xf32>
    %cst_134 = arith.constant dense<0.000000e+00> : vector<6x196xf32>
    %162 = tpu.matmul %160, %161, %cst_134 {dimension_numbers = #tpu.dot_dimension_numbers<[1], [0], [0], [1], [0, 0, 1, 1], [], []>} : vector<6x859xf32>, vector<859x196xf32>, vector<6x196xf32> -> vector<6x196xf32>
    %c0_135 = arith.constant 0 : index
    %c0_136 = arith.constant 0 : index
    %c0_137 = arith.constant 0 : index
    %163 = vector.load %arg4[%c0_135, %c0_136, %c0_137] : memref<25x16x6xf32, #tpu.memory_space<vmem>>, vector<1x16x6xf32>
    %164 = vector.shape_cast %163 : vector<1x16x6xf32> to vector<16x6xf32>
    %165 = vector.extract_strided_slice %162 {offsets = [0, 0], sizes = [6, 136], strides = [1, 1]} : vector<6x196xf32> to vector<6x136xf32>
    %cst_138 = arith.constant dense<0.000000e+00> : vector<16x136xf32>
    %166 = tpu.matmul %164, %165, %cst_138 {dimension_numbers = #tpu.dot_dimension_numbers<[1], [0], [0], [1], [0, 0, 1, 1], [], []>} : vector<16x6xf32>, vector<6x136xf32>, vector<16x136xf32> -> vector<16x136xf32>
    %c1_139 = arith.constant 1 : index
    %c0_140 = arith.constant 0 : index
    %c0_141 = arith.constant 0 : index
    %167 = vector.load %arg4[%c1_139, %c0_140, %c0_141] : memref<25x16x6xf32, #tpu.memory_space<vmem>>, vector<1x16x6xf32>
    %168 = vector.shape_cast %167 : vector<1x16x6xf32> to vector<16x6xf32>
    %169 = vector.extract_strided_slice %162 {offsets = [0, 1], sizes = [6, 136], strides = [1, 1]} : vector<6x196xf32> to vector<6x136xf32>
    %cst_142 = arith.constant dense<0.000000e+00> : vector<16x136xf32>
    %170 = tpu.matmul %168, %169, %cst_142 {dimension_numbers = #tpu.dot_dimension_numbers<[1], [0], [0], [1], [0, 0, 1, 1], [], []>} : vector<16x6xf32>, vector<6x136xf32>, vector<16x136xf32> -> vector<16x136xf32>
    %171 = arith.addf %166, %170 : vector<16x136xf32>
    %c2_143 = arith.constant 2 : index
    %c0_144 = arith.constant 0 : index
    %c0_145 = arith.constant 0 : index
    %172 = vector.load %arg4[%c2_143, %c0_144, %c0_145] : memref<25x16x6xf32, #tpu.memory_space<vmem>>, vector<1x16x6xf32>
    %173 = vector.shape_cast %172 : vector<1x16x6xf32> to vector<16x6xf32>
    %174 = vector.extract_strided_slice %162 {offsets = [0, 2], sizes = [6, 136], strides = [1, 1]} : vector<6x196xf32> to vector<6x136xf32>
    %cst_146 = arith.constant dense<0.000000e+00> : vector<16x136xf32>
    %175 = tpu.matmul %173, %174, %cst_146 {dimension_numbers = #tpu.dot_dimension_numbers<[1], [0], [0], [1], [0, 0, 1, 1], [], []>} : vector<16x6xf32>, vector<6x136xf32>, vector<16x136xf32> -> vector<16x136xf32>
    %176 = arith.addf %171, %175 : vector<16x136xf32>
    %c3_147 = arith.constant 3 : index
    %c0_148 = arith.constant 0 : index
    %c0_149 = arith.constant 0 : index
    %177 = vector.load %arg4[%c3_147, %c0_148, %c0_149] : memref<25x16x6xf32, #tpu.memory_space<vmem>>, vector<1x16x6xf32>
    %178 = vector.shape_cast %177 : vector<1x16x6xf32> to vector<16x6xf32>
    %179 = vector.extract_strided_slice %162 {offsets = [0, 3], sizes = [6, 136], strides = [1, 1]} : vector<6x196xf32> to vector<6x136xf32>
    %cst_150 = arith.constant dense<0.000000e+00> : vector<16x136xf32>
    %180 = tpu.matmul %178, %179, %cst_150 {dimension_numbers = #tpu.dot_dimension_numbers<[1], [0], [0], [1], [0, 0, 1, 1], [], []>} : vector<16x6xf32>, vector<6x136xf32>, vector<16x136xf32> -> vector<16x136xf32>
    %181 = arith.addf %176, %180 : vector<16x136xf32>
    %c4_151 = arith.constant 4 : index
    %c0_152 = arith.constant 0 : index
    %c0_153 = arith.constant 0 : index
    %182 = vector.load %arg4[%c4_151, %c0_152, %c0_153] : memref<25x16x6xf32, #tpu.memory_space<vmem>>, vector<1x16x6xf32>
    %183 = vector.shape_cast %182 : vector<1x16x6xf32> to vector<16x6xf32>
    %184 = vector.extract_strided_slice %162 {offsets = [0, 4], sizes = [6, 136], strides = [1, 1]} : vector<6x196xf32> to vector<6x136xf32>
    %cst_154 = arith.constant dense<0.000000e+00> : vector<16x136xf32>
    %185 = tpu.matmul %183, %184, %cst_154 {dimension_numbers = #tpu.dot_dimension_numbers<[1], [0], [0], [1], [0, 0, 1, 1], [], []>} : vector<16x6xf32>, vector<6x136xf32>, vector<16x136xf32> -> vector<16x136xf32>
    %186 = arith.addf %181, %185 : vector<16x136xf32>
    %c5_155 = arith.constant 5 : index
    %c0_156 = arith.constant 0 : index
    %c0_157 = arith.constant 0 : index
    %187 = vector.load %arg4[%c5_155, %c0_156, %c0_157] : memref<25x16x6xf32, #tpu.memory_space<vmem>>, vector<1x16x6xf32>
    %188 = vector.shape_cast %187 : vector<1x16x6xf32> to vector<16x6xf32>
    %189 = vector.extract_strided_slice %162 {offsets = [0, 14], sizes = [6, 136], strides = [1, 1]} : vector<6x196xf32> to vector<6x136xf32>
    %cst_158 = arith.constant dense<0.000000e+00> : vector<16x136xf32>
    %190 = tpu.matmul %188, %189, %cst_158 {dimension_numbers = #tpu.dot_dimension_numbers<[1], [0], [0], [1], [0, 0, 1, 1], [], []>} : vector<16x6xf32>, vector<6x136xf32>, vector<16x136xf32> -> vector<16x136xf32>
    %191 = arith.addf %186, %190 : vector<16x136xf32>
    %c6_159 = arith.constant 6 : index
    %c0_160 = arith.constant 0 : index
    %c0_161 = arith.constant 0 : index
    %192 = vector.load %arg4[%c6_159, %c0_160, %c0_161] : memref<25x16x6xf32, #tpu.memory_space<vmem>>, vector<1x16x6xf32>
    %193 = vector.shape_cast %192 : vector<1x16x6xf32> to vector<16x6xf32>
    %194 = vector.extract_strided_slice %162 {offsets = [0, 15], sizes = [6, 136], strides = [1, 1]} : vector<6x196xf32> to vector<6x136xf32>
    %cst_162 = arith.constant dense<0.000000e+00> : vector<16x136xf32>
    %195 = tpu.matmul %193, %194, %cst_162 {dimension_numbers = #tpu.dot_dimension_numbers<[1], [0], [0], [1], [0, 0, 1, 1], [], []>} : vector<16x6xf32>, vector<6x136xf32>, vector<16x136xf32> -> vector<16x136xf32>
    %196 = arith.addf %191, %195 : vector<16x136xf32>
    %c7_163 = arith.constant 7 : index
    %c0_164 = arith.constant 0 : index
    %c0_165 = arith.constant 0 : index
    %197 = vector.load %arg4[%c7_163, %c0_164, %c0_165] : memref<25x16x6xf32, #tpu.memory_space<vmem>>, vector<1x16x6xf32>
    %198 = vector.shape_cast %197 : vector<1x16x6xf32> to vector<16x6xf32>
    %199 = vector.extract_strided_slice %162 {offsets = [0, 16], sizes = [6, 136], strides = [1, 1]} : vector<6x196xf32> to vector<6x136xf32>
    %cst_166 = arith.constant dense<0.000000e+00> : vector<16x136xf32>
    %200 = tpu.matmul %198, %199, %cst_166 {dimension_numbers = #tpu.dot_dimension_numbers<[1], [0], [0], [1], [0, 0, 1, 1], [], []>} : vector<16x6xf32>, vector<6x136xf32>, vector<16x136xf32> -> vector<16x136xf32>
    %201 = arith.addf %196, %200 : vector<16x136xf32>
    %c8_167 = arith.constant 8 : index
    %c0_168 = arith.constant 0 : index
    %c0_169 = arith.constant 0 : index
    %202 = vector.load %arg4[%c8_167, %c0_168, %c0_169] : memref<25x16x6xf32, #tpu.memory_space<vmem>>, vector<1x16x6xf32>
    %203 = vector.shape_cast %202 : vector<1x16x6xf32> to vector<16x6xf32>
    %204 = vector.extract_strided_slice %162 {offsets = [0, 17], sizes = [6, 136], strides = [1, 1]} : vector<6x196xf32> to vector<6x136xf32>
    %cst_170 = arith.constant dense<0.000000e+00> : vector<16x136xf32>
    %205 = tpu.matmul %203, %204, %cst_170 {dimension_numbers = #tpu.dot_dimension_numbers<[1], [0], [0], [1], [0, 0, 1, 1], [], []>} : vector<16x6xf32>, vector<6x136xf32>, vector<16x136xf32> -> vector<16x136xf32>
    %206 = arith.addf %201, %205 : vector<16x136xf32>
    %c9_171 = arith.constant 9 : index
    %c0_172 = arith.constant 0 : index
    %c0_173 = arith.constant 0 : index
    %207 = vector.load %arg4[%c9_171, %c0_172, %c0_173] : memref<25x16x6xf32, #tpu.memory_space<vmem>>, vector<1x16x6xf32>
    %208 = vector.shape_cast %207 : vector<1x16x6xf32> to vector<16x6xf32>
    %209 = vector.extract_strided_slice %162 {offsets = [0, 18], sizes = [6, 136], strides = [1, 1]} : vector<6x196xf32> to vector<6x136xf32>
    %cst_174 = arith.constant dense<0.000000e+00> : vector<16x136xf32>
    %210 = tpu.matmul %208, %209, %cst_174 {dimension_numbers = #tpu.dot_dimension_numbers<[1], [0], [0], [1], [0, 0, 1, 1], [], []>} : vector<16x6xf32>, vector<6x136xf32>, vector<16x136xf32> -> vector<16x136xf32>
    %211 = arith.addf %206, %210 : vector<16x136xf32>
    %c10_175 = arith.constant 10 : index
    %c0_176 = arith.constant 0 : index
    %c0_177 = arith.constant 0 : index
    %212 = vector.load %arg4[%c10_175, %c0_176, %c0_177] : memref<25x16x6xf32, #tpu.memory_space<vmem>>, vector<1x16x6xf32>
    %213 = vector.shape_cast %212 : vector<1x16x6xf32> to vector<16x6xf32>
    %214 = vector.extract_strided_slice %162 {offsets = [0, 28], sizes = [6, 136], strides = [1, 1]} : vector<6x196xf32> to vector<6x136xf32>
    %cst_178 = arith.constant dense<0.000000e+00> : vector<16x136xf32>
    %215 = tpu.matmul %213, %214, %cst_178 {dimension_numbers = #tpu.dot_dimension_numbers<[1], [0], [0], [1], [0, 0, 1, 1], [], []>} : vector<16x6xf32>, vector<6x136xf32>, vector<16x136xf32> -> vector<16x136xf32>
    %216 = arith.addf %211, %215 : vector<16x136xf32>
    %c11_179 = arith.constant 11 : index
    %c0_180 = arith.constant 0 : index
    %c0_181 = arith.constant 0 : index
    %217 = vector.load %arg4[%c11_179, %c0_180, %c0_181] : memref<25x16x6xf32, #tpu.memory_space<vmem>>, vector<1x16x6xf32>
    %218 = vector.shape_cast %217 : vector<1x16x6xf32> to vector<16x6xf32>
    %219 = vector.extract_strided_slice %162 {offsets = [0, 29], sizes = [6, 136], strides = [1, 1]} : vector<6x196xf32> to vector<6x136xf32>
    %cst_182 = arith.constant dense<0.000000e+00> : vector<16x136xf32>
    %220 = tpu.matmul %218, %219, %cst_182 {dimension_numbers = #tpu.dot_dimension_numbers<[1], [0], [0], [1], [0, 0, 1, 1], [], []>} : vector<16x6xf32>, vector<6x136xf32>, vector<16x136xf32> -> vector<16x136xf32>
    %221 = arith.addf %216, %220 : vector<16x136xf32>
    %c12_183 = arith.constant 12 : index
    %c0_184 = arith.constant 0 : index
    %c0_185 = arith.constant 0 : index
    %222 = vector.load %arg4[%c12_183, %c0_184, %c0_185] : memref<25x16x6xf32, #tpu.memory_space<vmem>>, vector<1x16x6xf32>
    %223 = vector.shape_cast %222 : vector<1x16x6xf32> to vector<16x6xf32>
    %224 = vector.extract_strided_slice %162 {offsets = [0, 30], sizes = [6, 136], strides = [1, 1]} : vector<6x196xf32> to vector<6x136xf32>
    %cst_186 = arith.constant dense<0.000000e+00> : vector<16x136xf32>
    %225 = tpu.matmul %223, %224, %cst_186 {dimension_numbers = #tpu.dot_dimension_numbers<[1], [0], [0], [1], [0, 0, 1, 1], [], []>} : vector<16x6xf32>, vector<6x136xf32>, vector<16x136xf32> -> vector<16x136xf32>
    %226 = arith.addf %221, %225 : vector<16x136xf32>
    %c13_187 = arith.constant 13 : index
    %c0_188 = arith.constant 0 : index
    %c0_189 = arith.constant 0 : index
    %227 = vector.load %arg4[%c13_187, %c0_188, %c0_189] : memref<25x16x6xf32, #tpu.memory_space<vmem>>, vector<1x16x6xf32>
    %228 = vector.shape_cast %227 : vector<1x16x6xf32> to vector<16x6xf32>
    %229 = vector.extract_strided_slice %162 {offsets = [0, 31], sizes = [6, 136], strides = [1, 1]} : vector<6x196xf32> to vector<6x136xf32>
    %cst_190 = arith.constant dense<0.000000e+00> : vector<16x136xf32>
    %230 = tpu.matmul %228, %229, %cst_190 {dimension_numbers = #tpu.dot_dimension_numbers<[1], [0], [0], [1], [0, 0, 1, 1], [], []>} : vector<16x6xf32>, vector<6x136xf32>, vector<16x136xf32> -> vector<16x136xf32>
    %231 = arith.addf %226, %230 : vector<16x136xf32>
    %c14_191 = arith.constant 14 : index
    %c0_192 = arith.constant 0 : index
    %c0_193 = arith.constant 0 : index
    %232 = vector.load %arg4[%c14_191, %c0_192, %c0_193] : memref<25x16x6xf32, #tpu.memory_space<vmem>>, vector<1x16x6xf32>
    %233 = vector.shape_cast %232 : vector<1x16x6xf32> to vector<16x6xf32>
    %234 = vector.extract_strided_slice %162 {offsets = [0, 32], sizes = [6, 136], strides = [1, 1]} : vector<6x196xf32> to vector<6x136xf32>
    %cst_194 = arith.constant dense<0.000000e+00> : vector<16x136xf32>
    %235 = tpu.matmul %233, %234, %cst_194 {dimension_numbers = #tpu.dot_dimension_numbers<[1], [0], [0], [1], [0, 0, 1, 1], [], []>} : vector<16x6xf32>, vector<6x136xf32>, vector<16x136xf32> -> vector<16x136xf32>
    %236 = arith.addf %231, %235 : vector<16x136xf32>
    %c15_195 = arith.constant 15 : index
    %c0_196 = arith.constant 0 : index
    %c0_197 = arith.constant 0 : index
    %237 = vector.load %arg4[%c15_195, %c0_196, %c0_197] : memref<25x16x6xf32, #tpu.memory_space<vmem>>, vector<1x16x6xf32>
    %238 = vector.shape_cast %237 : vector<1x16x6xf32> to vector<16x6xf32>
    %239 = vector.extract_strided_slice %162 {offsets = [0, 42], sizes = [6, 136], strides = [1, 1]} : vector<6x196xf32> to vector<6x136xf32>
    %cst_198 = arith.constant dense<0.000000e+00> : vector<16x136xf32>
    %240 = tpu.matmul %238, %239, %cst_198 {dimension_numbers = #tpu.dot_dimension_numbers<[1], [0], [0], [1], [0, 0, 1, 1], [], []>} : vector<16x6xf32>, vector<6x136xf32>, vector<16x136xf32> -> vector<16x136xf32>
    %241 = arith.addf %236, %240 : vector<16x136xf32>
    %c16_199 = arith.constant 16 : index
    %c0_200 = arith.constant 0 : index
    %c0_201 = arith.constant 0 : index
    %242 = vector.load %arg4[%c16_199, %c0_200, %c0_201] : memref<25x16x6xf32, #tpu.memory_space<vmem>>, vector<1x16x6xf32>
    %243 = vector.shape_cast %242 : vector<1x16x6xf32> to vector<16x6xf32>
    %244 = vector.extract_strided_slice %162 {offsets = [0, 43], sizes = [6, 136], strides = [1, 1]} : vector<6x196xf32> to vector<6x136xf32>
    %cst_202 = arith.constant dense<0.000000e+00> : vector<16x136xf32>
    %245 = tpu.matmul %243, %244, %cst_202 {dimension_numbers = #tpu.dot_dimension_numbers<[1], [0], [0], [1], [0, 0, 1, 1], [], []>} : vector<16x6xf32>, vector<6x136xf32>, vector<16x136xf32> -> vector<16x136xf32>
    %246 = arith.addf %241, %245 : vector<16x136xf32>
    %c17_203 = arith.constant 17 : index
    %c0_204 = arith.constant 0 : index
    %c0_205 = arith.constant 0 : index
    %247 = vector.load %arg4[%c17_203, %c0_204, %c0_205] : memref<25x16x6xf32, #tpu.memory_space<vmem>>, vector<1x16x6xf32>
    %248 = vector.shape_cast %247 : vector<1x16x6xf32> to vector<16x6xf32>
    %249 = vector.extract_strided_slice %162 {offsets = [0, 44], sizes = [6, 136], strides = [1, 1]} : vector<6x196xf32> to vector<6x136xf32>
    %cst_206 = arith.constant dense<0.000000e+00> : vector<16x136xf32>
    %250 = tpu.matmul %248, %249, %cst_206 {dimension_numbers = #tpu.dot_dimension_numbers<[1], [0], [0], [1], [0, 0, 1, 1], [], []>} : vector<16x6xf32>, vector<6x136xf32>, vector<16x136xf32> -> vector<16x136xf32>
    %251 = arith.addf %246, %250 : vector<16x136xf32>
    %c18_207 = arith.constant 18 : index
    %c0_208 = arith.constant 0 : index
    %c0_209 = arith.constant 0 : index
    %252 = vector.load %arg4[%c18_207, %c0_208, %c0_209] : memref<25x16x6xf32, #tpu.memory_space<vmem>>, vector<1x16x6xf32>
    %253 = vector.shape_cast %252 : vector<1x16x6xf32> to vector<16x6xf32>
    %254 = vector.extract_strided_slice %162 {offsets = [0, 45], sizes = [6, 136], strides = [1, 1]} : vector<6x196xf32> to vector<6x136xf32>
    %cst_210 = arith.constant dense<0.000000e+00> : vector<16x136xf32>
    %255 = tpu.matmul %253, %254, %cst_210 {dimension_numbers = #tpu.dot_dimension_numbers<[1], [0], [0], [1], [0, 0, 1, 1], [], []>} : vector<16x6xf32>, vector<6x136xf32>, vector<16x136xf32> -> vector<16x136xf32>
    %256 = arith.addf %251, %255 : vector<16x136xf32>
    %c19_211 = arith.constant 19 : index
    %c0_212 = arith.constant 0 : index
    %c0_213 = arith.constant 0 : index
    %257 = vector.load %arg4[%c19_211, %c0_212, %c0_213] : memref<25x16x6xf32, #tpu.memory_space<vmem>>, vector<1x16x6xf32>
    %258 = vector.shape_cast %257 : vector<1x16x6xf32> to vector<16x6xf32>
    %259 = vector.extract_strided_slice %162 {offsets = [0, 46], sizes = [6, 136], strides = [1, 1]} : vector<6x196xf32> to vector<6x136xf32>
    %cst_214 = arith.constant dense<0.000000e+00> : vector<16x136xf32>
    %260 = tpu.matmul %258, %259, %cst_214 {dimension_numbers = #tpu.dot_dimension_numbers<[1], [0], [0], [1], [0, 0, 1, 1], [], []>} : vector<16x6xf32>, vector<6x136xf32>, vector<16x136xf32> -> vector<16x136xf32>
    %261 = arith.addf %256, %260 : vector<16x136xf32>
    %c20_215 = arith.constant 20 : index
    %c0_216 = arith.constant 0 : index
    %c0_217 = arith.constant 0 : index
    %262 = vector.load %arg4[%c20_215, %c0_216, %c0_217] : memref<25x16x6xf32, #tpu.memory_space<vmem>>, vector<1x16x6xf32>
    %263 = vector.shape_cast %262 : vector<1x16x6xf32> to vector<16x6xf32>
    %264 = vector.extract_strided_slice %162 {offsets = [0, 56], sizes = [6, 136], strides = [1, 1]} : vector<6x196xf32> to vector<6x136xf32>
    %cst_218 = arith.constant dense<0.000000e+00> : vector<16x136xf32>
    %265 = tpu.matmul %263, %264, %cst_218 {dimension_numbers = #tpu.dot_dimension_numbers<[1], [0], [0], [1], [0, 0, 1, 1], [], []>} : vector<16x6xf32>, vector<6x136xf32>, vector<16x136xf32> -> vector<16x136xf32>
    %266 = arith.addf %261, %265 : vector<16x136xf32>
    %c21_219 = arith.constant 21 : index
    %c0_220 = arith.constant 0 : index
    %c0_221 = arith.constant 0 : index
    %267 = vector.load %arg4[%c21_219, %c0_220, %c0_221] : memref<25x16x6xf32, #tpu.memory_space<vmem>>, vector<1x16x6xf32>
    %268 = vector.shape_cast %267 : vector<1x16x6xf32> to vector<16x6xf32>
    %269 = vector.extract_strided_slice %162 {offsets = [0, 57], sizes = [6, 136], strides = [1, 1]} : vector<6x196xf32> to vector<6x136xf32>
    %cst_222 = arith.constant dense<0.000000e+00> : vector<16x136xf32>
    %270 = tpu.matmul %268, %269, %cst_222 {dimension_numbers = #tpu.dot_dimension_numbers<[1], [0], [0], [1], [0, 0, 1, 1], [], []>} : vector<16x6xf32>, vector<6x136xf32>, vector<16x136xf32> -> vector<16x136xf32>
    %271 = arith.addf %266, %270 : vector<16x136xf32>
    %c22_223 = arith.constant 22 : index
    %c0_224 = arith.constant 0 : index
    %c0_225 = arith.constant 0 : index
    %272 = vector.load %arg4[%c22_223, %c0_224, %c0_225] : memref<25x16x6xf32, #tpu.memory_space<vmem>>, vector<1x16x6xf32>
    %273 = vector.shape_cast %272 : vector<1x16x6xf32> to vector<16x6xf32>
    %274 = vector.extract_strided_slice %162 {offsets = [0, 58], sizes = [6, 136], strides = [1, 1]} : vector<6x196xf32> to vector<6x136xf32>
    %cst_226 = arith.constant dense<0.000000e+00> : vector<16x136xf32>
    %275 = tpu.matmul %273, %274, %cst_226 {dimension_numbers = #tpu.dot_dimension_numbers<[1], [0], [0], [1], [0, 0, 1, 1], [], []>} : vector<16x6xf32>, vector<6x136xf32>, vector<16x136xf32> -> vector<16x136xf32>
    %276 = arith.addf %271, %275 : vector<16x136xf32>
    %c23_227 = arith.constant 23 : index
    %c0_228 = arith.constant 0 : index
    %c0_229 = arith.constant 0 : index
    %277 = vector.load %arg4[%c23_227, %c0_228, %c0_229] : memref<25x16x6xf32, #tpu.memory_space<vmem>>, vector<1x16x6xf32>
    %278 = vector.shape_cast %277 : vector<1x16x6xf32> to vector<16x6xf32>
    %279 = vector.extract_strided_slice %162 {offsets = [0, 59], sizes = [6, 136], strides = [1, 1]} : vector<6x196xf32> to vector<6x136xf32>
    %cst_230 = arith.constant dense<0.000000e+00> : vector<16x136xf32>
    %280 = tpu.matmul %278, %279, %cst_230 {dimension_numbers = #tpu.dot_dimension_numbers<[1], [0], [0], [1], [0, 0, 1, 1], [], []>} : vector<16x6xf32>, vector<6x136xf32>, vector<16x136xf32> -> vector<16x136xf32>
    %281 = arith.addf %276, %280 : vector<16x136xf32>
    %c24_231 = arith.constant 24 : index
    %c0_232 = arith.constant 0 : index
    %c0_233 = arith.constant 0 : index
    %282 = vector.load %arg4[%c24_231, %c0_232, %c0_233] : memref<25x16x6xf32, #tpu.memory_space<vmem>>, vector<1x16x6xf32>
    %283 = vector.shape_cast %282 : vector<1x16x6xf32> to vector<16x6xf32>
    %284 = vector.extract_strided_slice %162 {offsets = [0, 60], sizes = [6, 136], strides = [1, 1]} : vector<6x196xf32> to vector<6x136xf32>
    %cst_234 = arith.constant dense<0.000000e+00> : vector<16x136xf32>
    %285 = tpu.matmul %283, %284, %cst_234 {dimension_numbers = #tpu.dot_dimension_numbers<[1], [0], [0], [1], [0, 0, 1, 1], [], []>} : vector<16x6xf32>, vector<6x136xf32>, vector<16x136xf32> -> vector<16x136xf32>
    %286 = arith.addf %281, %285 : vector<16x136xf32>
    %c0_235 = arith.constant 0 : index
    %c0_236 = arith.constant 0 : index
    %287 = vector.load %arg5[%c0_235, %c0_236] : memref<16x1xf32, #tpu.memory_space<vmem>>, vector<16x1xf32>
    %288 = vector.broadcast %287 : vector<16x1xf32> to vector<16x136xf32>
    %289 = arith.addf %286, %288 : vector<16x136xf32>
    %cst_237 = arith.constant 0.000000e+00 : f32
    %290 = vector.broadcast %cst_237 : f32 to vector<16x136xf32>
    %291 = arith.maximumf %289, %290 : vector<16x136xf32>
    %292 = vector.extract_strided_slice %291 {offsets = [0, 0], sizes = [16, 121], strides = [1, 1]} : vector<16x136xf32> to vector<16x121xf32>
    %293 = vector.extract_strided_slice %291 {offsets = [0, 1], sizes = [16, 121], strides = [1, 1]} : vector<16x136xf32> to vector<16x121xf32>
    %294 = arith.maximumf %292, %293 : vector<16x121xf32>
    %295 = vector.extract_strided_slice %291 {offsets = [0, 14], sizes = [16, 121], strides = [1, 1]} : vector<16x136xf32> to vector<16x121xf32>
    %296 = vector.extract_strided_slice %291 {offsets = [0, 15], sizes = [16, 121], strides = [1, 1]} : vector<16x136xf32> to vector<16x121xf32>
    %297 = arith.maximumf %295, %296 : vector<16x121xf32>
    %298 = arith.maximumf %294, %297 : vector<16x121xf32>
    %c0_238 = arith.constant 0 : index
    %c0_239 = arith.constant 0 : index
    %299 = vector.load %arg7[%c0_238, %c0_239] : memref<121x25xf32, #tpu.memory_space<vmem>>, vector<121x25xf32>
    %cst_240 = arith.constant dense<0.000000e+00> : vector<16x25xf32>
    %300 = tpu.matmul %298, %299, %cst_240 {dimension_numbers = #tpu.dot_dimension_numbers<[1], [0], [0], [1], [0, 0, 1, 1], [], []>} : vector<16x121xf32>, vector<121x25xf32>, vector<16x25xf32> -> vector<16x25xf32>
    %c0_241 = arith.constant 0 : index
    %c0_242 = arith.constant 0 : index
    %301 = vector.load %arg9[%c0_241, %c0_242] : memref<1x120xf32, #tpu.memory_space<vmem>>, vector<1x120xf32>
    %302 = vector.extract_strided_slice %300 {offsets = [0, 0], sizes = [1, 25], strides = [1, 1]} : vector<16x25xf32> to vector<1x25xf32>
    %c0_243 = arith.constant 0 : index
    %c0_244 = arith.constant 0 : index
    %c0_245 = arith.constant 0 : index
    %303 = vector.load %arg8[%c0_243, %c0_244, %c0_245] : memref<16x25x120xf32, #tpu.memory_space<vmem>>, vector<1x25x120xf32>
    %304 = vector.shape_cast %303 : vector<1x25x120xf32> to vector<25x120xf32>
    %cst_246 = arith.constant dense<0.000000e+00> : vector<1x120xf32>
    %305 = tpu.matmul %302, %304, %cst_246 {dimension_numbers = #tpu.dot_dimension_numbers<[1], [0], [0], [1], [0, 0, 1, 1], [], []>} : vector<1x25xf32>, vector<25x120xf32>, vector<1x120xf32> -> vector<1x120xf32>
    %306 = arith.addf %301, %305 : vector<1x120xf32>
    %307 = vector.extract_strided_slice %300 {offsets = [1, 0], sizes = [1, 25], strides = [1, 1]} : vector<16x25xf32> to vector<1x25xf32>
    %c1_247 = arith.constant 1 : index
    %c0_248 = arith.constant 0 : index
    %c0_249 = arith.constant 0 : index
    %308 = vector.load %arg8[%c1_247, %c0_248, %c0_249] : memref<16x25x120xf32, #tpu.memory_space<vmem>>, vector<1x25x120xf32>
    %309 = vector.shape_cast %308 : vector<1x25x120xf32> to vector<25x120xf32>
    %cst_250 = arith.constant dense<0.000000e+00> : vector<1x120xf32>
    %310 = tpu.matmul %307, %309, %cst_250 {dimension_numbers = #tpu.dot_dimension_numbers<[1], [0], [0], [1], [0, 0, 1, 1], [], []>} : vector<1x25xf32>, vector<25x120xf32>, vector<1x120xf32> -> vector<1x120xf32>
    %311 = arith.addf %306, %310 : vector<1x120xf32>
    %312 = vector.extract_strided_slice %300 {offsets = [2, 0], sizes = [1, 25], strides = [1, 1]} : vector<16x25xf32> to vector<1x25xf32>
    %c2_251 = arith.constant 2 : index
    %c0_252 = arith.constant 0 : index
    %c0_253 = arith.constant 0 : index
    %313 = vector.load %arg8[%c2_251, %c0_252, %c0_253] : memref<16x25x120xf32, #tpu.memory_space<vmem>>, vector<1x25x120xf32>
    %314 = vector.shape_cast %313 : vector<1x25x120xf32> to vector<25x120xf32>
    %cst_254 = arith.constant dense<0.000000e+00> : vector<1x120xf32>
    %315 = tpu.matmul %312, %314, %cst_254 {dimension_numbers = #tpu.dot_dimension_numbers<[1], [0], [0], [1], [0, 0, 1, 1], [], []>} : vector<1x25xf32>, vector<25x120xf32>, vector<1x120xf32> -> vector<1x120xf32>
    %316 = arith.addf %311, %315 : vector<1x120xf32>
    %317 = vector.extract_strided_slice %300 {offsets = [3, 0], sizes = [1, 25], strides = [1, 1]} : vector<16x25xf32> to vector<1x25xf32>
    %c3_255 = arith.constant 3 : index
    %c0_256 = arith.constant 0 : index
    %c0_257 = arith.constant 0 : index
    %318 = vector.load %arg8[%c3_255, %c0_256, %c0_257] : memref<16x25x120xf32, #tpu.memory_space<vmem>>, vector<1x25x120xf32>
    %319 = vector.shape_cast %318 : vector<1x25x120xf32> to vector<25x120xf32>
    %cst_258 = arith.constant dense<0.000000e+00> : vector<1x120xf32>
    %320 = tpu.matmul %317, %319, %cst_258 {dimension_numbers = #tpu.dot_dimension_numbers<[1], [0], [0], [1], [0, 0, 1, 1], [], []>} : vector<1x25xf32>, vector<25x120xf32>, vector<1x120xf32> -> vector<1x120xf32>
    %321 = arith.addf %316, %320 : vector<1x120xf32>
    %322 = vector.extract_strided_slice %300 {offsets = [4, 0], sizes = [1, 25], strides = [1, 1]} : vector<16x25xf32> to vector<1x25xf32>
    %c4_259 = arith.constant 4 : index
    %c0_260 = arith.constant 0 : index
    %c0_261 = arith.constant 0 : index
    %323 = vector.load %arg8[%c4_259, %c0_260, %c0_261] : memref<16x25x120xf32, #tpu.memory_space<vmem>>, vector<1x25x120xf32>
    %324 = vector.shape_cast %323 : vector<1x25x120xf32> to vector<25x120xf32>
    %cst_262 = arith.constant dense<0.000000e+00> : vector<1x120xf32>
    %325 = tpu.matmul %322, %324, %cst_262 {dimension_numbers = #tpu.dot_dimension_numbers<[1], [0], [0], [1], [0, 0, 1, 1], [], []>} : vector<1x25xf32>, vector<25x120xf32>, vector<1x120xf32> -> vector<1x120xf32>
    %326 = arith.addf %321, %325 : vector<1x120xf32>
    %327 = vector.extract_strided_slice %300 {offsets = [5, 0], sizes = [1, 25], strides = [1, 1]} : vector<16x25xf32> to vector<1x25xf32>
    %c5_263 = arith.constant 5 : index
    %c0_264 = arith.constant 0 : index
    %c0_265 = arith.constant 0 : index
    %328 = vector.load %arg8[%c5_263, %c0_264, %c0_265] : memref<16x25x120xf32, #tpu.memory_space<vmem>>, vector<1x25x120xf32>
    %329 = vector.shape_cast %328 : vector<1x25x120xf32> to vector<25x120xf32>
    %cst_266 = arith.constant dense<0.000000e+00> : vector<1x120xf32>
    %330 = tpu.matmul %327, %329, %cst_266 {dimension_numbers = #tpu.dot_dimension_numbers<[1], [0], [0], [1], [0, 0, 1, 1], [], []>} : vector<1x25xf32>, vector<25x120xf32>, vector<1x120xf32> -> vector<1x120xf32>
    %331 = arith.addf %326, %330 : vector<1x120xf32>
    %332 = vector.extract_strided_slice %300 {offsets = [6, 0], sizes = [1, 25], strides = [1, 1]} : vector<16x25xf32> to vector<1x25xf32>
    %c6_267 = arith.constant 6 : index
    %c0_268 = arith.constant 0 : index
    %c0_269 = arith.constant 0 : index
    %333 = vector.load %arg8[%c6_267, %c0_268, %c0_269] : memref<16x25x120xf32, #tpu.memory_space<vmem>>, vector<1x25x120xf32>
    %334 = vector.shape_cast %333 : vector<1x25x120xf32> to vector<25x120xf32>
    %cst_270 = arith.constant dense<0.000000e+00> : vector<1x120xf32>
    %335 = tpu.matmul %332, %334, %cst_270 {dimension_numbers = #tpu.dot_dimension_numbers<[1], [0], [0], [1], [0, 0, 1, 1], [], []>} : vector<1x25xf32>, vector<25x120xf32>, vector<1x120xf32> -> vector<1x120xf32>
    %336 = arith.addf %331, %335 : vector<1x120xf32>
    %337 = vector.extract_strided_slice %300 {offsets = [7, 0], sizes = [1, 25], strides = [1, 1]} : vector<16x25xf32> to vector<1x25xf32>
    %c7_271 = arith.constant 7 : index
    %c0_272 = arith.constant 0 : index
    %c0_273 = arith.constant 0 : index
    %338 = vector.load %arg8[%c7_271, %c0_272, %c0_273] : memref<16x25x120xf32, #tpu.memory_space<vmem>>, vector<1x25x120xf32>
    %339 = vector.shape_cast %338 : vector<1x25x120xf32> to vector<25x120xf32>
    %cst_274 = arith.constant dense<0.000000e+00> : vector<1x120xf32>
    %340 = tpu.matmul %337, %339, %cst_274 {dimension_numbers = #tpu.dot_dimension_numbers<[1], [0], [0], [1], [0, 0, 1, 1], [], []>} : vector<1x25xf32>, vector<25x120xf32>, vector<1x120xf32> -> vector<1x120xf32>
    %341 = arith.addf %336, %340 : vector<1x120xf32>
    %342 = vector.extract_strided_slice %300 {offsets = [8, 0], sizes = [1, 25], strides = [1, 1]} : vector<16x25xf32> to vector<1x25xf32>
    %c8_275 = arith.constant 8 : index
    %c0_276 = arith.constant 0 : index
    %c0_277 = arith.constant 0 : index
    %343 = vector.load %arg8[%c8_275, %c0_276, %c0_277] : memref<16x25x120xf32, #tpu.memory_space<vmem>>, vector<1x25x120xf32>
    %344 = vector.shape_cast %343 : vector<1x25x120xf32> to vector<25x120xf32>
    %cst_278 = arith.constant dense<0.000000e+00> : vector<1x120xf32>
    %345 = tpu.matmul %342, %344, %cst_278 {dimension_numbers = #tpu.dot_dimension_numbers<[1], [0], [0], [1], [0, 0, 1, 1], [], []>} : vector<1x25xf32>, vector<25x120xf32>, vector<1x120xf32> -> vector<1x120xf32>
    %346 = arith.addf %341, %345 : vector<1x120xf32>
    %347 = vector.extract_strided_slice %300 {offsets = [9, 0], sizes = [1, 25], strides = [1, 1]} : vector<16x25xf32> to vector<1x25xf32>
    %c9_279 = arith.constant 9 : index
    %c0_280 = arith.constant 0 : index
    %c0_281 = arith.constant 0 : index
    %348 = vector.load %arg8[%c9_279, %c0_280, %c0_281] : memref<16x25x120xf32, #tpu.memory_space<vmem>>, vector<1x25x120xf32>
    %349 = vector.shape_cast %348 : vector<1x25x120xf32> to vector<25x120xf32>
    %cst_282 = arith.constant dense<0.000000e+00> : vector<1x120xf32>
    %350 = tpu.matmul %347, %349, %cst_282 {dimension_numbers = #tpu.dot_dimension_numbers<[1], [0], [0], [1], [0, 0, 1, 1], [], []>} : vector<1x25xf32>, vector<25x120xf32>, vector<1x120xf32> -> vector<1x120xf32>
    %351 = arith.addf %346, %350 : vector<1x120xf32>
    %352 = vector.extract_strided_slice %300 {offsets = [10, 0], sizes = [1, 25], strides = [1, 1]} : vector<16x25xf32> to vector<1x25xf32>
    %c10_283 = arith.constant 10 : index
    %c0_284 = arith.constant 0 : index
    %c0_285 = arith.constant 0 : index
    %353 = vector.load %arg8[%c10_283, %c0_284, %c0_285] : memref<16x25x120xf32, #tpu.memory_space<vmem>>, vector<1x25x120xf32>
    %354 = vector.shape_cast %353 : vector<1x25x120xf32> to vector<25x120xf32>
    %cst_286 = arith.constant dense<0.000000e+00> : vector<1x120xf32>
    %355 = tpu.matmul %352, %354, %cst_286 {dimension_numbers = #tpu.dot_dimension_numbers<[1], [0], [0], [1], [0, 0, 1, 1], [], []>} : vector<1x25xf32>, vector<25x120xf32>, vector<1x120xf32> -> vector<1x120xf32>
    %356 = arith.addf %351, %355 : vector<1x120xf32>
    %357 = vector.extract_strided_slice %300 {offsets = [11, 0], sizes = [1, 25], strides = [1, 1]} : vector<16x25xf32> to vector<1x25xf32>
    %c11_287 = arith.constant 11 : index
    %c0_288 = arith.constant 0 : index
    %c0_289 = arith.constant 0 : index
    %358 = vector.load %arg8[%c11_287, %c0_288, %c0_289] : memref<16x25x120xf32, #tpu.memory_space<vmem>>, vector<1x25x120xf32>
    %359 = vector.shape_cast %358 : vector<1x25x120xf32> to vector<25x120xf32>
    %cst_290 = arith.constant dense<0.000000e+00> : vector<1x120xf32>
    %360 = tpu.matmul %357, %359, %cst_290 {dimension_numbers = #tpu.dot_dimension_numbers<[1], [0], [0], [1], [0, 0, 1, 1], [], []>} : vector<1x25xf32>, vector<25x120xf32>, vector<1x120xf32> -> vector<1x120xf32>
    %361 = arith.addf %356, %360 : vector<1x120xf32>
    %362 = vector.extract_strided_slice %300 {offsets = [12, 0], sizes = [1, 25], strides = [1, 1]} : vector<16x25xf32> to vector<1x25xf32>
    %c12_291 = arith.constant 12 : index
    %c0_292 = arith.constant 0 : index
    %c0_293 = arith.constant 0 : index
    %363 = vector.load %arg8[%c12_291, %c0_292, %c0_293] : memref<16x25x120xf32, #tpu.memory_space<vmem>>, vector<1x25x120xf32>
    %364 = vector.shape_cast %363 : vector<1x25x120xf32> to vector<25x120xf32>
    %cst_294 = arith.constant dense<0.000000e+00> : vector<1x120xf32>
    %365 = tpu.matmul %362, %364, %cst_294 {dimension_numbers = #tpu.dot_dimension_numbers<[1], [0], [0], [1], [0, 0, 1, 1], [], []>} : vector<1x25xf32>, vector<25x120xf32>, vector<1x120xf32> -> vector<1x120xf32>
    %366 = arith.addf %361, %365 : vector<1x120xf32>
    %367 = vector.extract_strided_slice %300 {offsets = [13, 0], sizes = [1, 25], strides = [1, 1]} : vector<16x25xf32> to vector<1x25xf32>
    %c13_295 = arith.constant 13 : index
    %c0_296 = arith.constant 0 : index
    %c0_297 = arith.constant 0 : index
    %368 = vector.load %arg8[%c13_295, %c0_296, %c0_297] : memref<16x25x120xf32, #tpu.memory_space<vmem>>, vector<1x25x120xf32>
    %369 = vector.shape_cast %368 : vector<1x25x120xf32> to vector<25x120xf32>
    %cst_298 = arith.constant dense<0.000000e+00> : vector<1x120xf32>
    %370 = tpu.matmul %367, %369, %cst_298 {dimension_numbers = #tpu.dot_dimension_numbers<[1], [0], [0], [1], [0, 0, 1, 1], [], []>} : vector<1x25xf32>, vector<25x120xf32>, vector<1x120xf32> -> vector<1x120xf32>
    %371 = arith.addf %366, %370 : vector<1x120xf32>
    %372 = vector.extract_strided_slice %300 {offsets = [14, 0], sizes = [1, 25], strides = [1, 1]} : vector<16x25xf32> to vector<1x25xf32>
    %c14_299 = arith.constant 14 : index
    %c0_300 = arith.constant 0 : index
    %c0_301 = arith.constant 0 : index
    %373 = vector.load %arg8[%c14_299, %c0_300, %c0_301] : memref<16x25x120xf32, #tpu.memory_space<vmem>>, vector<1x25x120xf32>
    %374 = vector.shape_cast %373 : vector<1x25x120xf32> to vector<25x120xf32>
    %cst_302 = arith.constant dense<0.000000e+00> : vector<1x120xf32>
    %375 = tpu.matmul %372, %374, %cst_302 {dimension_numbers = #tpu.dot_dimension_numbers<[1], [0], [0], [1], [0, 0, 1, 1], [], []>} : vector<1x25xf32>, vector<25x120xf32>, vector<1x120xf32> -> vector<1x120xf32>
    %376 = arith.addf %371, %375 : vector<1x120xf32>
    %377 = vector.extract_strided_slice %300 {offsets = [15, 0], sizes = [1, 25], strides = [1, 1]} : vector<16x25xf32> to vector<1x25xf32>
    %c15_303 = arith.constant 15 : index
    %c0_304 = arith.constant 0 : index
    %c0_305 = arith.constant 0 : index
    %378 = vector.load %arg8[%c15_303, %c0_304, %c0_305] : memref<16x25x120xf32, #tpu.memory_space<vmem>>, vector<1x25x120xf32>
    %379 = vector.shape_cast %378 : vector<1x25x120xf32> to vector<25x120xf32>
    %cst_306 = arith.constant dense<0.000000e+00> : vector<1x120xf32>
    %380 = tpu.matmul %377, %379, %cst_306 {dimension_numbers = #tpu.dot_dimension_numbers<[1], [0], [0], [1], [0, 0, 1, 1], [], []>} : vector<1x25xf32>, vector<25x120xf32>, vector<1x120xf32> -> vector<1x120xf32>
    %381 = arith.addf %376, %380 : vector<1x120xf32>
    %cst_307 = arith.constant 0.000000e+00 : f32
    %382 = vector.broadcast %cst_307 : f32 to vector<1x120xf32>
    %383 = arith.maximumf %381, %382 : vector<1x120xf32>
    %c0_308 = arith.constant 0 : index
    %c0_309 = arith.constant 0 : index
    %384 = vector.load %arg10[%c0_308, %c0_309] : memref<120x84xf32, #tpu.memory_space<vmem>>, vector<120x84xf32>
    %cst_310 = arith.constant dense<0.000000e+00> : vector<1x84xf32>
    %385 = tpu.matmul %383, %384, %cst_310 {dimension_numbers = #tpu.dot_dimension_numbers<[1], [0], [0], [1], [0, 0, 1, 1], [], []>} : vector<1x120xf32>, vector<120x84xf32>, vector<1x84xf32> -> vector<1x84xf32>
    %c0_311 = arith.constant 0 : index
    %c0_312 = arith.constant 0 : index
    %386 = vector.load %arg11[%c0_311, %c0_312] : memref<1x84xf32, #tpu.memory_space<vmem>>, vector<1x84xf32>
    %387 = arith.addf %385, %386 : vector<1x84xf32>
    %cst_313 = arith.constant 0.000000e+00 : f32
    %388 = vector.broadcast %cst_313 : f32 to vector<1x84xf32>
    %389 = arith.maximumf %387, %388 : vector<1x84xf32>
    %c0_314 = arith.constant 0 : index
    %c0_315 = arith.constant 0 : index
    %390 = vector.load %arg12[%c0_314, %c0_315] : memref<84x10xf32, #tpu.memory_space<vmem>>, vector<84x10xf32>
    %cst_316 = arith.constant dense<0.000000e+00> : vector<1x10xf32>
    %391 = tpu.matmul %389, %390, %cst_316 {dimension_numbers = #tpu.dot_dimension_numbers<[1], [0], [0], [1], [0, 0, 1, 1], [], []>} : vector<1x84xf32>, vector<84x10xf32>, vector<1x10xf32> -> vector<1x10xf32>
    %c0_317 = arith.constant 0 : index
    %c0_318 = arith.constant 0 : index
    %392 = vector.load %arg13[%c0_317, %c0_318] : memref<1x10xf32, #tpu.memory_space<vmem>>, vector<1x10xf32>
    %393 = arith.addf %391, %392 : vector<1x10xf32>
    %cst_319 = arith.constant dense<0xFF800000> : vector<1xf32>
    %394 = vector.multi_reduction <maximumf>, %393, %cst_319 [1] : vector<1x10xf32> to vector<1xf32>
    %395 = vector.shape_cast %394 : vector<1xf32> to vector<1x1xf32>
    %396 = vector.broadcast %395 : vector<1x1xf32> to vector<1x10xf32>
    %397 = arith.subf %393, %396 : vector<1x10xf32>
    %398 = math.exp %397 : vector<1x10xf32>
    %cst_320 = arith.constant dense<0.000000e+00> : vector<1xf32>
    %399 = vector.multi_reduction <add>, %398, %cst_320 [1] : vector<1x10xf32> to vector<1xf32>
    %400 = vector.shape_cast %399 : vector<1xf32> to vector<1x1xf32>
    %401 = math.log %400 : vector<1x1xf32>
    %402 = vector.broadcast %401 : vector<1x1xf32> to vector<1x10xf32>
    %403 = arith.subf %397, %402 : vector<1x10xf32>
    %c0_321 = arith.constant 0 : index
    %c0_322 = arith.constant 0 : index
    %c0_323 = arith.constant 0 : index
    %404 = vector.load %arg14[%c0_321, %c0_322, %c0_323] : memref<1x1x10xf32, #tpu.memory_space<vmem>>, vector<1x1x10xf32>
    %405 = vector.shape_cast %404 : vector<1x1x10xf32> to vector<1x10xf32>
    %406 = vector.shape_cast %403 : vector<1x10xf32> to vector<1x1x10xf32>
    tpu.vector_store %arg14[%c0_321, %c0_322, %c0_323], %406 {strides = array<i32>} : memref<1x1x10xf32, #tpu.memory_space<vmem>>, vector<1x1x10xf32>,
    return
  }
  func.func @transform_0(%arg0: i32) -> (i32, i32, i32) {
    %c0_i32 = arith.constant 0 : i32
    %c0_i32_0 = arith.constant 0 : i32
    %c0_i32_1 = arith.constant 0 : i32
    return %arg0, %c0_i32, %c0_i32_0 : i32, i32, i32
  }
  func.func @transform_1(%arg0: i32) -> (i32, i32, i32) {
    %c0_i32 = arith.constant 0 : i32
    %c0_i32_0 = arith.constant 0 : i32
    %c0_i32_1 = arith.constant 0 : i32
    %c0_i32_2 = arith.constant 0 : i32
    return %c0_i32, %c0_i32_0, %c0_i32_1 : i32, i32, i32
  }
  func.func @transform_2(%arg0: i32) -> (i32, i32) {
    %c0_i32 = arith.constant 0 : i32
    %c0_i32_0 = arith.constant 0 : i32
    %c0_i32_1 = arith.constant 0 : i32
    return %c0_i32, %c0_i32_0 : i32, i32
  }
  func.func @transform_3(%arg0: i32) -> (i32, i32, i32) {
    %c0_i32 = arith.constant 0 : i32
    %c0_i32_0 = arith.constant 0 : i32
    %c0_i32_1 = arith.constant 0 : i32
    %c0_i32_2 = arith.constant 0 : i32
    return %c0_i32, %c0_i32_0, %c0_i32_1 : i32, i32, i32
  }
  func.func @transform_4(%arg0: i32) -> (i32, i32) {
    %c0_i32 = arith.constant 0 : i32
    %c0_i32_0 = arith.constant 0 : i32
    %c0_i32_1 = arith.constant 0 : i32
    return %c0_i32, %c0_i32_0 : i32, i32
  }
  func.func @transform_5(%arg0: i32) -> (i32, i32) {
    %c0_i32 = arith.constant 0 : i32
    %c0_i32_0 = arith.constant 0 : i32
    %c0_i32_1 = arith.constant 0 : i32
    return %c0_i32, %c0_i32_0 : i32, i32
  }
  func.func @transform_6(%arg0: i32) -> (i32, i32) {
    %c0_i32 = arith.constant 0 : i32
    %c0_i32_0 = arith.constant 0 : i32
    %c0_i32_1 = arith.constant 0 : i32
    return %c0_i32, %c0_i32_0 : i32, i32
  }
  func.func @transform_7(%arg0: i32) -> (i32, i32, i32) {
    %c0_i32 = arith.constant 0 : i32
    %c0_i32_0 = arith.constant 0 : i32
    %c0_i32_1 = arith.constant 0 : i32
    %c0_i32_2 = arith.constant 0 : i32
    return %c0_i32, %c0_i32_0, %c0_i32_1 : i32, i32, i32
  }
  func.func @transform_8(%arg0: i32) -> (i32, i32) {
    %c0_i32 = arith.constant 0 : i32
    %c0_i32_0 = arith.constant 0 : i32
    %c0_i32_1 = arith.constant 0 : i32
    return %c0_i32, %c0_i32_0 : i32, i32
  }
  func.func @transform_9(%arg0: i32) -> (i32, i32) {
    %c0_i32 = arith.constant 0 : i32
    %c0_i32_0 = arith.constant 0 : i32
    %c0_i32_1 = arith.constant 0 : i32
    return %c0_i32, %c0_i32_0 : i32, i32
  }
  func.func @transform_10(%arg0: i32) -> (i32, i32) {
    %c0_i32 = arith.constant 0 : i32
    %c0_i32_0 = arith.constant 0 : i32
    %c0_i32_1 = arith.constant 0 : i32
    return %c0_i32, %c0_i32_0 : i32, i32
  }
  func.func @transform_11(%arg0: i32) -> (i32, i32) {
    %c0_i32 = arith.constant 0 : i32
    %c0_i32_0 = arith.constant 0 : i32
    %c0_i32_1 = arith.constant 0 : i32
    return %c0_i32, %c0_i32_0 : i32, i32
  }
  func.func @transform_12(%arg0: i32) -> (i32, i32) {
    %c0_i32 = arith.constant 0 : i32
    %c0_i32_0 = arith.constant 0 : i32
    %c0_i32_1 = arith.constant 0 : i32
    return %c0_i32, %c0_i32_0 : i32, i32
  }
  func.func @transform_13(%arg0: i32) -> (i32, i32, i32) {
    %c0_i32 = arith.constant 0 : i32
    %c0_i32_0 = arith.constant 0 : i32
    %c0_i32_1 = arith.constant 0 : i32
    return %arg0, %c0_i32, %c0_i32_0 : i32, i32, i32
  }
}

</mosaic_0001>

<bundles_post_ra>
// kernel: lenet_forward.1
= control target key start
LH: loop header
LB: loop body
LE: loop exit
PB: predicated region body
PF: predicated region fallthrough
CT: control target
= control target key end

     0   :  { %s18699_s0 = inlined_call_operand.vmem [shape: f32[2,3,1024], index: 0, kind: input, shape index: {}]   ;;  %s18700_s1 = inlined_call_operand.vmem [shape: f32[25,6,3], index: 1, kind: input, shape index: {}]   ;;  %s18701_s2 = inlined_call_operand.vmem [shape: f32[6,1], index: 2, kind: input, shape index: {}]   ;;  %s18702_s3 = inlined_call_operand.vmem [shape: f32[25,16,6], index: 3, kind: input, shape index: {}]   ;;  %s18703_s4 = inlined_call_operand.vmem [shape: f32[16,1], index: 4, kind: input, shape index: {}]   ;;  %s18704_s5 = inlined_call_operand.vmem [shape: f32[859,196], index: 5, kind: input, shape index: {}]   ;;  %s18705_s6 = inlined_call_operand.vmem [shape: f32[121,25], index: 6, kind: input, shape index: {}]   ;;  %s18706_s7 = inlined_call_operand.vmem [shape: f32[16,25,120], index: 7, kind: input, shape index: {}]   ;;  %s18707_s8 = inlined_call_operand.vmem [shape: f32[1,120], index: 8, kind: input, shape index: {}]   ;;  %s18708_s9 = inlined_call_operand.vmem [shape: f32[120,84], index: 9, kind: input, shape index: {}]   ;;  %s18709_s10 = inlined_call_operand.vmem [shape: f32[1,84], index: 10, kind: input, shape index: {}]   ;;  %s18710_s11 = inlined_call_operand.vmem [shape: f32[84,10], index: 11, kind: input, shape index: {}]   ;;  %s18711_s12 = inlined_call_operand.vmem [shape: f32[1,10], index: 12, kind: input, shape index: {}]   ;;  %s18712_s13 = inlined_call_operand.hbm [shape: f32[2,1,10], index: 13, kind: output, shape index: {}]  }
   0x1   :  { %18724 = sst [smem:[#allocation7_spill]] %s18699_s0 }
   0x2   :  { %18725 = sst [smem:[#allocation8_spill]] %s18700_s1 }
   0x3   :  { %18726 = sst [smem:[#allocation9_spill]] %s18701_s2 }
   0x4   :  { %18 = vsyncpa [#allocation3], 0 }
   0x5   :  { %20 = vsyncpa [#allocation3 + $0x1], 0  ;;  %s15973_s25 = smov 0   ;;  %s15975_s26 = smov 0  }
   0x6   :  { %s15977_s27 = smov 0   ;;  %s15979_s28 = smov 0  }
   0x7 LB: > { %18727 = sst [smem:[#allocation5_spill]] %s15853_s27  ;;  %s15994_s29 = sadd.s32 4294967295, %s15857_s28   ;;  %s15857_s28 = sphi %s15979_s28, %s18745_s28   ;;  %s15853_s27 = sphi %s15977_s27, %s18742_s27   ;;  %s15849_s26 = sphi %s15975_s26, %s18744_s26   ;;  %s15845_s25 = sphi %s15973_s25, %s18743_s25  }
   0x8   : > { %s13791_s30 = sadd.s32 4294967294, %s15857_s28   ;;  %s15998_s14 = sadd.s32 1, %s15857_s28  }
   0x9   : > { %s311_s15 = sadd.s32 1, %s15853_s27  ;;  %s308_s16 = ssub.s32 %s15857_s28, %s15998_s14 }
   0xa   : > { %p321_p0 = scmp.ne.s32.totalorder %s15853_s27, %s15849_s26  ;;  %p309_p1 = scmp.eq.s32.totalorder %s308_s16, 0 }
   0xb   : > { %p322_p2 = scmp.eq.s32.totalorder %s15994_s29, 1  ;;  %p327_p3 = scmp.ne.s32.totalorder %s15849_s26, %s15845_s25 }
   0xc   : > { %p328_p4 = scmp.eq.s32.totalorder %s13791_s30, 1  ;;  %p13794_p7 = scmp.ge.s32.totalorder %s15857_s28, 1 }
   0xd   : > { %s16009_s17 = scalar_select %p309_p1, %s15853_s27, %s311_s15  }
   0xe   : > { %p16011_p5 = por %p322_p2, %p321_p0  ;;  %p16015_p6 = por %p328_p4, %p327_p3 }
   0xf   : > { %18728 = sst [smem:[#allocation6_spill]] %s16009_s17  ;;  %p390_p8 = scmp.lt.s32.totalorder %s15857_s28, 3 }
  0x11   : > { %p391_p9 = pnand %p13794_p7, %p390_p8 }
  0x12   : > { %p433_p10 = scmp.lt.s32.totalorder (!%p391_p9), %s15994_s29, 1  ;;  %v15859_v0 = vmov (!%p391_p9), 0.0   ;;  %s18731_s0 = sld [smem:[#allocation7_spill]] (!%p391_p9)  ;;  %vm466_vm0 = vcmask (!%p391_p9), 1039360   ;;  %vm477_vm1 = vcmask (!%p391_p9), 1042432   ;;  %vm473_vm2 = vcmask (!%p391_p9), 23552  }
  0x13   : > { %394 = sbr.rel (%p391_p9) target bundleno = 3437 (0xd6d), region = 72  ;;  %627 = vmatprep.mubr.f32.mxu1 (!%p391_p9), %v15859_v0  ;;  %556 = vmatprep.mubr.f32.mxu0 (!%p391_p9), %v15859_v0  ;;  %s18721_s30 = smov (!%p391_p9), 127   ;;  %vm15869_vm3 = vmmov (!%p391_p9), 0   ;;  %vm1102_vm4 = vcmask (!%p391_p9), 1031168   ;;  %vm1443_vm5 = vcmask (!%p391_p9), 1022976   ;;  %vm1784_vm6 = vcmask (!%p391_p9), 1014784  }
  0x14   : > { %s18719_s15 = smov (!%p391_p9), 126   ;;  %s18717_s16 = smov (!%p391_p9), 125   ;;  %vm2128_vm7 = vcmask (!%p391_p9), 785408   ;;  %vm2473_vm8 = vcmask (!%p391_p9), 777216   ;;  %vm2818_vm9 = vcmask (!%p391_p9), 769024   ;;  %vm3163_vm10 = vcmask (!%p391_p9), 760832  }
  0x15   : > { %s15865_s22 = smov (!%p391_p9), 95   ;;  %s15866_s23 = smov (!%p391_p9), 94   ;;  %vm3508_vm11 = vcmask (!%p391_p9), 752640   ;;  %vm3853_vm12 = vcmask (!%p391_p9), 523264   ;;  %vm4198_vm13 = vcmask (!%p391_p9), 515072   ;;  %vm4543_vm14 = vcmask (!%p391_p9), 506880  }
  0x16   : > { %s18732_s1 = sld [smem:[#allocation8_spill]] (!%p391_p9)  ;;  %vm4888_vm15 = vcmask (!%p391_p9), 498688   ;;  %s18734_s2 = sld [smem:[#allocation9_spill]] (!%p391_p9) }
  0x17   : > { %s15885_s17 = smov (!%p391_p9), 111   ;;  %s15889_s27 = smov (!%p391_p9), 98  }
  0x1a   : > { %s434_s20 = scalar_select %p433_p10, %s15994_s29, 1 }
  0x1c   : > { %s14348_s21 = sshll.u32 %s434_s20, 5  ;;  %s18715_s20 = smov 124  }
  0x1d   : > { %s16028_s24 = scalar_lea.vmem %s18731_s0, %s14348_s21  ;;  %s18713_s21 = smov 96  }
  0x1e   : > { %v16031_v1 = vld [vmem:[%s16028_s24 + $0x10] sm:$0x77]  ;;  %v16034_v2 = vld [vmem:[%s16028_s24 + $0x8] sm:$0x77]  ;;  %v16045_v4 = vld [vmem:[%s16028_s24] sm:$0x77] }
  0x1f   : > { %460 = vrot.lane.b32.xlu1 %v16031_v1, %s18721_s30  ;;  %456 = vrot.lane.b32.xlu0 %v16034_v2, %s18721_s30  ;;  %v16042_v3 = vcombine.high %v16034_v2, %v16034_v2  ;;  %v16053_v5 = vcombine.high %v16031_v1, %v16031_v1  ;;  %v16057_v6 = vcombine.high %v16045_v4, %v16045_v4  ;;  %v1077_v7 = vld [vmem:[%s16028_s24] sm:$0x77]  ;;  %v16065_v9 = vld [vmem:[%s16028_s24 + $0x18] sm:$0x7]  ;;  %s15883_s0 = smov 113  }
  0x20   : > { %v1085_v8 = vcombine.high %v1077_v7, %v1077_v7  ;;  %v1078_v10 = vld [vmem:[%s16028_s24 + $0x8] sm:$0x77]  ;;  %v1079_v12 = vld [vmem:[%s16028_s24 + $0x10] sm:$0x77]  ;;  %v1080_v14 = vld [vmem:[%s16028_s24 + $0x18] sm:$0x7] }
  0x21   : > { %v1086_v11 = vcombine.high %v1078_v10, %v1078_v10  ;;  %v1087_v13 = vcombine.high %v1079_v12, %v1079_v12  ;;  %v1418_v15 = vld [vmem:[%s16028_s24] sm:$0x77]  ;;  %v1419_v17 = vld [vmem:[%s16028_s24 + $0x8] sm:$0x77]  ;;  %v1420_v19 = vld [vmem:[%s16028_s24 + $0x10] sm:$0x77] }
  0x22   : > { %v1426_v16 = vcombine.high %v1418_v15, %v1418_v15  ;;  %v1427_v18 = vcombine.high %v1419_v17, %v1419_v17  ;;  %v1428_v20 = vcombine.high %v1420_v19, %v1420_v19  ;;  %v1759_v21 = vld [vmem:[%s16028_s24] sm:$0x77]  ;;  %v1421_v23 = vld [vmem:[%s16028_s24 + $0x18] sm:$0x7]  ;;  %v1760_v24 = vld [vmem:[%s16028_s24 + $0x8] sm:$0x77] }
  0x23   : > { %458 = vrot.lane.b32.xlu1 %v16042_v3, %s18721_s30  ;;  %452 = vrot.lane.b32.xlu0 %v16045_v4, %s18721_s30  ;;  %v1767_v22 = vcombine.high %v1759_v21, %v1759_v21  ;;  %v1768_v25 = vcombine.high %v1760_v24, %v1760_v24  ;;  %v1761_v26 = vld [vmem:[%s16028_s24 + $0x10] sm:$0x77]  ;;  %v1762_v28 = vld [vmem:[%s16028_s24 + $0x18] sm:$0x7] }
  0x24   : > { %v1769_v27 = vcombine.high %v1761_v26, %v1761_v26  ;;  %v2100_v29 = vld [vmem:[%s16028_s24] sm:$0x77]  ;;  %v2101_v31 = vld [vmem:[%s16028_s24 + $0x8] sm:$0x77]  ;;  %v2102_v33 = vld [vmem:[%s16028_s24 + $0x10] sm:$0x77] }
  0x25   : > { %v2108_v30 = vcombine.high %v2100_v29, %v2100_v29  ;;  %v2109_v32 = vcombine.high %v2101_v31, %v2101_v31  ;;  %v2110_v34 = vcombine.high %v2102_v33, %v2102_v33  ;;  %v2103_v35 = vld [vmem:[%s16028_s24 + $0x18] sm:$0x77]  ;;  %v2445_v37 = vld [vmem:[%s16028_s24] sm:$0x77]  ;;  %v2446_v39 = vld [vmem:[%s16028_s24 + $0x8] sm:$0x77] }
  0x26   : > { %v2111_v36 = vcombine.high %v2103_v35, %v2103_v35  ;;  %v2453_v38 = vcombine.high %v2445_v37, %v2445_v37  ;;  %v2454_v40 = vcombine.high %v2446_v39, %v2446_v39  ;;  %v2447_v41 = vld [vmem:[%s16028_s24 + $0x10] sm:$0x77]  ;;  %v2448_v43 = vld [vmem:[%s16028_s24 + $0x18] sm:$0x77]  ;;  %v2790_v45 = vld [vmem:[%s16028_s24] sm:$0x77] }
  0x27   : > { %462 = vrot.lane.b32.xlu1 %v16053_v5, %s18721_s30  ;;  %454 = vrot.lane.b32.xlu0 %v16057_v6, %s18721_s30  ;;  %v2455_v42 = vcombine.high %v2447_v41, %v2447_v41  ;;  %v2456_v44 = vcombine.high %v2448_v43, %v2448_v43  ;;  %v2798_v46 = vcombine.high %v2790_v45, %v2790_v45  ;;  %v2791_v47 = vld [vmem:[%s16028_s24 + $0x8] sm:$0x77]  ;;  %v2792_v49 = vld [vmem:[%s16028_s24 + $0x10] sm:$0x77] }
  0x28   : > { %v2799_v48 = vcombine.high %v2791_v47, %v2791_v47  ;;  %v2800_v50 = vcombine.high %v2792_v49, %v2792_v49  ;;  %v2793_v51 = vld [vmem:[%s16028_s24 + $0x18] sm:$0x77]  ;;  %v3135_v53 = vld [vmem:[%s16028_s24] sm:$0x77]  ;;  %v3136_v55 = vld [vmem:[%s16028_s24 + $0x8] sm:$0x77] }
  0x29   : > { %v2801_v52 = vcombine.high %v2793_v51, %v2793_v51  ;;  %v3143_v54 = vcombine.high %v3135_v53, %v3135_v53  ;;  %v3144_v56 = vcombine.high %v3136_v55, %v3136_v55  ;;  %v3137_v57 = vld [vmem:[%s16028_s24 + $0x10] sm:$0x77]  ;;  %v3138_v59 = vld [vmem:[%s16028_s24 + $0x18] sm:$0x77]  ;;  %v3480_v63 = vld [vmem:[%s16028_s24] sm:$0x77] }
  0x2a   : > { %v3145_v58 = vcombine.high %v3137_v57, %v3137_v57  ;;  %v3146_v60 = vcombine.high %v3138_v59, %v3138_v59 }
  0x2b   : > { %1090 = vrot.lane.b32.xlu1 %v1085_v8, %s18719_s15  ;;  %464 = vrot.lane.b32.xlu0 %v16065_v9, %s18721_s30  ;;  %v3488_v8 = vcombine.high %v3480_v63, %v3480_v63 }
  0x2f   : > { %1094 = vrot.lane.b32.xlu1 %v1086_v11, %s18719_s15  ;;  %1092 = vrot.lane.b32.xlu0 %v1078_v10, %s18719_s15 }
  0x33   : > { %1088 = vrot.lane.b32.xlu1 %v1077_v7, %s18719_s15  ;;  %1096 = vrot.lane.b32.xlu0 %v1079_v12, %s18719_s15  ;;  %v3481_v7 = vld [vmem:[%s16028_s24 + $0x8] sm:$0x77] }
  0x37   : > { %1100 = vrot.lane.b32.xlu1 %v1080_v14, %s18719_s15  ;;  %1098 = vrot.lane.b32.xlu0 %v1087_v13, %s18719_s15  ;;  %v13797_v14 = vld [vmem:[%s18732_s1 + $0x8] sm:$0x3f] }
  0x3b   : > { %1433 = vrot.lane.b32.xlu1 %v1419_v17, %s18717_s16  ;;  %1431 = vrot.lane.b32.xlu0 %v1426_v16, %s18717_s16  ;;  %v3482_v16 = vld [vmem:[%s16028_s24 + $0x10] sm:$0x77] }
  0x3f   : > { %1437 = vrot.lane.b32.xlu1 %v1420_v19, %s18717_s16  ;;  %1435 = vrot.lane.b32.xlu0 %v1427_v18, %s18717_s16 }
  0x43   : > { %1439 = vrot.lane.b32.xlu1 %v1428_v20, %s18717_s16  ;;  %1429 = vrot.lane.b32.xlu0 %v1418_v15, %s18717_s16  ;;  %v3489_v15 = vcombine.high %v3481_v7, %v3481_v7 }
  0x47   : > { %1772 = vrot.lane.b32.xlu1 %v1767_v22, %s18715_s20  ;;  %1441 = vrot.lane.b32.xlu0 %v1421_v23, %s18717_s16 }
  0x4b   : > { %1776 = vrot.lane.b32.xlu1 %v1768_v25, %s18715_s20  ;;  %1774 = vrot.lane.b32.xlu0 %v1760_v24, %s18715_s20  ;;  %v3483_v24 = vld [vmem:[%s16028_s24 + $0x18] sm:$0x77] }
  0x4f   : > { %1770 = vrot.lane.b32.xlu1 %v1759_v21, %s18715_s20  ;;  %1778 = vrot.lane.b32.xlu0 %v1761_v26, %s18715_s20  ;;  %v3490_v21 = vcombine.high %v3482_v16, %v3482_v16 }
  0x53   : > { %1782 = vrot.lane.b32.xlu1 %v1762_v28, %s18715_s20  ;;  %1780 = vrot.lane.b32.xlu0 %v1769_v27, %s18715_s20  ;;  %s15868_s20 = smov 92   ;;  %v3491_v27 = vcombine.high %v3483_v24, %v3483_v24 }
  0x57   : > { %2116 = vrot.lane.b32.xlu1 %v2101_v31, %s18713_s21  ;;  %2114 = vrot.lane.b32.xlu0 %v2108_v30, %s18713_s21  ;;  %v438_v30 = vld [vmem:[%s18732_s1] sm:$0x3f] }
  0x58   : > { %v3825_v31 = vld [vmem:[%s16028_s24] sm:$0x77] }
  0x5b   : > { %2120 = vrot.lane.b32.xlu1 %v2102_v33, %s18713_s21  ;;  %2118 = vrot.lane.b32.xlu0 %v2109_v32, %s18713_s21  ;;  %v3826_v32 = vld [vmem:[%s16028_s24 + $0x8] sm:$0x77] }
  0x5f   : > { %2122 = vrot.lane.b32.xlu1 %v2110_v34, %s18713_s21  ;;  %2112 = vrot.lane.b32.xlu0 %v2100_v29, %s18713_s21 }
  0x63   : > { %2126 = vrot.lane.b32.xlu1 %v2111_v36, %s18713_s21  ;;  %2124 = vrot.lane.b32.xlu0 %v2103_v35, %s18713_s21  ;;  %v3827_v35 = vld [vmem:[%s16028_s24 + $0x10] sm:$0x77]  ;;  %s15871_s21 = smov 63  }
  0x67   : > { %2461 = vrot.lane.b32.xlu1 %v2446_v39, %s15865_s22  ;;  %2459 = vrot.lane.b32.xlu0 %v2453_v38, %s15865_s22 }
  0x6b   : > { %2465 = vrot.lane.b32.xlu1 %v2447_v41, %s15865_s22  ;;  %2463 = vrot.lane.b32.xlu0 %v2454_v40, %s15865_s22  ;;  %v3835_v41 = vcombine.high %v3827_v35, %v3827_v35 }
  0x6f   : > { %2467 = vrot.lane.b32.xlu1 %v2455_v42, %s15865_s22  ;;  %2457 = vrot.lane.b32.xlu0 %v2445_v37, %s15865_s22  ;;  %v13820_v37 = vld [vmem:[%s18732_s1 + $0x10] sm:$0x3f]  ;;  %v3828_v42 = vld [vmem:[%s16028_s24 + $0x18] sm:$0x77] }
  0x73   : > { %2471 = vrot.lane.b32.xlu1 %v2456_v44, %s15865_s22  ;;  %2469 = vrot.lane.b32.xlu0 %v2448_v43, %s15865_s22  ;;  %s15867_s22 = smov 93  }
  0x77   : > { %2806 = vrot.lane.b32.xlu1 %v2791_v47, %s15866_s23  ;;  %2804 = vrot.lane.b32.xlu0 %v2798_v46, %s15866_s23 }
  0x7b   : > { %2810 = vrot.lane.b32.xlu1 %v2792_v49, %s15866_s23  ;;  %2808 = vrot.lane.b32.xlu0 %v2799_v48, %s15866_s23  ;;  %v3836_v49 = vcombine.high %v3828_v42, %v3828_v42 }
  0x7f   : > { %2812 = vrot.lane.b32.xlu1 %v2800_v50, %s15866_s23  ;;  %2802 = vrot.lane.b32.xlu0 %v2790_v45, %s15866_s23 }
  0x83   : > { %2816 = vrot.lane.b32.xlu1 %v2801_v52, %s15866_s23  ;;  %2814 = vrot.lane.b32.xlu0 %v2793_v51, %s15866_s23  ;;  %v4170_v52 = vld [vmem:[%s16028_s24] sm:$0x77]  ;;  %s15872_s23 = smov 62  }
  0x87   : > { %3151 = vrot.lane.b32.xlu1 %v3136_v55, %s15867_s22  ;;  %3149 = vrot.lane.b32.xlu0 %v3143_v54, %s15867_s22  ;;  %v13832_v54 = vld [vmem:[%s18732_s1 + $0x18] sm:$0x3f]  ;;  %v4171_v55 = vld [vmem:[%s16028_s24 + $0x8] sm:$0x77] }
  0x8b   : > { %3155 = vrot.lane.b32.xlu1 %v3137_v57, %s15867_s22  ;;  %3153 = vrot.lane.b32.xlu0 %v3144_v56, %s15867_s22  ;;  %v4178_v56 = vcombine.high %v4170_v52, %v4170_v52 }
  0x8f   : > { %3157 = vrot.lane.b32.xlu1 %v3145_v58, %s15867_s22  ;;  %3147 = vrot.lane.b32.xlu0 %v3135_v53, %s15867_s22 }
  0x91   : > { %v461_v61 = vpop.permute.xlu1 %460  ;;  %v457_v62 = vpop.permute.xlu0 %456 }
  0x93   : > { %3161 = vrot.lane.b32.xlu1 %v3146_v60, %s15867_s22  ;;  %3159 = vrot.lane.b32.xlu0 %v3138_v59, %s15867_s22  ;;  %v4179_v60 = vcombine.high %v4171_v55, %v4171_v55  ;;  %s15873_s22 = smov 61  }
  0x95   : > { %v459_v10 = vpop.permute.xlu1 %458  ;;  %v453_v11 = vpop.permute.xlu0 %452 }
  0x96   : > { %v470_v12 = vsel %vm466_vm0, %v459_v10, %v461_v61  ;;  %v469_v13 = vsel %vm466_vm0, %v457_v62, %v459_v10 }
  0x97   : > { %3496 = vrot.lane.b32.xlu1 %v3481_v7, %s15868_s20  ;;  %13801 = vmatprep.subr.msk.mxu1 %vm477_vm1, %v470_v12 }
  0x98   : > { %3494 = vrot.lane.b32.xlu0 %v3488_v8, %s15868_s20  ;;  %13802 = vmatpush1.msk.msra.mxu1 %vm477_vm1, %v469_v13 }
  0x99   : > { %v463_v17 = vpop.permute.xlu1 %462  ;;  %v455_v18 = vpop.permute.xlu0 %454  ;;  %13803 = vmatmul.mubr.msk.f32.vlgmr.msra.gmra.mrb[0].mxu1 %vm473_vm2, %v13797_v14  ;;  %14525 = vmatprep.subr.mxu1 %v15859_v0 }
  0x9a   : > { %v468_v19 = vsel %vm466_vm0, %v455_v18, %v457_v62  ;;  %v467_v20 = vsel %vm466_vm0, %v453_v11, %v455_v18  ;;  %14527 = vmatprep.mubr.msk.f32.mxu1 %vm15869_vm3, %v15859_v0  ;;  %v471_v26 = vsel %vm466_vm0, %v461_v61, %v463_v17  ;;  %v4172_v61 = vld [vmem:[%s16028_s24 + $0x10] sm:$0x77]  ;;  %v4173_v11 = vld [vmem:[%s16028_s24 + $0x18] sm:$0x77] }
  0x9b   : > { %3500 = vrot.lane.b32.xlu1 %v3482_v16, %s15868_s20  ;;  %13798 = vmatprep.subr.msk.mxu0 %vm477_vm1, %v468_v19  ;;  %v4180_v10 = vcombine.high %v4172_v61, %v4172_v61  ;;  %v4181_v16 = vcombine.high %v4173_v11, %v4173_v11 }
  0x9c   : > { %3498 = vrot.lane.b32.xlu0 %v3489_v15, %s15868_s20  ;;  %13799 = vmatpush1.msk.msra.mxu0 %vm477_vm1, %v467_v20 }
  0x9d   : > { %v1091_v22 = vpop.permute.xlu1 %1090  ;;  %13800 = vmatmul.mubr.msk.f32.vlgmr.msra.gmra.mrb[0].mxu0 %vm473_vm2, %v13797_v14  ;;  %v465_v23 = vpop.permute.xlu0 %464 }
  0x9e   : > { %14526 = vmatpush3.msk.msra.mxu1 %vm477_vm1, %v465_v23  ;;  %v472_v25 = vsel %vm466_vm0, %v463_v17, %v465_v23  ;;  %698 = vmatprep.mubr.f32.mxu0 %v15859_v0  ;;  %v13844_v17 = vld [vmem:[%s18732_s1 + $0x20] sm:$0x3f] }
  0x9f   : > { %3502 = vrot.lane.b32.xlu1 %v3490_v21, %s15868_s20  ;;  %13804 = vmatprep.subr.msk.mxu0 %vm477_vm1, %v472_v25  ;;  %v4515_v21 = vld [vmem:[%s16028_s24] sm:$0x77] }
  0xa0   : > { %3492 = vrot.lane.b32.xlu0 %v3480_v63, %s15868_s20  ;;  %14528 = vmatmul.mubr.msk.f32.vlgmr.msra.gmra.mrb[2].mxu1 %vm473_vm2, %v13797_v14  ;;  %v4523_v25 = vcombine.high %v4515_v21, %v4515_v21 }
  0xa1   : > { %13805 = vmatpush1.msk.msra.mxu0 %vm477_vm1, %v471_v26  ;;  %v1095_v28 = vpop.permute.xlu1 %1094  ;;  %13812 = vmatprep.subr.msk.mxu1 %vm477_vm1, %v16042_v3  ;;  %v1093_v29 = vpop.permute.xlu0 %1092 }
  0xa2   : > { %13806 = vmatmul.mubr.msk.f32.vlgmr.msra.gmra.mrb[2].mxu0 %vm473_vm2, %v13797_v14  ;;  %13809 = vmatprep.subr.msk.mxu0 %vm477_vm1, %v16057_v6 }
  0xa3   : > { %13813 = vmatpush1.msk.msra.mxu1 %vm477_vm1, %v16034_v2  ;;  %927 = vmatprep.mubr.f32.mxu1 %v15859_v0  ;;  %v3833_v2 = vcombine.high %v3825_v31, %v3825_v31 }
  0xa4   : > { %3506 = vrot.lane.b32.xlu1 %v3491_v27, %s15868_s20  ;;  %3504 = vrot.lane.b32.xlu0 %v3483_v24, %s15868_s20  ;;  %s15870_s20 = smov 64   ;;  %v4516_v24 = vld [vmem:[%s16028_s24 + $0x8] sm:$0x77] }
  0xa5   : > { %13810 = vmatpush1.msk.msra.mxu0 %vm477_vm1, %v16045_v4  ;;  %13814 = vmatmul.mubr.msk.f32.vlgmr.msra.gmra.mrb[0].mxu1 %vm473_vm2, %v438_v30  ;;  %v1089_v3 = vpop.permute.xlu1 %1088  ;;  %v1097_v6 = vpop.permute.xlu0 %1096  ;;  %v1104_v4 = vsel %vm1102_vm4, %v1091_v22, %v1093_v29 }
  0xa6   : > { %856 = vmatprep.mubr.f32.mxu0 %v15859_v0  ;;  %13815 = vmatprep.subr.msk.mxu0 %vm477_vm1, %v16053_v5  ;;  %v1106_v33 = vsel %vm1102_vm4, %v1095_v28, %v1097_v6  ;;  %v1103_v36 = vsel %vm1102_vm4, %v1089_v3, %v1091_v22 }
  0xa7   : > { %13811 = vmatmul.mubr.msk.f32.vlgmr.msra.gmra.mrb[0].mxu0 %vm473_vm2, %v438_v30  ;;  %14530 = vmatprep.subr.mxu1 %v15859_v0 }
  0xa8   : > { %13816 = vmatpush1.msk.msra.mxu0 %vm477_vm1, %v16031_v1  ;;  %14531 = vmatpush3.msk.msra.mxu1 %vm477_vm1, %v16065_v9  ;;  %v1105_v1 = vsel %vm1102_vm4, %v1093_v29, %v1095_v28  ;;  %v3834_v9 = vcombine.high %v3826_v32, %v3826_v32  ;;  %v4524_v29 = vcombine.high %v4516_v24, %v4516_v24 }
  0xa9   : > { %14532 = vmatprep.mubr.msk.f32.mxu1 %vm15869_vm3, %v15859_v0  ;;  %13821 = vmatprep.subr.msk.mxu0 %vm477_vm1, %v1104_v4  ;;  %v1101_v5 = vpop.permute.xlu1 %1100  ;;  %v1099_v34 = vpop.permute.xlu0 %1098 }
  0xaa   : > { %3841 = vrot.lane.b32.xlu1 %v3826_v32, %s15870_s20  ;;  %3839 = vrot.lane.b32.xlu0 %v3833_v2, %s15870_s20  ;;  %v1108_v38 = vsel %vm1102_vm4, %v1099_v34, %v1101_v5  ;;  %v1107_v46 = vsel %vm1102_vm4, %v1097_v6, %v1099_v34  ;;  %v13856_v32 = vld [vmem:[%s18732_s1 + $0x28] sm:$0x3f] }
  0xab   : > { %14533 = vmatmul.mubr.msk.f32.vlgmr.msra.gmra.mrb[4].mxu1 %vm473_vm2, %v438_v30  ;;  %13824 = vmatprep.subr.msk.mxu1 %vm477_vm1, %v1106_v33  ;;  %v4518_v33 = vld [vmem:[%s16028_s24 + $0x18] sm:$0x77] }
  0xac   : > { %998 = vmatprep.mubr.f32.mxu0 %v15859_v0  ;;  %13825 = vmatpush1.msk.msra.mxu1 %vm477_vm1, %v1105_v1 }
  0xad   : > { %13817 = vmatmul.mubr.msk.f32.vlgmr.msra.gmra.mrb[2].mxu0 %vm473_vm2, %v438_v30  ;;  %1261 = vmatprep.mubr.f32.mxu1 %v15859_v0  ;;  %v1434_v39 = vpop.permute.xlu1 %1433  ;;  %v1432_v40 = vpop.permute.xlu0 %1431  ;;  %v4517_v30 = vld [vmem:[%s16028_s24 + $0x10] sm:$0x77] }
  0xae   : > { %13822 = vmatpush1.msk.msra.mxu0 %vm477_vm1, %v1103_v36  ;;  %14535 = vmatprep.subr.mxu1 %v15859_v0  ;;  %v1445_v43 = vsel %vm1443_vm5, %v1432_v40, %v1434_v39  ;;  %v4525_v4 = vcombine.high %v4517_v30, %v4517_v30 }
  0xaf   : > { %3845 = vrot.lane.b32.xlu1 %v3827_v35, %s15870_s20  ;;  %3843 = vrot.lane.b32.xlu0 %v3834_v9, %s15870_s20  ;;  %v4526_v9 = vcombine.high %v4518_v33, %v4518_v33 }
  0xb0   : > { %13826 = vmatmul.mubr.msk.f32.vlgmr.msra.gmra.mrb[0].mxu1 %vm473_vm2, %v13820_v37  ;;  %13827 = vmatprep.subr.msk.mxu0 %vm477_vm1, %v1108_v38 }
  0xb1   : > { %14536 = vmatpush3.msk.msra.mxu1 %vm477_vm1, %v1101_v5  ;;  %1190 = vmatprep.mubr.f32.mxu0 %v15859_v0  ;;  %v1438_v44 = vpop.permute.xlu1 %1437  ;;  %v1436_v45 = vpop.permute.xlu0 %1435 }
  0xb2   : > { %13823 = vmatmul.mubr.msk.f32.vlgmr.msra.gmra.mrb[0].mxu0 %vm473_vm2, %v13820_v37  ;;  %14537 = vmatprep.mubr.msk.f32.mxu1 %vm15869_vm3, %v15859_v0  ;;  %v1447_v47 = vsel %vm1443_vm5, %v1436_v45, %v1438_v44  ;;  %v1446_v48 = vsel %vm1443_vm5, %v1434_v39, %v1436_v45 }
  0xb3   : > { %13828 = vmatpush1.msk.msra.mxu0 %vm477_vm1, %v1107_v46  ;;  %3847 = vrot.lane.b32.xlu1 %v3835_v41, %s15870_s20  ;;  %v4861_v41 = vld [vmem:[%s16028_s24 + $0x8] sm:$0x77] }
  0xb4   : > { %3837 = vrot.lane.b32.xlu0 %v3825_v31, %s15870_s20  ;;  %13833 = vmatprep.subr.msk.mxu0 %vm477_vm1, %v1445_v43  ;;  %v4869_v46 = vcombine.high %v4861_v41, %v4861_v41 }
  0xb5   : > { %13836 = vmatprep.subr.msk.mxu1 %vm477_vm1, %v1447_v47  ;;  %14538 = vmatmul.mubr.msk.f32.vlgmr.msra.gmra.mrb[6].mxu1 %vm473_vm2, %v13820_v37  ;;  %v1440_v50 = vpop.permute.xlu1 %1439  ;;  %v1430_v51 = vpop.permute.xlu0 %1429  ;;  %v4862_v47 = vld [vmem:[%s16028_s24 + $0x10] sm:$0x77] }
  0xb6   : > { %13837 = vmatpush1.msk.msra.mxu1 %vm477_vm1, %v1446_v48  ;;  %v1444_v53 = vsel %vm1443_vm5, %v1430_v51, %v1432_v40  ;;  %1332 = vmatprep.mubr.f32.mxu0 %v15859_v0  ;;  %v1448_v62 = vsel %vm1443_vm5, %v1438_v44, %v1440_v50 }
  0xb7   : > { %3851 = vrot.lane.b32.xlu1 %v3836_v49, %s15870_s20  ;;  %13829 = vmatmul.mubr.msk.f32.vlgmr.msra.gmra.mrb[2].mxu0 %vm473_vm2, %v13820_v37  ;;  %v4860_v37 = vld [vmem:[%s16028_s24] sm:$0x77] }
  0xb8   : > { %3849 = vrot.lane.b32.xlu0 %v3828_v42, %s15870_s20  ;;  %13834 = vmatpush1.msk.msra.mxu0 %vm477_vm1, %v1444_v53  ;;  %v4868_v42 = vcombine.high %v4860_v37, %v4860_v37  ;;  %v4870_v53 = vcombine.high %v4862_v47, %v4862_v47  ;;  %s15874_s20 = smov 60  }
  0xb9   : > { %v1773_v57 = vpop.permute.xlu1 %1772  ;;  %1602 = vmatprep.mubr.f32.mxu1 %v15859_v0  ;;  %14540 = vmatprep.subr.mxu1 %v15859_v0  ;;  %v1442_v58 = vpop.permute.xlu0 %1441 }
  0xba   : > { %13838 = vmatmul.mubr.msk.f32.vlgmr.msra.gmra.mrb[0].mxu1 %vm473_vm2, %v13832_v54  ;;  %1531 = vmatprep.mubr.f32.mxu0 %v15859_v0  ;;  %v1449_v59 = vsel %vm1443_vm5, %v1440_v50, %v1442_v58 }
  0xbb   : > { %4186 = vrot.lane.b32.xlu1 %v4171_v55, %s15871_s21  ;;  %14541 = vmatpush3.msk.msra.mxu1 %vm477_vm1, %v1442_v58 }
  0xbc   : > { %4184 = vrot.lane.b32.xlu0 %v4178_v56, %s15871_s21  ;;  %13839 = vmatprep.subr.msk.mxu0 %vm477_vm1, %v1449_v59 }
  0xbd   : > { %13835 = vmatmul.mubr.msk.f32.vlgmr.msra.gmra.mrb[0].mxu0 %vm473_vm2, %v13832_v54  ;;  %v1777_v63 = vpop.permute.xlu1 %1776  ;;  %v1775_v7 = vpop.permute.xlu0 %1774  ;;  %14542 = vmatprep.mubr.msk.f32.mxu1 %vm15869_vm3, %v15859_v0 }
  0xbe   : > { %13840 = vmatpush1.msk.msra.mxu0 %vm477_vm1, %v1448_v62  ;;  %v1786_v8 = vsel %vm1784_vm6, %v1773_v57, %v1775_v7  ;;  %1673 = vmatprep.mubr.f32.mxu0 %v15859_v0  ;;  %v1787_v18 = vsel %vm1784_vm6, %v1775_v7, %v1777_v63 }
  0xbf   : > { %4190 = vrot.lane.b32.xlu1 %v4172_v61, %s15871_s21  ;;  %13845 = vmatprep.subr.msk.mxu0 %vm477_vm1, %v1786_v8  ;;  %v5205_v61 = vld [vmem:[%s16028_s24] sm:$0x77]  ;;  %v5206_v8 = vld [vmem:[%s16028_s24 + $0x8] sm:$0x77] }
  0xc0   : > { %4188 = vrot.lane.b32.xlu0 %v4179_v60, %s15871_s21  ;;  %14543 = vmatmul.mubr.msk.f32.vlgmr.msra.gmra.mrb[8].mxu1 %vm473_vm2, %v13832_v54 }
  0xc1   : > { %v1771_v12 = vpop.permute.xlu1 %1770  ;;  %v1779_v13 = vpop.permute.xlu0 %1778  ;;  %13841 = vmatmul.mubr.msk.f32.vlgmr.msra.gmra.mrb[2].mxu0 %vm473_vm2, %v13832_v54  ;;  %1943 = vmatprep.mubr.f32.mxu1 %v15859_v0  ;;  %v4863_v54 = vld [vmem:[%s16028_s24 + $0x18] sm:$0x77] }
  0xc2   : > { %v1785_v14 = vsel %vm1784_vm6, %v1771_v12, %v1773_v57  ;;  %v1788_v15 = vsel %vm1784_vm6, %v1777_v63, %v1779_v13  ;;  %1872 = vmatprep.mubr.f32.mxu0 %v15859_v0  ;;  %v4871_v58 = vcombine.high %v4863_v54, %v4863_v54 }
  0xc3   : > { %4192 = vrot.lane.b32.xlu1 %v4180_v10, %s15871_s21  ;;  %13846 = vmatpush1.msk.msra.mxu0 %vm477_vm1, %v1785_v14  ;;  %v5213_v10 = vcombine.high %v5205_v61, %v5205_v61  ;;  %v5214_v14 = vcombine.high %v5206_v8, %v5206_v8 }
  0xc4   : > { %4182 = vrot.lane.b32.xlu0 %v4170_v52, %s15871_s21  ;;  %13848 = vmatprep.subr.msk.mxu1 %vm477_vm1, %v1788_v15  ;;  %v13868_v52 = vld [vmem:[%s18732_s1 + $0x30] sm:$0x3f] }
  0xc5   : > { %13849 = vmatpush1.msk.msra.mxu1 %vm477_vm1, %v1787_v18  ;;  %v1783_v19 = vpop.permute.xlu1 %1782  ;;  %v1781_v20 = vpop.permute.xlu0 %1780  ;;  %13847 = vmatmul.mubr.msk.f32.vlgmr.msra.gmra.mrb[0].mxu0 %vm473_vm2, %v13844_v17  ;;  %v5207_v15 = vld [vmem:[%s16028_s24 + $0x10] sm:$0x77] }
  0xc6   : > { %14545 = vmatprep.subr.mxu1 %v15859_v0  ;;  %v1789_v22 = vsel %vm1784_vm6, %v1779_v13, %v1781_v20  ;;  %13850 = vmatmul.mubr.msk.f32.vlgmr.msra.gmra.mrb[0].mxu1 %vm473_vm2, %v13844_v17  ;;  %v1790_v23 = vsel %vm1784_vm6, %v1781_v20, %v1783_v19  ;;  %v13880_v20 = vld [vmem:[%s18732_s1 + $0x38] sm:$0x3f] }
  0xc7   : > { %4196 = vrot.lane.b32.xlu1 %v4181_v16, %s15871_s21  ;;  %14546 = vmatpush3.msk.msra.mxu1 %vm477_vm1, %v1783_v19 }
  0xc8   : > { %4194 = vrot.lane.b32.xlu0 %v4173_v11, %s15871_s21  ;;  %13851 = vmatprep.subr.msk.mxu0 %vm477_vm1, %v1790_v23  ;;  %s15875_s21 = smov 32  }
  0xc9   : > { %13852 = vmatpush1.msk.msra.mxu0 %vm477_vm1, %v1789_v22  ;;  %v2117_v26 = vpop.permute.xlu1 %2116  ;;  %v2115_v27 = vpop.permute.xlu0 %2114  ;;  %14547 = vmatprep.mubr.msk.f32.mxu1 %vm15869_vm3, %v15859_v0  ;;  %v5208_v22 = vld [vmem:[%s16028_s24 + $0x18] sm:$0x77] }
  0xca   : > { %v2130_v28 = vsel %vm2128_vm7, %v2115_v27, %v2117_v26  ;;  %14548 = vmatmul.mubr.msk.f32.vlgmr.msra.gmra.mrb[10].mxu1 %vm473_vm2, %v13844_v17  ;;  %2014 = vmatprep.mubr.f32.mxu0 %v15859_v0 }
  0xcb   : > { %4531 = vrot.lane.b32.xlu1 %v4516_v24, %s15872_s23  ;;  %13857 = vmatprep.subr.msk.mxu0 %vm477_vm1, %v2130_v28 }
  0xcc   : > { %4529 = vrot.lane.b32.xlu0 %v4523_v25, %s15872_s23  ;;  %13853 = vmatmul.mubr.msk.f32.vlgmr.msra.gmra.mrb[2].mxu0 %vm473_vm2, %v13844_v17 }
  0xcd   : > { %v2121_v31 = vpop.permute.xlu1 %2120  ;;  %v2119_v3 = vpop.permute.xlu0 %2118  ;;  %2288 = vmatprep.mubr.f32.mxu1 %v15859_v0  ;;  %2217 = vmatprep.mubr.f32.mxu0 %v15859_v0 }
  0xce   : > { %v2131_v6 = vsel %vm2128_vm7, %v2117_v26, %v2119_v3  ;;  %v2132_v2 = vsel %vm2128_vm7, %v2119_v3, %v2121_v31  ;;  %v5216_v26 = vcombine.high %v5208_v22, %v5208_v22 }
  0xcf   : > { %4535 = vrot.lane.b32.xlu1 %v4517_v30, %s15872_s23  ;;  %13860 = vmatprep.subr.msk.mxu1 %vm477_vm1, %v2132_v2 }
  0xd0   : > { %4533 = vrot.lane.b32.xlu0 %v4524_v29, %s15872_s23  ;;  %13861 = vmatpush1.msk.msra.mxu1 %vm477_vm1, %v2131_v6  ;;  %v5550_v29 = vld [vmem:[%s16028_s24] sm:$0x77]  ;;  %v5551_v6 = vld [vmem:[%s16028_s24 + $0x8] sm:$0x77] }
  0xd1   : > { %v2123_v5 = vpop.permute.xlu1 %2122  ;;  %v2113_v34 = vpop.permute.xlu0 %2112  ;;  %14550 = vmatprep.subr.mxu1 %v15859_v0  ;;  %13862 = vmatmul.mubr.msk.f32.vlgmr.msra.gmra.mrb[0].mxu1 %vm473_vm2, %v13856_v32  ;;  %v5558_v2 = vcombine.high %v5550_v29, %v5550_v29 }
  0xd2   : > { %v2129_v1 = vsel %vm2128_vm7, %v2113_v34, %v2115_v27  ;;  %14552 = vmatprep.mubr.msk.f32.mxu1 %vm15869_vm3, %v15859_v0  ;;  %v2133_v40 = vsel %vm2128_vm7, %v2121_v31, %v2123_v5  ;;  %v5552_v34 = vld [vmem:[%s16028_s24 + $0x10] sm:$0x77] }
  0xd3   : > { %4537 = vrot.lane.b32.xlu1 %v4525_v4, %s15872_s23  ;;  %13858 = vmatpush1.msk.msra.mxu0 %vm477_vm1, %v2129_v1 }
  0xd4   : > { %4527 = vrot.lane.b32.xlu0 %v4515_v21, %s15872_s23  ;;  %13859 = vmatmul.mubr.msk.f32.vlgmr.msra.gmra.mrb[0].mxu0 %vm473_vm2, %v13856_v32  ;;  %v5215_v21 = vcombine.high %v5207_v15, %v5207_v15 }
  0xd5   : > { %v2127_v35 = vpop.permute.xlu1 %2126  ;;  %v2125_v36 = vpop.permute.xlu0 %2124  ;;  %2359 = vmatprep.mubr.f32.mxu0 %v15859_v0 }
  0xd6   : > { %v2135_v38 = vsel %vm2128_vm7, %v2125_v36, %v2127_v35  ;;  %v2134_v39 = vsel %vm2128_vm7, %v2123_v5, %v2125_v36  ;;  %v5559_v5 = vcombine.high %v5551_v6, %v5551_v6 }
  0xd7   : > { %4541 = vrot.lane.b32.xlu1 %v4526_v9, %s15872_s23  ;;  %13863 = vmatprep.subr.msk.mxu0 %vm477_vm1, %v2134_v39  ;;  %v5553_v39 = vld [vmem:[%s16028_s24 + $0x18] sm:$0x77] }
  0xd8   : > { %4539 = vrot.lane.b32.xlu0 %v4518_v33, %s15872_s23  ;;  %14551 = vmatpush3.msk.msra.mxu1 %vm477_vm1, %v2135_v38  ;;  %v5560_v38 = vcombine.high %v5552_v34, %v5552_v34  ;;  %s15876_s23 = smov 31  }
  0xd9   : > { %13864 = vmatpush1.msk.msra.mxu0 %vm477_vm1, %v2133_v40  ;;  %v2462_v43 = vpop.permute.xlu1 %2461  ;;  %v2460_v44 = vpop.permute.xlu0 %2459  ;;  %14553 = vmatmul.mubr.msk.f32.vlgmr.msra.gmra.mrb[12].mxu1 %vm473_vm2, %v13856_v32 }
  0xda   : > { %v2475_v45 = vsel %vm2473_vm8, %v2460_v44, %v2462_v43  ;;  %13865 = vmatmul.mubr.msk.f32.vlgmr.msra.gmra.mrb[2].mxu0 %vm473_vm2, %v13856_v32  ;;  %2633 = vmatprep.mubr.f32.mxu1 %v15859_v0 }
  0xdb   : > { %4876 = vrot.lane.b32.xlu1 %v4861_v41, %s15873_s22  ;;  %13869 = vmatprep.subr.msk.mxu0 %vm477_vm1, %v2475_v45 }
  0xdc   : > { %4874 = vrot.lane.b32.xlu0 %v4868_v42, %s15873_s22  ;;  %2562 = vmatprep.mubr.f32.mxu0 %v15859_v0 }
  0xdd   : > { %v2466_v48 = vpop.permute.xlu1 %2465  ;;  %v2464_v49 = vpop.permute.xlu0 %2463 }
  0xde   : > { %v2476_v50 = vsel %vm2473_vm8, %v2462_v43, %v2464_v49  ;;  %v2477_v51 = vsel %vm2473_vm8, %v2464_v49, %v2466_v48  ;;  %v5561_v43 = vcombine.high %v5553_v39, %v5553_v39 }
  0xdf   : > { %4880 = vrot.lane.b32.xlu1 %v4862_v47, %s15873_s22  ;;  %13872 = vmatprep.subr.msk.mxu1 %vm477_vm1, %v2477_v51 }
  0xe0   : > { %4878 = vrot.lane.b32.xlu0 %v4869_v46, %s15873_s22  ;;  %13873 = vmatpush1.msk.msra.mxu1 %vm477_vm1, %v2476_v50  ;;  %v5895_v46 = vld [vmem:[%s16028_s24] sm:$0x77]  ;;  %v5896_v50 = vld [vmem:[%s16028_s24 + $0x8] sm:$0x77] }
  0xe1   : > { %v2468_v55 = vpop.permute.xlu1 %2467  ;;  %v2458_v56 = vpop.permute.xlu0 %2457  ;;  %14555 = vmatprep.subr.mxu1 %v15859_v0  ;;  %13874 = vmatmul.mubr.msk.f32.vlgmr.msra.gmra.mrb[0].mxu1 %vm473_vm2, %v13868_v52  ;;  %v5903_v51 = vcombine.high %v5895_v46, %v5895_v46 }
  0xe2   : > { %v2474_v57 = vsel %vm2473_vm8, %v2458_v56, %v2460_v44  ;;  %14557 = vmatprep.mubr.msk.f32.mxu1 %vm15869_vm3, %v15859_v0  ;;  %v2478_v7 = vsel %vm2473_vm8, %v2466_v48, %v2468_v55  ;;  %v5897_v56 = vld [vmem:[%s16028_s24 + $0x10] sm:$0x77] }
  0xe3   : > { %4882 = vrot.lane.b32.xlu1 %v4870_v53, %s15873_s22  ;;  %13870 = vmatpush1.msk.msra.mxu0 %vm477_vm1, %v2474_v57 }
  0xe4   : > { %4872 = vrot.lane.b32.xlu0 %v4860_v37, %s15873_s22  ;;  %13871 = vmatmul.mubr.msk.f32.vlgmr.msra.gmra.mrb[0].mxu0 %vm473_vm2, %v13868_v52  ;;  %v13892_v37 = vld [vmem:[%s18732_s1 + $0x40] sm:$0x3f] }
  0xe5   : > { %v2472_v59 = vpop.permute.xlu1 %2471  ;;  %v2470_v60 = vpop.permute.xlu0 %2469  ;;  %2704 = vmatprep.mubr.f32.mxu0 %v15859_v0 }
  0xe6   : > { %v2480_v62 = vsel %vm2473_vm8, %v2470_v60, %v2472_v59  ;;  %v2479_v63 = vsel %vm2473_vm8, %v2468_v55, %v2470_v60  ;;  %v5904_v55 = vcombine.high %v5896_v50, %v5896_v50  ;;  %v5905_v59 = vcombine.high %v5897_v56, %v5897_v56 }
  0xe7   : > { %4886 = vrot.lane.b32.xlu1 %v4871_v58, %s15873_s22  ;;  %13875 = vmatprep.subr.msk.mxu0 %vm477_vm1, %v2479_v63  ;;  %v5898_v63 = vld [vmem:[%s16028_s24 + $0x18] sm:$0x77]  ;;  %vm5233_vm8 = vcmask 490496  }
  0xe8   : > { %4884 = vrot.lane.b32.xlu0 %v4863_v54, %s15873_s22  ;;  %14556 = vmatpush3.msk.msra.mxu1 %vm477_vm1, %v2480_v62  ;;  %v13904_v62 = vld [vmem:[%s18732_s1 + $0x48] sm:$0x3f]  ;;  %s15877_s22 = smov 30  }
  0xe9   : > { %13876 = vmatpush1.msk.msra.mxu0 %vm477_vm1, %v2478_v7  ;;  %v2807_v11 = vpop.permute.xlu1 %2806  ;;  %v2805_v12 = vpop.permute.xlu0 %2804  ;;  %14558 = vmatmul.mubr.msk.f32.vlgmr.msra.gmra.mrb[14].mxu1 %vm473_vm2, %v13868_v52 }
  0xea   : > { %v2820_v13 = vsel %vm2818_vm9, %v2805_v12, %v2807_v11  ;;  %13877 = vmatmul.mubr.msk.f32.vlgmr.msra.gmra.mrb[2].mxu0 %vm473_vm2, %v13868_v52  ;;  %2978 = vmatprep.mubr.f32.mxu1 %v15859_v0 }
  0xeb   : > { %5221 = vrot.lane.b32.xlu1 %v5206_v8, %s15874_s20  ;;  %13881 = vmatprep.subr.msk.mxu0 %vm477_vm1, %v2820_v13 }
  0xec   : > { %5219 = vrot.lane.b32.xlu0 %v5213_v10, %s15874_s20  ;;  %2907 = vmatprep.mubr.f32.mxu0 %v15859_v0 }
  0xed   : > { %v2811_v16 = vpop.permute.xlu1 %2810  ;;  %v2809_v17 = vpop.permute.xlu0 %2808 }
  0xee   : > { %v2821_v18 = vsel %vm2818_vm9, %v2807_v11, %v2809_v17  ;;  %v2822_v19 = vsel %vm2818_vm9, %v2809_v17, %v2811_v16  ;;  %v5906_v11 = vcombine.high %v5898_v63, %v5898_v63 }
  0xef   : > { %5225 = vrot.lane.b32.xlu1 %v5207_v15, %s15874_s20  ;;  %13884 = vmatprep.subr.msk.mxu1 %vm477_vm1, %v2822_v19 }
  0xf0   : > { %5223 = vrot.lane.b32.xlu0 %v5214_v14, %s15874_s20  ;;  %13885 = vmatpush1.msk.msra.mxu1 %vm477_vm1, %v2821_v18  ;;  %v6241_v18 = vld [vmem:[%s16028_s24 + $0x8] sm:$0x77] }
  0xf1   : > { %v2813_v23 = vpop.permute.xlu1 %2812  ;;  %v2803_v24 = vpop.permute.xlu0 %2802  ;;  %14560 = vmatprep.subr.mxu1 %v15859_v0  ;;  %13886 = vmatmul.mubr.msk.f32.vlgmr.msra.gmra.mrb[0].mxu1 %vm473_vm2, %v13880_v20 }
  0xf2   : > { %v2819_v25 = vsel %vm2818_vm9, %v2803_v24, %v2805_v12  ;;  %14562 = vmatprep.mubr.msk.f32.mxu1 %vm15869_vm3, %v15859_v0  ;;  %v2823_v3 = vsel %vm2818_vm9, %v2811_v16, %v2813_v23  ;;  %v6240_v12 = vld [vmem:[%s16028_s24] sm:$0x77] }
  0xf3   : > { %5227 = vrot.lane.b32.xlu1 %v5215_v21, %s15874_s20  ;;  %13882 = vmatpush1.msk.msra.mxu0 %vm477_vm1, %v2819_v25  ;;  %v6248_v19 = vcombine.high %v6240_v12, %v6240_v12 }
  0xf4   : > { %5217 = vrot.lane.b32.xlu0 %v5205_v61, %s15874_s20  ;;  %13883 = vmatmul.mubr.msk.f32.vlgmr.msra.gmra.mrb[0].mxu0 %vm473_vm2, %v13880_v20 }
  0xf5   : > { %v2817_v27 = vpop.permute.xlu1 %2816  ;;  %v2815_v28 = vpop.permute.xlu0 %2814  ;;  %3049 = vmatprep.mubr.f32.mxu0 %v15859_v0 }
  0xf6   : > { %v2825_v30 = vsel %vm2818_vm9, %v2815_v28, %v2817_v27  ;;  %v2824_v31 = vsel %vm2818_vm9, %v2813_v23, %v2815_v28  ;;  %v6242_v23 = vld [vmem:[%s16028_s24 + $0x10] sm:$0x77]  ;;  %vm5578_vm9 = vcmask 261120  }
  0xf7   : > { %5231 = vrot.lane.b32.xlu1 %v5216_v26, %s15874_s20  ;;  %13887 = vmatprep.subr.msk.mxu0 %vm477_vm1, %v2824_v31  ;;  %v6250_v25 = vcombine.high %v6242_v23, %v6242_v23  ;;  %v6243_v26 = vld [vmem:[%s16028_s24 + $0x18] sm:$0x77]  ;;  %v13916_v31 = vld [vmem:[%s18732_s1 + $0x50] sm:$0x3f] }
  0xf8   : > { %5229 = vrot.lane.b32.xlu0 %v5208_v22, %s15874_s20  ;;  %14561 = vmatpush3.msk.msra.mxu1 %vm477_vm1, %v2825_v30  ;;  %s15878_s20 = smov 29  }
  0xf9   : > { %13888 = vmatpush1.msk.msra.mxu0 %vm477_vm1, %v2823_v3  ;;  %v3152_v32 = vpop.permute.xlu1 %3151  ;;  %v3150_v4 = vpop.permute.xlu0 %3149  ;;  %14563 = vmatmul.mubr.msk.f32.vlgmr.msra.gmra.mrb[16].mxu1 %vm473_vm2, %v13880_v20  ;;  %v6251_v3 = vcombine.high %v6243_v26, %v6243_v26 }
  0xfa   : > { %v3165_v33 = vsel %vm3163_vm10, %v3150_v4, %v3152_v32  ;;  %13889 = vmatmul.mubr.msk.f32.vlgmr.msra.gmra.mrb[2].mxu0 %vm473_vm2, %v13880_v20  ;;  %3323 = vmatprep.mubr.f32.mxu1 %v15859_v0  ;;  %v6249_v20 = vcombine.high %v6241_v18, %v6241_v18 }
  0xfb   : > { %5566 = vrot.lane.b32.xlu1 %v5551_v6, %s15875_s21  ;;  %13893 = vmatprep.subr.msk.mxu0 %vm477_vm1, %v3165_v33  ;;  %v6586_v33 = vld [vmem:[%s16028_s24 + $0x8] sm:$0x77] }
  0xfc   : > { %5564 = vrot.lane.b32.xlu0 %v5558_v2, %s15875_s21  ;;  %3252 = vmatprep.mubr.f32.mxu0 %v15859_v0  ;;  %v6585_v2 = vld [vmem:[%s16028_s24] sm:$0x77] }
  0xfd   : > { %v3156_v1 = vpop.permute.xlu1 %3155  ;;  %v3154_v9 = vpop.permute.xlu0 %3153 }
  0xfe   : > { %v3166_v35 = vsel %vm3163_vm10, %v3152_v32, %v3154_v9  ;;  %v3167_v36 = vsel %vm3163_vm10, %v3154_v9, %v3156_v1 }
  0xff   : > { %5570 = vrot.lane.b32.xlu1 %v5552_v34, %s15875_s21  ;;  %13896 = vmatprep.subr.msk.mxu1 %vm477_vm1, %v3167_v36 }
 0x100   : > { %5568 = vrot.lane.b32.xlu0 %v5559_v5, %s15875_s21  ;;  %13897 = vmatpush1.msk.msra.mxu1 %vm477_vm1, %v3166_v35  ;;  %v6593_v5 = vcombine.high %v6585_v2, %v6585_v2 }
 0x101   : > { %v3158_v40 = vpop.permute.xlu1 %3157  ;;  %v3148_v41 = vpop.permute.xlu0 %3147  ;;  %14565 = vmatprep.subr.mxu1 %v15859_v0  ;;  %13898 = vmatmul.mubr.msk.f32.vlgmr.msra.gmra.mrb[0].mxu1 %vm473_vm2, %v13892_v37 }
 0x102   : > { %v3164_v42 = vsel %vm3163_vm10, %v3148_v41, %v3150_v4  ;;  %14567 = vmatprep.mubr.msk.f32.mxu1 %vm15869_vm3, %v15859_v0  ;;  %v3168_v49 = vsel %vm3163_vm10, %v3156_v1, %v3158_v40 }
 0x103   : > { %5572 = vrot.lane.b32.xlu1 %v5560_v38, %s15875_s21  ;;  %13894 = vmatpush1.msk.msra.mxu0 %vm477_vm1, %v3164_v42  ;;  %v6587_v38 = vld [vmem:[%s16028_s24 + $0x10] sm:$0x77] }
 0x104   : > { %5562 = vrot.lane.b32.xlu0 %v5550_v29, %s15875_s21  ;;  %13895 = vmatmul.mubr.msk.f32.vlgmr.msra.gmra.mrb[0].mxu0 %vm473_vm2, %v13892_v37  ;;  %v6595_v41 = vcombine.high %v6587_v38, %v6587_v38 }
 0x105   : > { %v3162_v44 = vpop.permute.xlu1 %3161  ;;  %v3160_v45 = vpop.permute.xlu0 %3159  ;;  %3394 = vmatprep.mubr.f32.mxu0 %v15859_v0 }
 0x106   : > { %v3170_v47 = vsel %vm3163_vm10, %v3160_v45, %v3162_v44  ;;  %v3169_v48 = vsel %vm3163_vm10, %v3158_v40, %v3160_v45  ;;  %vm5923_vm10 = vcmask 252928  }
 0x107   : > { %5576 = vrot.lane.b32.xlu1 %v5561_v43, %s15875_s21  ;;  %13899 = vmatprep.subr.msk.mxu0 %vm477_vm1, %v3169_v48  ;;  %v6588_v43 = vld [vmem:[%s16028_s24 + $0x18] sm:$0x77] }
 0x108   : > { %5574 = vrot.lane.b32.xlu0 %v5553_v39, %s15875_s21  ;;  %14566 = vmatpush3.msk.msra.mxu1 %vm477_vm1, %v3170_v47  ;;  %v6596_v48 = vcombine.high %v6588_v43, %v6588_v43  ;;  %s15879_s21 = smov 28  }
 0x109   : > { %13900 = vmatpush1.msk.msra.mxu0 %vm477_vm1, %v3168_v49  ;;  %v3497_v52 = vpop.permute.xlu1 %3496  ;;  %14568 = vmatmul.mubr.msk.f32.vlgmr.msra.gmra.mrb[18].mxu1 %vm473_vm2, %v13892_v37  ;;  %v13928_v49 = vld [vmem:[%s18732_s1 + $0x58] sm:$0x3f] }
 0x10a   : > { %v3495_v53 = vpop.permute.xlu0 %3494  ;;  %13901 = vmatmul.mubr.msk.f32.vlgmr.msra.gmra.mrb[2].mxu0 %vm473_vm2, %v13892_v37  ;;  %3668 = vmatprep.mubr.f32.mxu1 %v15859_v0  ;;  %v6594_v37 = vcombine.high %v6586_v33, %v6586_v33 }
 0x10b   : > { %5911 = vrot.lane.b32.xlu1 %v5896_v50, %s15876_s23  ;;  %v3510_v54 = vsel %vm3508_vm11, %v3495_v53, %v3497_v52  ;;  %3597 = vmatprep.mubr.f32.mxu0 %v15859_v0 }
 0x10c   : > { %5909 = vrot.lane.b32.xlu0 %v5903_v51, %s15876_s23  ;;  %13905 = vmatprep.subr.msk.mxu0 %vm477_vm1, %v3510_v54  ;;  %v6930_v51 = vld [vmem:[%s16028_s24] sm:$0x77]  ;;  %v6931_v54 = vld [vmem:[%s16028_s24 + $0x8] sm:$0x77] }
 0x10d   : > { %v3501_v57 = vpop.permute.xlu1 %3500 }
 0x10e   : > { %v3499_v58 = vpop.permute.xlu0 %3498 }
 0x10f   : > { %5915 = vrot.lane.b32.xlu1 %v5897_v56, %s15876_s23  ;;  %v3511_v60 = vsel %vm3508_vm11, %v3497_v52, %v3499_v58  ;;  %v3512_v61 = vsel %vm3508_vm11, %v3499_v58, %v3501_v57 }
 0x110   : > { %5913 = vrot.lane.b32.xlu0 %v5904_v55, %s15876_s23  ;;  %13908 = vmatprep.subr.msk.mxu1 %vm477_vm1, %v3512_v61  ;;  %v6938_v55 = vcombine.high %v6930_v51, %v6930_v51  ;;  %v6939_v61 = vcombine.high %v6931_v54, %v6931_v54 }
 0x111   : > { %13909 = vmatpush1.msk.msra.mxu1 %vm477_vm1, %v3511_v60  ;;  %v3503_v7 = vpop.permute.xlu1 %3502 }
 0x112   : > { %v3493_v8 = vpop.permute.xlu0 %3492  ;;  %14570 = vmatprep.subr.mxu1 %v15859_v0  ;;  %13910 = vmatmul.mubr.msk.f32.vlgmr.msra.gmra.mrb[0].mxu1 %vm473_vm2, %v13904_v62  ;;  %v3513_v17 = vsel %vm3508_vm11, %v3501_v57, %v3503_v7 }
 0x113   : > { %5917 = vrot.lane.b32.xlu1 %v5905_v59, %s15876_s23  ;;  %v3509_v10 = vsel %vm3508_vm11, %v3493_v8, %v3495_v53  ;;  %14572 = vmatprep.mubr.msk.f32.mxu1 %vm15869_vm3, %v15859_v0 }
 0x114   : > { %5907 = vrot.lane.b32.xlu0 %v5895_v46, %s15876_s23  ;;  %13906 = vmatpush1.msk.msra.mxu0 %vm477_vm1, %v3509_v10 }
 0x115   : > { %13907 = vmatmul.mubr.msk.f32.vlgmr.msra.gmra.mrb[0].mxu0 %vm473_vm2, %v13904_v62 }
 0x116   : > { %v3507_v13 = vpop.permute.xlu1 %3506  ;;  %v3505_v14 = vpop.permute.xlu0 %3504  ;;  %3739 = vmatprep.mubr.f32.mxu0 %v15859_v0 }
 0x117   : > { %5921 = vrot.lane.b32.xlu1 %v5906_v11, %s15876_s23  ;;  %v3515_v15 = vsel %vm3508_vm11, %v3505_v14, %v3507_v13  ;;  %v3514_v16 = vsel %vm3508_vm11, %v3503_v7, %v3505_v14  ;;  %v6933_v11 = vld [vmem:[%s16028_s24 + $0x18] sm:$0x77]  ;;  %vm6268_vm11 = vcmask 244736  }
 0x118   : > { %5919 = vrot.lane.b32.xlu0 %v5898_v63, %s15876_s23  ;;  %13911 = vmatprep.subr.msk.mxu0 %vm477_vm1, %v3514_v16  ;;  %v6941_v16 = vcombine.high %v6933_v11, %v6933_v11  ;;  %s18733_s23 = smov 124  }
 0x119   : > { %14571 = vmatpush3.msk.msra.mxu1 %vm477_vm1, %v3515_v15  ;;  %13912 = vmatpush1.msk.msra.mxu0 %vm477_vm1, %v3513_v17  ;;  %v13940_v17 = vld [vmem:[%s18732_s1 + $0x60] sm:$0x3f] }
 0x11a   : > { %14573 = vmatmul.mubr.msk.f32.vlgmr.msra.gmra.mrb[20].mxu1 %vm473_vm2, %v13904_v62  ;;  %13913 = vmatmul.mubr.msk.f32.vlgmr.msra.gmra.mrb[2].mxu0 %vm473_vm2, %v13904_v62  ;;  %v6932_v62 = vld [vmem:[%s16028_s24 + $0x10] sm:$0x77] }
 0x11b   : > { %6256 = vrot.lane.b32.xlu1 %v6241_v18, %s15877_s22  ;;  %4013 = vmatprep.mubr.f32.mxu1 %v15859_v0  ;;  %v6940_v8 = vcombine.high %v6932_v62, %v6932_v62 }
 0x11c   : > { %6254 = vrot.lane.b32.xlu0 %v6248_v19, %s15877_s22  ;;  %v3842_v21 = vpop.permute.xlu1 %3841  ;;  %v3840_v22 = vpop.permute.xlu0 %3839  ;;  %3942 = vmatprep.mubr.f32.mxu0 %v15859_v0  ;;  %v7595_v19 = vld [vmem:[%s16028_s24 + $0x4] sm:$0x77] }
 0x11d   : > { %v3855_v24 = vsel %vm3853_vm12, %v3840_v22, %v3842_v21 }
 0x11e   : > { %13917 = vmatprep.subr.msk.mxu0 %vm477_vm1, %v3855_v24 }
 0x11f   : > { %6260 = vrot.lane.b32.xlu1 %v6242_v23, %s15877_s22  ;;  %v7603_v23 = vcombine.high %v7595_v19, %v7595_v19 }
 0x120   : > { %6258 = vrot.lane.b32.xlu0 %v6249_v20, %s15877_s22 }
 0x121   : > { %v3846_v27 = vpop.permute.xlu1 %3845  ;;  %v3844_v28 = vpop.permute.xlu0 %3843 }
 0x122   : > { %v3856_v29 = vsel %vm3853_vm12, %v3842_v21, %v3844_v28  ;;  %v3857_v30 = vsel %vm3853_vm12, %v3844_v28, %v3846_v27 }
 0x123   : > { %6262 = vrot.lane.b32.xlu1 %v6250_v25, %s15877_s22  ;;  %13920 = vmatprep.subr.msk.mxu1 %vm477_vm1, %v3857_v30  ;;  %v7597_v30 = vld [vmem:[%s16028_s24 + $0x14] sm:$0x77] }
 0x124   : > { %6252 = vrot.lane.b32.xlu0 %v6240_v12, %s15877_s22  ;;  %13921 = vmatpush1.msk.msra.mxu1 %vm477_vm1, %v3856_v29 }
 0x125   : > { %v3848_v6 = vpop.permute.xlu1 %3847  ;;  %14575 = vmatprep.subr.mxu1 %v15859_v0  ;;  %13922 = vmatmul.mubr.msk.f32.vlgmr.msra.gmra.mrb[0].mxu1 %vm473_vm2, %v13916_v31 }
 0x126   : > { %v3838_v32 = vpop.permute.xlu0 %3837  ;;  %14577 = vmatprep.mubr.msk.f32.mxu1 %vm15869_vm3, %v15859_v0  ;;  %v3858_v36 = vsel %vm3853_vm12, %v3846_v27, %v3848_v6 }
 0x127   : > { %v3854_v4 = vsel %vm3853_vm12, %v3838_v32, %v3840_v22  ;;  %6266 = vrot.lane.b32.xlu1 %v6251_v3, %s15877_s22  ;;  %v7596_v22 = vld [vmem:[%s16028_s24 + $0xc] sm:$0x77]  ;;  %v7935_v32 = vld [vmem:[%s16028_s24 + $0x4] sm:$0x77] }
 0x128   : > { %6264 = vrot.lane.b32.xlu0 %v6243_v26, %s15877_s22  ;;  %13918 = vmatpush1.msk.msra.mxu0 %vm477_vm1, %v3854_v4  ;;  %v7604_v29 = vcombine.high %v7596_v22, %v7596_v22  ;;  %s18736_s22 = smov 127  }
 0x129   : > { %v3852_v34 = vpop.permute.xlu1 %3851  ;;  %13919 = vmatmul.mubr.msk.f32.vlgmr.msra.gmra.mrb[0].mxu0 %vm473_vm2, %v13916_v31 }
 0x12a   : > { %v3850_v1 = vpop.permute.xlu0 %3849  ;;  %4084 = vmatprep.mubr.f32.mxu0 %v15859_v0 }
 0x12b   : > { %v3860_v9 = vsel %vm3853_vm12, %v3850_v1, %v3852_v34  ;;  %6601 = vrot.lane.b32.xlu1 %v6586_v33, %s15878_s20  ;;  %v3859_v35 = vsel %vm3853_vm12, %v3848_v6, %v3850_v1  ;;  %v7605_v6 = vcombine.high %v7597_v30, %v7597_v30  ;;  %v7943_v1 = vcombine.high %v7935_v32, %v7935_v32 }
 0x12c   : > { %6599 = vrot.lane.b32.xlu0 %v6593_v5, %s15878_s20  ;;  %13923 = vmatprep.subr.msk.mxu0 %vm477_vm1, %v3859_v35  ;;  %v7936_v35 = vld [vmem:[%s16028_s24 + $0xc] sm:$0x77]  ;;  %vm6613_vm12 = vcmask 236544  }
 0x12d   : > { %14576 = vmatpush3.msk.msra.mxu1 %vm477_vm1, %v3860_v9  ;;  %13924 = vmatpush1.msk.msra.mxu0 %vm477_vm1, %v3858_v36  ;;  %v4187_v39 = vpop.permute.xlu1 %4186  ;;  %v13952_v9 = vld [vmem:[%s18732_s1 + $0x68] sm:$0x3f] }
 0x12e   : > { %v4185_v40 = vpop.permute.xlu0 %4184  ;;  %14578 = vmatmul.mubr.msk.f32.vlgmr.msra.gmra.mrb[22].mxu1 %vm473_vm2, %v13916_v31  ;;  %13925 = vmatmul.mubr.msk.f32.vlgmr.msra.gmra.mrb[2].mxu0 %vm473_vm2, %v13916_v31 }
 0x12f   : > { %6605 = vrot.lane.b32.xlu1 %v6587_v38, %s15878_s20  ;;  %v4200_v42 = vsel %vm4198_vm13, %v4185_v40, %v4187_v39  ;;  %4358 = vmatprep.mubr.f32.mxu1 %v15859_v0 }
 0x130   : > { %6603 = vrot.lane.b32.xlu0 %v6594_v37, %s15878_s20  ;;  %13929 = vmatprep.subr.msk.mxu0 %vm477_vm1, %v4200_v42  ;;  %v7598_v37 = vld [vmem:[%s16028_s24 + $0x1c] sm:$0x7] }
 0x131   : > { %v4191_v44 = vpop.permute.xlu1 %4190  ;;  %4287 = vmatprep.mubr.f32.mxu0 %v15859_v0 }
 0x132   : > { %v4189_v45 = vpop.permute.xlu0 %4188 }
 0x133   : > { %v4201_v46 = vsel %vm4198_vm13, %v4187_v39, %v4189_v45  ;;  %6607 = vrot.lane.b32.xlu1 %v6595_v41, %s15878_s20  ;;  %v4202_v47 = vsel %vm4198_vm13, %v4189_v45, %v4191_v44 }
 0x134   : > { %6597 = vrot.lane.b32.xlu0 %v6585_v2, %s15878_s20  ;;  %13932 = vmatprep.subr.msk.mxu1 %vm477_vm1, %v4202_v47  ;;  %v7937_v47 = vld [vmem:[%s16028_s24 + $0x14] sm:$0x77] }
 0x135   : > { %13933 = vmatpush1.msk.msra.mxu1 %vm477_vm1, %v4201_v46  ;;  %v4193_v50 = vpop.permute.xlu1 %4192 }
 0x136   : > { %v4183_v52 = vpop.permute.xlu0 %4182  ;;  %14580 = vmatprep.subr.mxu1 %v15859_v0  ;;  %13934 = vmatmul.mubr.msk.f32.vlgmr.msra.gmra.mrb[0].mxu1 %vm473_vm2, %v13928_v49  ;;  %v4203_v60 = vsel %vm4198_vm13, %v4191_v44, %v4193_v50 }
 0x137   : > { %v4199_v53 = vsel %vm4198_vm13, %v4183_v52, %v4185_v40  ;;  %6611 = vrot.lane.b32.xlu1 %v6596_v48, %s15878_s20  ;;  %14582 = vmatprep.mubr.msk.f32.mxu1 %vm15869_vm3, %v15859_v0  ;;  %v7944_v40 = vcombine.high %v7936_v35, %v7936_v35 }
 0x138   : > { %6609 = vrot.lane.b32.xlu0 %v6588_v43, %s15878_s20  ;;  %13930 = vmatpush1.msk.msra.mxu0 %vm477_vm1, %v4199_v53  ;;  %v8275_v53 = vld [vmem:[%s16028_s24 + $0x4] sm:$0x77]  ;;  %s15890_s20 = smov 97  }
 0x139   : > { %v4197_v56 = vpop.permute.xlu1 %4196  ;;  %13931 = vmatmul.mubr.msk.f32.vlgmr.msra.gmra.mrb[0].mxu0 %vm473_vm2, %v13928_v49 }
 0x13a   : > { %v4195_v57 = vpop.permute.xlu0 %4194  ;;  %4429 = vmatprep.mubr.f32.mxu0 %v15859_v0 }
 0x13b   : > { %v4205_v58 = vsel %vm4198_vm13, %v4195_v57, %v4197_v56  ;;  %6946 = vrot.lane.b32.xlu1 %v6931_v54, %s15879_s21  ;;  %v4204_v59 = vsel %vm4198_vm13, %v4193_v50, %v4195_v57  ;;  %v7945_v50 = vcombine.high %v7937_v47, %v7937_v47  ;;  %v13964_v57 = vld [vmem:[%s18732_s1 + $0x70] sm:$0x3f]  ;;  %vm6958_vm13 = vcmask 228352  }
 0x13c   : > { %6944 = vrot.lane.b32.xlu0 %v6938_v55, %s15879_s21  ;;  %13935 = vmatprep.subr.msk.mxu0 %vm477_vm1, %v4204_v59  ;;  %v8283_v59 = vcombine.high %v8275_v53, %v8275_v53 }
 0x13d   : > { %14581 = vmatpush3.msk.msra.mxu1 %vm477_vm1, %v4205_v58  ;;  %13936 = vmatpush1.msk.msra.mxu0 %vm477_vm1, %v4203_v60  ;;  %v4532_v63 = vpop.permute.xlu1 %4531  ;;  %v8276_v58 = vld [vmem:[%s16028_s24 + $0xc] sm:$0x77] }
 0x13e   : > { %v4530_v7 = vpop.permute.xlu0 %4529  ;;  %14583 = vmatmul.mubr.msk.f32.vlgmr.msra.gmra.mrb[24].mxu1 %vm473_vm2, %v13928_v49  ;;  %13937 = vmatmul.mubr.msk.f32.vlgmr.msra.gmra.mrb[2].mxu0 %vm473_vm2, %v13928_v49 }
 0x13f   : > { %6950 = vrot.lane.b32.xlu1 %v6932_v62, %s15879_s21  ;;  %v4545_v10 = vsel %vm4543_vm14, %v4530_v7, %v4532_v63  ;;  %4703 = vmatprep.mubr.f32.mxu1 %v15859_v0 }
 0x140   : > { %6948 = vrot.lane.b32.xlu0 %v6939_v61, %s15879_s21  ;;  %13941 = vmatprep.subr.msk.mxu0 %vm477_vm1, %v4545_v10 }
 0x141   : > { %v4536_v12 = vpop.permute.xlu1 %4535  ;;  %4632 = vmatprep.mubr.f32.mxu0 %v15859_v0 }
 0x142   : > { %v4534_v13 = vpop.permute.xlu0 %4533 }
 0x143   : > { %v4546_v14 = vsel %vm4543_vm14, %v4532_v63, %v4534_v13  ;;  %6952 = vrot.lane.b32.xlu1 %v6940_v8, %s15879_s21  ;;  %v4547_v15 = vsel %vm4543_vm14, %v4534_v13, %v4536_v12  ;;  %v8284_v63 = vcombine.high %v8276_v58, %v8276_v58 }
 0x144   : > { %6942 = vrot.lane.b32.xlu0 %v6930_v51, %s15879_s21  ;;  %13944 = vmatprep.subr.msk.mxu1 %vm477_vm1, %v4547_v15  ;;  %v7938_v51 = vld [vmem:[%s16028_s24 + $0x1c] sm:$0x7]  ;;  %v8615_v15 = vld [vmem:[%s16028_s24 + $0x4] sm:$0x77] }
 0x145   : > { %13945 = vmatpush1.msk.msra.mxu1 %vm477_vm1, %v4546_v14  ;;  %v4538_v18 = vpop.permute.xlu1 %4537 }
 0x146   : > { %v4528_v20 = vpop.permute.xlu0 %4527  ;;  %13946 = vmatmul.mubr.msk.f32.vlgmr.msra.gmra.mrb[0].mxu1 %vm473_vm2, %v13940_v17  ;;  %14585 = vmatprep.subr.mxu1 %v15859_v0  ;;  %v4548_v28 = vsel %vm4543_vm14, %v4536_v12, %v4538_v18 }
 0x147   : > { %v4544_v21 = vsel %vm4543_vm14, %v4528_v20, %v4530_v7  ;;  %6956 = vrot.lane.b32.xlu1 %v6941_v16, %s15879_s21  ;;  %14587 = vmatprep.mubr.msk.f32.mxu1 %vm15869_vm3, %v15859_v0  ;;  %v8277_v7 = vld [vmem:[%s16028_s24 + $0x14] sm:$0x77]  ;;  %v8616_v20 = vld [vmem:[%s16028_s24 + $0xc] sm:$0x77] }
 0x148   : > { %6954 = vrot.lane.b32.xlu0 %v6933_v11, %s15879_s21  ;;  %13942 = vmatpush1.msk.msra.mxu0 %vm477_vm1, %v4544_v21  ;;  %v8285_v12 = vcombine.high %v8277_v7, %v8277_v7  ;;  %s15888_s21 = smov 99  }
 0x149   : > { %v4542_v24 = vpop.permute.xlu1 %4541  ;;  %13943 = vmatmul.mubr.msk.f32.vlgmr.msra.gmra.mrb[0].mxu0 %vm473_vm2, %v13940_v17 }
 0x14a   : > { %v4540_v25 = vpop.permute.xlu0 %4539  ;;  %4774 = vmatprep.mubr.f32.mxu0 %v15859_v0 }
 0x14b   : > { %v4550_v26 = vsel %vm4543_vm14, %v4540_v25, %v4542_v24  ;;  %7610 = vrot.lane.b32.xlu1 %v7596_v22, %s18721_s30  ;;  %v4549_v27 = vsel %vm4543_vm14, %v4538_v18, %v4540_v25  ;;  %v8278_v22 = vld [vmem:[%s16028_s24 + $0x1c] sm:$0x7] }
 0x14c   : > { %7608 = vrot.lane.b32.xlu0 %v7603_v23, %s18721_s30  ;;  %13947 = vmatprep.subr.msk.mxu0 %vm477_vm1, %v4549_v27  ;;  %v13976_v27 = vld [vmem:[%s18732_s1 + $0x78] sm:$0x3f] }
 0x14d   : > { %14586 = vmatpush3.msk.msra.mxu1 %vm477_vm1, %v4550_v26  ;;  %13948 = vmatpush1.msk.msra.mxu0 %vm477_vm1, %v4548_v28  ;;  %v4877_v31 = vpop.permute.xlu1 %4876  ;;  %v8624_v26 = vcombine.high %v8616_v20, %v8616_v20 }
 0x14e   : > { %14588 = vmatmul.mubr.msk.f32.vlgmr.msra.gmra.mrb[26].mxu1 %vm473_vm2, %v13940_v17  ;;  %v4875_v3 = vpop.permute.xlu0 %4874  ;;  %13949 = vmatmul.mubr.msk.f32.vlgmr.msra.gmra.mrb[2].mxu0 %vm473_vm2, %v13940_v17 }
 0x14f   : > { %7614 = vrot.lane.b32.xlu1 %v7597_v30, %s18721_s30  ;;  %v4890_v2 = vsel %vm4888_vm15, %v4875_v3, %v4877_v31  ;;  %5048 = vmatprep.mubr.f32.mxu1 %v15859_v0 }
 0x150   : > { %7612 = vrot.lane.b32.xlu0 %v7604_v29, %s18721_s30  ;;  %13953 = vmatprep.subr.msk.mxu0 %vm477_vm1, %v4890_v2  ;;  %v8617_v2 = vld [vmem:[%s16028_s24 + $0x14] sm:$0x77] }
 0x151   : > { %v4881_v4 = vpop.permute.xlu1 %4880  ;;  %4977 = vmatprep.mubr.f32.mxu0 %v15859_v0 }
 0x152   : > { %v4879_v33 = vpop.permute.xlu0 %4878 }
 0x153   : > { %v4891_v5 = vsel %vm4888_vm15, %v4877_v31, %v4879_v33  ;;  %7616 = vrot.lane.b32.xlu1 %v7605_v6, %s18721_s30  ;;  %v4892_v34 = vsel %vm4888_vm15, %v4879_v33, %v4881_v4 }
 0x154   : > { %7606 = vrot.lane.b32.xlu0 %v7595_v19, %s18721_s30  ;;  %13956 = vmatprep.subr.msk.mxu1 %vm477_vm1, %v4892_v34  ;;  %v8623_v19 = vcombine.high %v8615_v15, %v8615_v15  ;;  %v8625_v34 = vcombine.high %v8617_v2, %v8617_v2 }
 0x155   : > { %13957 = vmatpush1.msk.msra.mxu1 %vm477_vm1, %v4891_v5  ;;  %v4883_v36 = vpop.permute.xlu1 %4882 }
 0x156   : > { %v4873_v38 = vpop.permute.xlu0 %4872  ;;  %13958 = vmatmul.mubr.msk.f32.vlgmr.msra.gmra.mrb[0].mxu1 %vm473_vm2, %v13952_v9  ;;  %14590 = vmatprep.subr.mxu1 %v15859_v0  ;;  %v4893_v45 = vsel %vm4888_vm15, %v4881_v4, %v4883_v36 }
 0x157   : > { %v4889_v39 = vsel %vm4888_vm15, %v4873_v38, %v4875_v3  ;;  %7948 = vrot.lane.b32.xlu1 %v7943_v1, %s18719_s15  ;;  %14592 = vmatprep.mubr.msk.f32.mxu1 %vm15869_vm3, %v15859_v0  ;;  %v8618_v1 = vld [vmem:[%s16028_s24 + $0x1c] sm:$0x7] }
 0x158   : > { %7618 = vrot.lane.b32.xlu0 %v7598_v37, %s18721_s30  ;;  %13954 = vmatpush1.msk.msra.mxu0 %vm477_vm1, %v4889_v39 }
 0x159   : > { %v4887_v41 = vpop.permute.xlu1 %4886  ;;  %13955 = vmatmul.mubr.msk.f32.vlgmr.msra.gmra.mrb[0].mxu0 %vm473_vm2, %v13952_v9 }
 0x15a   : > { %v4885_v42 = vpop.permute.xlu0 %4884  ;;  %5119 = vmatprep.mubr.f32.mxu0 %v15859_v0 }
 0x15b   : > { %v4895_v43 = vsel %vm4888_vm15, %v4885_v42, %v4887_v41  ;;  %7952 = vrot.lane.b32.xlu1 %v7944_v40, %s18719_s15  ;;  %v4894_v44 = vsel %vm4888_vm15, %v4883_v36, %v4885_v42  ;;  %vm9584_vm15 = vcmask 1045504  }
 0x15c   : > { %7950 = vrot.lane.b32.xlu0 %v7936_v35, %s18719_s15  ;;  %13959 = vmatprep.subr.msk.mxu0 %vm477_vm1, %v4894_v44  ;;  %v13988_v44 = vld [vmem:[%s18732_s1 + $0x80] sm:$0x3f] }
 0x15d   : > { %14591 = vmatpush3.msk.msra.mxu1 %vm477_vm1, %v4895_v43  ;;  %13960 = vmatpush1.msk.msra.mxu0 %vm477_vm1, %v4893_v45  ;;  %v5222_v46 = vpop.permute.xlu1 %5221 }
 0x15e   : > { %14593 = vmatmul.mubr.msk.f32.vlgmr.msra.gmra.mrb[28].mxu1 %vm473_vm2, %v13952_v9  ;;  %v5220_v48 = vpop.permute.xlu0 %5219  ;;  %13961 = vmatmul.mubr.msk.f32.vlgmr.msra.gmra.mrb[2].mxu0 %vm473_vm2, %v13952_v9 }
 0x15f   : > { %7946 = vrot.lane.b32.xlu1 %v7935_v32, %s18719_s15  ;;  %v5235_v49 = vsel %vm5233_vm8, %v5220_v48, %v5222_v46  ;;  %5393 = vmatprep.mubr.f32.mxu1 %v15859_v0 }
 0x160   : > { %7954 = vrot.lane.b32.xlu0 %v7937_v47, %s18719_s15  ;;  %13965 = vmatprep.subr.msk.mxu0 %vm477_vm1, %v5235_v49 }
 0x161   : > { %v5226_v52 = vpop.permute.xlu1 %5225  ;;  %5322 = vmatprep.mubr.f32.mxu0 %v15859_v0 }
 0x162   : > { %v5224_v54 = vpop.permute.xlu0 %5223 }
 0x163   : > { %v5236_v55 = vsel %vm5233_vm8, %v5222_v46, %v5224_v54  ;;  %7958 = vrot.lane.b32.xlu1 %v7938_v51, %s18719_s15  ;;  %v5237_v56 = vsel %vm5233_vm8, %v5224_v54, %v5226_v52 }
 0x164   : > { %7956 = vrot.lane.b32.xlu0 %v7945_v50, %s18719_s15  ;;  %13968 = vmatprep.subr.msk.mxu1 %vm477_vm1, %v5237_v56  ;;  %s18738_s15 = smov 125  }
 0x165   : > { %13969 = vmatpush1.msk.msra.mxu1 %vm477_vm1, %v5236_v55  ;;  %v5228_v60 = vpop.permute.xlu1 %5227 }
 0x166   : > { %v5218_v61 = vpop.permute.xlu0 %5217  ;;  %13970 = vmatmul.mubr.msk.f32.vlgmr.msra.gmra.mrb[0].mxu1 %vm473_vm2, %v13964_v57  ;;  %14595 = vmatprep.subr.mxu1 %v15859_v0  ;;  %v5238_v14 = vsel %vm5233_vm8, %v5226_v52, %v5228_v60 }
 0x167   : > { %v5234_v62 = vsel %vm5233_vm8, %v5218_v61, %v5220_v48  ;;  %8290 = vrot.lane.b32.xlu1 %v8276_v58, %s18717_s16  ;;  %14597 = vmatprep.mubr.msk.f32.mxu1 %vm15869_vm3, %v15859_v0 }
 0x168   : > { %8288 = vrot.lane.b32.xlu0 %v8283_v59, %s18717_s16  ;;  %13966 = vmatpush1.msk.msra.mxu0 %vm477_vm1, %v5234_v62 }
 0x169   : > { %v5232_v8 = vpop.permute.xlu1 %5231  ;;  %13967 = vmatmul.mubr.msk.f32.vlgmr.msra.gmra.mrb[0].mxu0 %vm473_vm2, %v13964_v57 }
 0x16a   : > { %v5230_v10 = vpop.permute.xlu0 %5229  ;;  %5464 = vmatprep.mubr.f32.mxu0 %v15859_v0 }
 0x16b   : > { %v5240_v11 = vsel %vm5233_vm8, %v5230_v10, %v5232_v8  ;;  %8294 = vrot.lane.b32.xlu1 %v8277_v7, %s18717_s16  ;;  %v5239_v13 = vsel %vm5233_vm8, %v5228_v60, %v5230_v10  ;;  %vm9577_vm8 = vcmask 48128  }
 0x16c   : > { %8292 = vrot.lane.b32.xlu0 %v8284_v63, %s18717_s16  ;;  %13971 = vmatprep.subr.msk.mxu0 %vm477_vm1, %v5239_v13  ;;  %v14000_v63 = vld [vmem:[%s18732_s1 + $0x88] sm:$0x3f] }
 0x16d   : > { %14596 = vmatpush3.msk.msra.mxu1 %vm477_vm1, %v5240_v11  ;;  %13972 = vmatpush1.msk.msra.mxu0 %vm477_vm1, %v5238_v14  ;;  %v5567_v16 = vpop.permute.xlu1 %5566 }
 0x16e   : > { %14598 = vmatmul.mubr.msk.f32.vlgmr.msra.gmra.mrb[30].mxu1 %vm473_vm2, %v13964_v57  ;;  %v5565_v17 = vpop.permute.xlu0 %5564  ;;  %13973 = vmatmul.mubr.msk.f32.vlgmr.msra.gmra.mrb[2].mxu0 %vm473_vm2, %v13964_v57 }
 0x16f   : > { %8296 = vrot.lane.b32.xlu1 %v8285_v12, %s18717_s16  ;;  %v5580_v18 = vsel %vm5578_vm9, %v5565_v17, %v5567_v16  ;;  %5738 = vmatprep.mubr.f32.mxu1 %v15859_v0 }
 0x170   : > { %8286 = vrot.lane.b32.xlu0 %v8275_v53, %s18717_s16  ;;  %13977 = vmatprep.subr.msk.mxu0 %vm477_vm1, %v5580_v18 }
 0x171   : > { %v5571_v21 = vpop.permute.xlu1 %5570  ;;  %5667 = vmatprep.mubr.f32.mxu0 %v15859_v0 }
 0x172   : > { %v5569_v23 = vpop.permute.xlu0 %5568 }
 0x173   : > { %v5581_v24 = vsel %vm5578_vm9, %v5567_v16, %v5569_v23  ;;  %8628 = vrot.lane.b32.xlu1 %v8623_v19, %s18733_s23  ;;  %v5582_v25 = vsel %vm5578_vm9, %v5569_v23, %v5571_v21  ;;  %v771_v30 = vpop.f32.mrb[2].mxu1 }
 0x174   : > { %8298 = vrot.lane.b32.xlu0 %v8278_v22, %s18717_s16  ;;  %13980 = vmatprep.subr.msk.mxu1 %vm477_vm1, %v5582_v25  ;;  %v14529_v3 = vpop.f32.mrb[3].mxu1  ;;  %s15882_s16 = smov 114  }
 0x175   : > { %13981 = vmatpush1.msk.msra.mxu1 %vm477_vm1, %v5581_v24  ;;  %v5573_v28 = vpop.permute.xlu1 %5572 }
 0x176   : > { %v5563_v29 = vpop.permute.xlu0 %5562  ;;  %13982 = vmatmul.mubr.msk.f32.vlgmr.msra.gmra.mrb[0].mxu1 %vm473_vm2, %v13976_v27  ;;  %14600 = vmatprep.subr.mxu1 %v15859_v0  ;;  %v5583_v5 = vsel %vm5578_vm9, %v5571_v21, %v5573_v28 }
 0x177   : > { %v5579_v31 = vsel %vm5578_vm9, %v5563_v29, %v5565_v17  ;;  %8632 = vrot.lane.b32.xlu1 %v8624_v26, %s18733_s23  ;;  %14602 = vmatprep.mubr.msk.f32.mxu1 %vm15869_vm3, %v15859_v0  ;;  %v14012_v29 = vld [vmem:[%s18732_s1 + $0x90] sm:$0x3f] }
 0x178   : > { %8630 = vrot.lane.b32.xlu0 %v8616_v20, %s18733_s23  ;;  %13978 = vmatpush1.msk.msra.mxu0 %vm477_vm1, %v5579_v31 }
 0x179   : > { %v5577_v6 = vpop.permute.xlu1 %5576  ;;  %13979 = vmatmul.mubr.msk.f32.vlgmr.msra.gmra.mrb[0].mxu0 %vm473_vm2, %v13976_v27 }
 0x17a   : > { %v5575_v32 = vpop.permute.xlu0 %5574  ;;  %5809 = vmatprep.mubr.f32.mxu0 %v15859_v0 }
 0x17b   : > { %v5585_v4 = vsel %vm5578_vm9, %v5575_v32, %v5577_v6  ;;  %8626 = vrot.lane.b32.xlu1 %v8615_v15, %s18733_s23  ;;  %v5584_v33 = vsel %vm5578_vm9, %v5573_v28, %v5575_v32  ;;  %vm10357_vm9 = vcmask 908288  }
 0x17c   : > { %8634 = vrot.lane.b32.xlu0 %v8617_v2, %s18733_s23  ;;  %13983 = vmatprep.subr.msk.mxu0 %vm477_vm1, %v5584_v33 }
 0x17d   : > { %14601 = vmatpush3.msk.msra.mxu1 %vm477_vm1, %v5585_v4  ;;  %13984 = vmatpush1.msk.msra.mxu0 %vm477_vm1, %v5583_v5  ;;  %v5912_v9 = vpop.permute.xlu1 %5911 }
 0x17e   : > { %14603 = vmatmul.mubr.msk.f32.vlgmr.msra.gmra.mrb[32].mxu1 %vm473_vm2, %v13976_v27  ;;  %v5910_v35 = vpop.permute.xlu0 %5909  ;;  %13985 = vmatmul.mubr.msk.f32.vlgmr.msra.gmra.mrb[2].mxu0 %vm473_vm2, %v13976_v27  ;;  %v1071_v36 = vpop.f32.mrb[4].mxu1 }
 0x17f   : > { %8638 = vrot.lane.b32.xlu1 %v8618_v1, %s18733_s23  ;;  %v5925_v37 = vsel %vm5923_vm10, %v5910_v35, %v5912_v9  ;;  %6083 = vmatprep.mubr.f32.mxu1 %v15859_v0  ;;  %v1072_v38 = vadd.f32 %v1071_v36, %v771_v30  ;;  %v14534_v39 = vpop.f32.mrb[5].mxu1 }
 0x180   : > { %8636 = vrot.lane.b32.xlu0 %v8625_v34, %s18733_s23  ;;  %13989 = vmatprep.subr.msk.mxu0 %vm477_vm1, %v5925_v37 }
 0x181   : > { %v5916_v40 = vpop.permute.xlu1 %5915  ;;  %6012 = vmatprep.mubr.f32.mxu0 %v15859_v0 }
 0x182   : > { %v5914_v41 = vpop.permute.xlu0 %5913 }
 0x183   : > { %v5926_v42 = vsel %vm5923_vm10, %v5912_v9, %v5914_v41  ;;  %v5927_v43 = vsel %vm5923_vm10, %v5914_v41, %v5916_v40  ;;  %v14024_v41 = vld [vmem:[%s18732_s1 + $0x98] sm:$0x3f] }
 0x184   : > { %13992 = vmatprep.subr.msk.mxu1 %vm477_vm1, %v5927_v43 }
 0x185   : > { %13993 = vmatpush1.msk.msra.mxu1 %vm477_vm1, %v5926_v42  ;;  %v5918_v45 = vpop.permute.xlu1 %5917 }
 0x186   : > { %v5908_v46 = vpop.permute.xlu0 %5907  ;;  %13994 = vmatmul.mubr.msk.f32.vlgmr.msra.gmra.mrb[0].mxu1 %vm473_vm2, %v13988_v44  ;;  %14605 = vmatprep.subr.mxu1 %v15859_v0  ;;  %v5928_v55 = vsel %vm5923_vm10, %v5916_v40, %v5918_v45 }
 0x187   : > { %v5924_v47 = vsel %vm5923_vm10, %v5908_v46, %v5910_v35  ;;  %14607 = vmatprep.mubr.msk.f32.mxu1 %vm15869_vm3, %v15859_v0  ;;  %v7276_v46 = vld [vmem:[%s16028_s24 + $0xc] sm:$0x77] }
 0x188   : > { %13990 = vmatpush1.msk.msra.mxu0 %vm477_vm1, %v5924_v47  ;;  %v1405_v48 = vpop.f32.mrb[6].mxu1 }
 0x189   : > { %v5922_v49 = vpop.permute.xlu1 %5921  ;;  %13991 = vmatmul.mubr.msk.f32.vlgmr.msra.gmra.mrb[0].mxu0 %vm473_vm2, %v13988_v44  ;;  %v1415_v50 = vadd.f32 %v1405_v48, %v1072_v38  ;;  %v14539_v51 = vpop.f32.mrb[7].mxu1 }
 0x18a   : > { %v5920_v52 = vpop.permute.xlu0 %5919  ;;  %6154 = vmatprep.mubr.f32.mxu0 %v15859_v0 }
 0x18b   : > { %v5930_v53 = vsel %vm5923_vm10, %v5920_v52, %v5922_v49  ;;  %v5929_v54 = vsel %vm5923_vm10, %v5918_v45, %v5920_v52  ;;  %v7275_v45 = vld [vmem:[%s16028_s24 + $0x4] sm:$0x77]  ;;  %v7284_v52 = vcombine.high %v7276_v46, %v7276_v46  ;;  %vm10457_vm10 = vcmask 900096  }
 0x18c   : > { %13995 = vmatprep.subr.msk.mxu0 %vm477_vm1, %v5929_v54  ;;  %14606 = vmatpush3.msk.msra.mxu1 %vm477_vm1, %v5930_v53  ;;  %v7283_v49 = vcombine.high %v7275_v45, %v7275_v45  ;;  %v7277_v53 = vld [vmem:[%s16028_s24 + $0x14] sm:$0x77] }
 0x18d   : > { %13996 = vmatpush1.msk.msra.mxu0 %vm477_vm1, %v5928_v55  ;;  %14608 = vmatmul.mubr.msk.f32.vlgmr.msra.gmra.mrb[34].mxu1 %vm473_vm2, %v13988_v44  ;;  %v6257_v56 = vpop.permute.xlu1 %6256 }
 0x18e   : > { %v6255_v57 = vpop.permute.xlu0 %6254  ;;  %13997 = vmatmul.mubr.msk.f32.vlgmr.msra.gmra.mrb[2].mxu0 %vm473_vm2, %v13988_v44  ;;  %6428 = vmatprep.mubr.f32.mxu1 %v15859_v0 }
 0x18f   : > { %v6270_v58 = vsel %vm6268_vm11, %v6255_v57, %v6257_v56  ;;  %6357 = vmatprep.mubr.f32.mxu0 %v15859_v0 }
 0x190   : > { %14001 = vmatprep.subr.msk.mxu0 %vm477_vm1, %v6270_v58 }
 0x191   : > { %v6261_v59 = vpop.permute.xlu1 %6260 }
 0x192   : > { %v6259_v60 = vpop.permute.xlu0 %6258 }
 0x193   : > { %v6271_v61 = vsel %vm6268_vm11, %v6257_v56, %v6259_v60  ;;  %v6272_v62 = vsel %vm6268_vm11, %v6259_v60, %v6261_v59  ;;  %v1746_v7 = vpop.f32.mrb[8].mxu1  ;;  %v14036_v60 = vld [vmem:[%s18732_s1 + $0xa0] sm:$0x3f] }
 0x194   : > { %14004 = vmatprep.subr.msk.mxu1 %vm477_vm1, %v6272_v62  ;;  %v1756_v8 = vadd.f32 %v1746_v7, %v1415_v50  ;;  %v14544_v10 = vpop.f32.mrb[9].mxu1 }
 0x195   : > { %14005 = vmatpush1.msk.msra.mxu1 %vm477_vm1, %v6271_v61  ;;  %v6263_v11 = vpop.permute.xlu1 %6262  ;;  %v7285_v61 = vcombine.high %v7277_v53, %v7277_v53 }
 0x196   : > { %v6253_v12 = vpop.permute.xlu0 %6252  ;;  %14006 = vmatmul.mubr.msk.f32.vlgmr.msra.gmra.mrb[0].mxu1 %vm473_vm2, %v14000_v63  ;;  %14610 = vmatprep.subr.mxu1 %v15859_v0  ;;  %v6273_v18 = vsel %vm6268_vm11, %v6261_v59, %v6263_v11 }
 0x197   : > { %v6269_v13 = vsel %vm6268_vm11, %v6253_v12, %v6255_v57  ;;  %14612 = vmatprep.mubr.msk.f32.mxu1 %vm15869_vm3, %v15859_v0 }
 0x198   : > { %14002 = vmatpush1.msk.msra.mxu0 %vm477_vm1, %v6269_v13 }
 0x199   : > { %v6267_v14 = vpop.permute.xlu1 %6266  ;;  %14003 = vmatmul.mubr.msk.f32.vlgmr.msra.gmra.mrb[0].mxu0 %vm473_vm2, %v14000_v63 }
 0x19a   : > { %v6265_v15 = vpop.permute.xlu0 %6264  ;;  %6499 = vmatprep.mubr.f32.mxu0 %v15859_v0 }
 0x19b   : > { %v6275_v16 = vsel %vm6268_vm11, %v6265_v15, %v6267_v14  ;;  %v6274_v17 = vsel %vm6268_vm11, %v6263_v11, %v6265_v15  ;;  %v14048_v15 = vld [vmem:[%s18732_s1 + $0xa8] sm:$0x3f]  ;;  %vm10557_vm11 = vcmask 818176  }
 0x19c   : > { %14007 = vmatprep.subr.msk.mxu0 %vm477_vm1, %v6274_v17  ;;  %14611 = vmatpush3.msk.msra.mxu1 %vm477_vm1, %v6275_v16 }
 0x19d   : > { %14008 = vmatpush1.msk.msra.mxu0 %vm477_vm1, %v6273_v18  ;;  %14613 = vmatmul.mubr.msk.f32.vlgmr.msra.gmra.mrb[36].mxu1 %vm473_vm2, %v14000_v63  ;;  %v6602_v19 = vpop.permute.xlu1 %6601  ;;  %v2087_v20 = vpop.f32.mrb[10].mxu1  ;;  %v15880_v18 = vmov 0  }
 0x19e   : > { %v6600_v21 = vpop.permute.xlu0 %6599  ;;  %14009 = vmatmul.mubr.msk.f32.vlgmr.msra.gmra.mrb[2].mxu0 %vm473_vm2, %v14000_v63  ;;  %6773 = vmatprep.mubr.f32.mxu1 %v15859_v0  ;;  %v2097_v22 = vadd.f32 %v2087_v20, %v1756_v8  ;;  %v14549_v23 = vpop.f32.mrb[11].mxu1  ;;  %v7278_v63 = vld [vmem:[%s16028_s24 + $0x1c] sm:$0x7]  ;;  %v8953_v20 = vld [vmem:[%s18734_s2] sm:$0x3f]  ;;  %s18735_s2 = smov 96  }
 0x19f   : > { %v6615_v24 = vsel %vm6613_vm12, %v6600_v21, %v6602_v19  ;;  %6702 = vmatprep.mubr.f32.mxu0 %v15859_v0  ;;  %15677 = vset.pattern.permute.xlu0 %v15880_v18  ;;  %s18737_s24 = smov 126  }
 0x1a0   : > { %14013 = vmatprep.subr.msk.mxu0 %vm477_vm1, %v6615_v24  ;;  %8956 = vperm.xlu0 %15677, %v8953_v20  }
 0x1a1   : > { %v6606_v25 = vpop.permute.xlu1 %6605  ;;  %15703 = vset.pattern.permute.xlu1 %v15880_v18 }
 0x1a2   : > { %v6604_v26 = vpop.permute.xlu0 %6603 }
 0x1a3   : > { %v6616_v27 = vsel %vm6613_vm12, %v6602_v19, %v6604_v26  ;;  %v6617_v28 = vsel %vm6613_vm12, %v6604_v26, %v6606_v25 }
 0x1a4   : > { %14016 = vmatprep.subr.msk.mxu1 %vm477_vm1, %v6617_v28 }
 0x1a5   : > { %14017 = vmatpush1.msk.msra.mxu1 %vm477_vm1, %v6616_v27  ;;  %v6608_v30 = vpop.permute.xlu1 %6607 }
 0x1a6   : > { %v6598_v31 = vpop.permute.xlu0 %6597  ;;  %14018 = vmatmul.mubr.msk.f32.vlgmr.msra.gmra.mrb[0].mxu1 %vm473_vm2, %v14012_v29  ;;  %14615 = vmatprep.subr.mxu1 %v15859_v0  ;;  %v6618_v33 = vsel %vm6613_vm12, %v6606_v25, %v6608_v30 }
 0x1a7   : > { %v6614_v3 = vsel %vm6613_vm12, %v6598_v31, %v6600_v21  ;;  %14617 = vmatprep.mubr.msk.f32.mxu1 %vm15869_vm3, %v15859_v0 }
 0x1a8   : > { %14014 = vmatpush1.msk.msra.mxu0 %vm477_vm1, %v6614_v3  ;;  %v14060_v3 = vld [vmem:[%s18732_s1 + $0xb0] sm:$0x3f] }
 0x1a9   : > { %v6612_v6 = vpop.permute.xlu1 %6611  ;;  %14015 = vmatmul.mubr.msk.f32.vlgmr.msra.gmra.mrb[0].mxu0 %vm473_vm2, %v14012_v29 }
 0x1aa   : > { %v6610_v2 = vpop.permute.xlu0 %6609  ;;  %6844 = vmatprep.mubr.f32.mxu0 %v15859_v0 }
 0x1ab   : > { %v6620_v32 = vsel %vm6613_vm12, %v6610_v2, %v6612_v6  ;;  %v6619_v4 = vsel %vm6613_vm12, %v6608_v30, %v6610_v2  ;;  %vm10657_vm12 = vcmask 809984  }
 0x1ac   : > { %14019 = vmatprep.subr.msk.mxu0 %vm477_vm1, %v6619_v4  ;;  %14616 = vmatpush3.msk.msra.mxu1 %vm477_vm1, %v6620_v32  ;;  %v2432_v5 = vpop.f32.mrb[12].mxu1 }
 0x1ad   : > { %14020 = vmatpush1.msk.msra.mxu0 %vm477_vm1, %v6618_v33  ;;  %14618 = vmatmul.mubr.msk.f32.vlgmr.msra.gmra.mrb[38].mxu1 %vm473_vm2, %v14012_v29  ;;  %v6947_v34 = vpop.permute.xlu1 %6946  ;;  %v2442_v1 = vadd.f32 %v2432_v5, %v2097_v22  ;;  %v14554_v9 = vpop.f32.mrb[13].mxu1 }
 0x1ae   : > { %v6945_v35 = vpop.permute.xlu0 %6944  ;;  %14021 = vmatmul.mubr.msk.f32.vlgmr.msra.gmra.mrb[2].mxu0 %vm473_vm2, %v14012_v29  ;;  %7118 = vmatprep.mubr.f32.mxu1 %v15859_v0 }
 0x1af   : > { %v6960_v36 = vsel %vm6958_vm13, %v6945_v35, %v6947_v34  ;;  %7047 = vmatprep.mubr.f32.mxu0 %v15859_v0 }
 0x1b0   : > { %14025 = vmatprep.subr.msk.mxu0 %vm477_vm1, %v6960_v36 }
 0x1b1   : > { %v6951_v37 = vpop.permute.xlu1 %6950 }
 0x1b2   : > { %v6949_v38 = vpop.permute.xlu0 %6948 }
 0x1b3   : > { %v6961_v39 = vsel %vm6958_vm13, %v6947_v34, %v6949_v38  ;;  %v6962_v40 = vsel %vm6958_vm13, %v6949_v38, %v6951_v37 }
 0x1b4   : > { %14028 = vmatprep.subr.msk.mxu1 %vm477_vm1, %v6962_v40 }
 0x1b5   : > { %14029 = vmatpush1.msk.msra.mxu1 %vm477_vm1, %v6961_v39  ;;  %v6953_v42 = vpop.permute.xlu1 %6952 }
 0x1b6   : > { %v6943_v43 = vpop.permute.xlu0 %6942  ;;  %14030 = vmatmul.mubr.msk.f32.vlgmr.msra.gmra.mrb[0].mxu1 %vm473_vm2, %v14024_v41  ;;  %14620 = vmatprep.subr.mxu1 %v15859_v0  ;;  %v6963_v54 = vsel %vm6958_vm13, %v6951_v37, %v6953_v42 }
 0x1b7   : > { %v6959_v44 = vsel %vm6958_vm13, %v6943_v43, %v6945_v35  ;;  %14622 = vmatprep.mubr.msk.f32.mxu1 %vm15869_vm3, %v15859_v0 }
 0x1b8   : > { %14026 = vmatpush1.msk.msra.mxu0 %vm477_vm1, %v6959_v44 }
 0x1b9   : > { %v6957_v47 = vpop.permute.xlu1 %6956  ;;  %14027 = vmatmul.mubr.msk.f32.vlgmr.msra.gmra.mrb[0].mxu0 %vm473_vm2, %v14024_v41 }
 0x1ba   : > { %v6955_v48 = vpop.permute.xlu0 %6954  ;;  %7189 = vmatprep.mubr.f32.mxu0 %v15859_v0 }
 0x1bb   : > { %v6965_v50 = vsel %vm6958_vm13, %v6955_v48, %v6957_v47  ;;  %v6964_v51 = vsel %vm6958_vm13, %v6953_v42, %v6955_v48  ;;  %vm10757_vm13 = vcmask 801792  }
 0x1bc   : > { %14031 = vmatprep.subr.msk.mxu0 %vm477_vm1, %v6964_v51  ;;  %14621 = vmatpush3.msk.msra.mxu1 %vm477_vm1, %v6965_v50  ;;  %v2777_v55 = vpop.f32.mrb[14].mxu1 }
 0x1bd   : > { %14032 = vmatpush1.msk.msra.mxu0 %vm477_vm1, %v6963_v54  ;;  %14623 = vmatmul.mubr.msk.f32.vlgmr.msra.gmra.mrb[40].mxu1 %vm473_vm2, %v14024_v41  ;;  %v7611_v56 = vpop.permute.xlu1 %7610  ;;  %v2787_v57 = vadd.f32 %v2777_v55, %v2442_v1  ;;  %v14559_v58 = vpop.f32.mrb[15].mxu1 }
 0x1be   : > { %14033 = vmatmul.mubr.msk.f32.vlgmr.msra.gmra.mrb[2].mxu0 %vm473_vm2, %v14024_v41  ;;  %v7609_v59 = vpop.permute.xlu0 %7608  ;;  %14037 = vmatprep.subr.msk.mxu0 %vm477_vm1, %v7283_v49  ;;  %v14072_v41 = vld [vmem:[%s18732_s1 + $0xb8] sm:$0x3f] }
 0x1bf   : > { %14040 = vmatprep.subr.msk.mxu1 %vm477_vm1, %v7284_v52  ;;  %14038 = vmatpush1.msk.msra.mxu0 %vm477_vm1, %v7275_v45  ;;  %v7621_v8 = vsel %vm466_vm0, %v7609_v59, %v7611_v56 }
 0x1c0   : > { %14041 = vmatpush1.msk.msra.mxu1 %vm477_vm1, %v7276_v46  ;;  %7438 = vmatprep.mubr.f32.mxu1 %v15859_v0 }
 0x1c1   : > { %7367 = vmatprep.mubr.f32.mxu0 %v15859_v0  ;;  %14042 = vmatmul.mubr.msk.f32.vlgmr.msra.gmra.mrb[0].mxu1 %vm473_vm2, %v14036_v60  ;;  %v7615_v62 = vpop.permute.xlu1 %7614 }
 0x1c2   : > { %14043 = vmatprep.subr.msk.mxu0 %vm477_vm1, %v7285_v61  ;;  %14039 = vmatmul.mubr.msk.f32.vlgmr.msra.gmra.mrb[0].mxu0 %vm473_vm2, %v14036_v60  ;;  %v7613_v7 = vpop.permute.xlu0 %7612 }
 0x1c3   : > { %14044 = vmatpush1.msk.msra.mxu0 %vm477_vm1, %v7277_v53  ;;  %14625 = vmatprep.subr.mxu1 %v15859_v0  ;;  %v7623_v10 = vsel %vm466_vm0, %v7613_v7, %v7615_v62  ;;  %v7622_v11 = vsel %vm466_vm0, %v7611_v56, %v7613_v7  ;;  %v14084_v53 = vld [vmem:[%s18732_s1 + $0xc0] sm:$0x3f]  ;;  %s15884_s1 = smov 112  }
 0x1c4   : > { %14626 = vmatpush3.msk.msra.mxu1 %vm477_vm1, %v7278_v63  ;;  %14049 = vmatprep.subr.msk.mxu0 %vm477_vm1, %v7621_v8 }
 0x1c5   : > { %14627 = vmatprep.mubr.msk.f32.mxu1 %vm15869_vm3, %v15859_v0  ;;  %14052 = vmatprep.subr.msk.mxu1 %vm477_vm1, %v7623_v10  ;;  %v7617_v12 = vpop.permute.xlu1 %7616 }
 0x1c6   : > { %14628 = vmatmul.mubr.msk.f32.vlgmr.msra.gmra.mrb[42].mxu1 %vm473_vm2, %v14036_v60  ;;  %v7607_v13 = vpop.permute.xlu0 %7606  ;;  %7509 = vmatprep.mubr.f32.mxu0 %v15859_v0  ;;  %v7624_v21 = vsel %vm466_vm0, %v7615_v62, %v7617_v12 }
 0x1c7   : > { %14053 = vmatpush1.msk.msra.mxu1 %vm477_vm1, %v7622_v11  ;;  %v7620_v14 = vsel %vm466_vm0, %v7607_v13, %v7609_v59  ;;  %14045 = vmatmul.mubr.msk.f32.vlgmr.msra.gmra.mrb[2].mxu0 %vm473_vm2, %v14036_v60 }
 0x1c8   : > { %14050 = vmatpush1.msk.msra.mxu0 %vm477_vm1, %v7620_v14  ;;  %7778 = vmatprep.mubr.f32.mxu1 %v15859_v0 }
 0x1c9   : > { %v7949_v16 = vpop.permute.xlu1 %7948  ;;  %14630 = vmatprep.subr.mxu1 %v15859_v0  ;;  %7707 = vmatprep.mubr.f32.mxu0 %v15859_v0 }
 0x1ca   : > { %14054 = vmatmul.mubr.msk.f32.vlgmr.msra.gmra.mrb[0].mxu1 %vm473_vm2, %v14048_v15  ;;  %v7619_v17 = vpop.permute.xlu0 %7618 }
 0x1cb   : > { %v7625_v19 = vsel %vm466_vm0, %v7617_v12, %v7619_v17  ;;  %14631 = vmatpush3.msk.msra.mxu1 %vm477_vm1, %v7619_v17  ;;  %14632 = vmatprep.mubr.msk.f32.mxu1 %vm15869_vm3, %v15859_v0 }
 0x1cc   : > { %14055 = vmatprep.subr.msk.mxu0 %vm477_vm1, %v7625_v19  ;;  %14051 = vmatmul.mubr.msk.f32.vlgmr.msra.gmra.mrb[0].mxu0 %vm473_vm2, %v14048_v15  ;;  %v3122_v22 = vpop.f32.mrb[16].mxu1 }
 0x1cd   : > { %14056 = vmatpush1.msk.msra.mxu0 %vm477_vm1, %v7624_v21  ;;  %v7953_v23 = vpop.permute.xlu1 %7952  ;;  %7849 = vmatprep.mubr.f32.mxu0 %v15859_v0  ;;  %v3132_v24 = vadd.f32 %v3122_v22, %v2787_v57  ;;  %v14564_v25 = vpop.f32.mrb[17].mxu1 }
 0x1ce   : > { %14633 = vmatmul.mubr.msk.f32.vlgmr.msra.gmra.mrb[44].mxu1 %vm473_vm2, %v14048_v15  ;;  %v7951_v26 = vpop.permute.xlu0 %7950 }
 0x1cf   : > { %v7961_v27 = vsel %vm1102_vm4, %v7949_v16, %v7951_v26  ;;  %8118 = vmatprep.mubr.f32.mxu1 %v15859_v0  ;;  %v7962_v6 = vsel %vm1102_vm4, %v7951_v26, %v7953_v23 }
 0x1d0   : > { %14061 = vmatprep.subr.msk.mxu0 %vm477_vm1, %v7961_v27  ;;  %14057 = vmatmul.mubr.msk.f32.vlgmr.msra.gmra.mrb[2].mxu0 %vm473_vm2, %v14048_v15 }
 0x1d1   : > { %v7947_v28 = vpop.permute.xlu1 %7946  ;;  %8047 = vmatprep.mubr.f32.mxu0 %v15859_v0 }
 0x1d2   : > { %v7960_v29 = vsel %vm1102_vm4, %v7947_v28, %v7949_v16  ;;  %v7955_v30 = vpop.permute.xlu0 %7954 }
 0x1d3   : > { %v7963_v31 = vsel %vm1102_vm4, %v7953_v23, %v7955_v30  ;;  %14062 = vmatpush1.msk.msra.mxu0 %vm477_vm1, %v7960_v29 }
 0x1d4   : > { %14064 = vmatprep.subr.msk.mxu1 %vm477_vm1, %v7963_v31  ;;  %14063 = vmatmul.mubr.msk.f32.vlgmr.msra.gmra.mrb[0].mxu0 %vm473_vm2, %v14060_v3 }
 0x1d5   : > { %14065 = vmatpush1.msk.msra.mxu1 %vm477_vm1, %v7962_v6  ;;  %v7959_v2 = vpop.permute.xlu1 %7958  ;;  %8189 = vmatprep.mubr.f32.mxu0 %v15859_v0 }
 0x1d6   : > { %14066 = vmatmul.mubr.msk.f32.vlgmr.msra.gmra.mrb[0].mxu1 %vm473_vm2, %v14060_v3  ;;  %14635 = vmatprep.subr.mxu1 %v15859_v0  ;;  %v7957_v32 = vpop.permute.xlu0 %7956 }
 0x1d7   : > { %v7964_v4 = vsel %vm1102_vm4, %v7955_v30, %v7957_v32  ;;  %v7965_v33 = vsel %vm1102_vm4, %v7957_v32, %v7959_v2  ;;  %14636 = vmatpush3.msk.msra.mxu1 %vm477_vm1, %v7959_v2  ;;  %14637 = vmatprep.mubr.msk.f32.mxu1 %vm15869_vm3, %v15859_v0 }
 0x1d8   : > { %14067 = vmatprep.subr.msk.mxu0 %vm477_vm1, %v7965_v33 }
 0x1d9   : > { %14068 = vmatpush1.msk.msra.mxu0 %vm477_vm1, %v7964_v4  ;;  %v8291_v5 = vpop.permute.xlu1 %8290 }
 0x1da   : > { %14638 = vmatmul.mubr.msk.f32.vlgmr.msra.gmra.mrb[46].mxu1 %vm473_vm2, %v14060_v3  ;;  %v8289_v34 = vpop.permute.xlu0 %8288  ;;  %14069 = vmatmul.mubr.msk.f32.vlgmr.msra.gmra.mrb[2].mxu0 %vm473_vm2, %v14060_v3 }
 0x1db   : > { %v8301_v1 = vsel %vm1443_vm5, %v8289_v34, %v8291_v5  ;;  %8458 = vmatprep.mubr.f32.mxu1 %v15859_v0  ;;  %8387 = vmatprep.mubr.f32.mxu0 %v15859_v0 }
 0x1dc   : > { %14073 = vmatprep.subr.msk.mxu0 %vm477_vm1, %v8301_v1  ;;  %v3467_v9 = vpop.f32.mrb[18].mxu1 }
 0x1dd   : > { %v8295_v35 = vpop.permute.xlu1 %8294  ;;  %v3477_v36 = vadd.f32 %v3467_v9, %v3132_v24  ;;  %v14569_v37 = vpop.f32.mrb[19].mxu1 }
 0x1de   : > { %v8293_v38 = vpop.permute.xlu0 %8292 }
 0x1df   : > { %v8302_v39 = vsel %vm1443_vm5, %v8291_v5, %v8293_v38  ;;  %v8303_v40 = vsel %vm1443_vm5, %v8293_v38, %v8295_v35 }
 0x1e0   : > { %14076 = vmatprep.subr.msk.mxu1 %vm477_vm1, %v8303_v40 }
 0x1e1   : > { %14077 = vmatpush1.msk.msra.mxu1 %vm477_vm1, %v8302_v39  ;;  %v8297_v42 = vpop.permute.xlu1 %8296 }
 0x1e2   : > { %v8287_v43 = vpop.permute.xlu0 %8286  ;;  %14078 = vmatmul.mubr.msk.f32.vlgmr.msra.gmra.mrb[0].mxu1 %vm473_vm2, %v14072_v41  ;;  %14640 = vmatprep.subr.mxu1 %v15859_v0  ;;  %v8304_v48 = vsel %vm1443_vm5, %v8295_v35, %v8297_v42 }
 0x1e3   : > { %v8300_v44 = vsel %vm1443_vm5, %v8287_v43, %v8289_v34  ;;  %14642 = vmatprep.mubr.msk.f32.mxu1 %vm15869_vm3, %v15859_v0 }
 0x1e4   : > { %14074 = vmatpush1.msk.msra.mxu0 %vm477_vm1, %v8300_v44 }
 0x1e5   : > { %v8629_v45 = vpop.permute.xlu1 %8628  ;;  %14075 = vmatmul.mubr.msk.f32.vlgmr.msra.gmra.mrb[0].mxu0 %vm473_vm2, %v14072_v41 }
 0x1e6   : > { %v8299_v46 = vpop.permute.xlu0 %8298  ;;  %8529 = vmatprep.mubr.f32.mxu0 %v15859_v0 }
 0x1e7   : > { %v8305_v47 = vsel %vm1443_vm5, %v8297_v42, %v8299_v46  ;;  %14641 = vmatpush3.msk.msra.mxu1 %vm477_vm1, %v8299_v46 }
 0x1e8   : > { %14079 = vmatprep.subr.msk.mxu0 %vm477_vm1, %v8305_v47  ;;  %14643 = vmatmul.mubr.msk.f32.vlgmr.msra.gmra.mrb[48].mxu1 %vm473_vm2, %v14072_v41 }
 0x1e9   : > { %14080 = vmatpush1.msk.msra.mxu0 %vm477_vm1, %v8304_v48  ;;  %v8633_v49 = vpop.permute.xlu1 %8632  ;;  %8798 = vmatprep.mubr.f32.mxu1 %v15859_v0 }
 0x1ea   : > { %v8631_v50 = vpop.permute.xlu0 %8630  ;;  %14081 = vmatmul.mubr.msk.f32.vlgmr.msra.gmra.mrb[2].mxu0 %vm473_vm2, %v14072_v41 }
 0x1eb   : > { %v8641_v51 = vsel %vm1784_vm6, %v8629_v45, %v8631_v50  ;;  %8727 = vmatprep.mubr.f32.mxu0 %v15859_v0  ;;  %v8642_v60 = vsel %vm1784_vm6, %v8631_v50, %v8633_v49 }
 0x1ec   : > { %14085 = vmatprep.subr.msk.mxu0 %vm477_vm1, %v8641_v51 }
 0x1ed   : > { %v8627_v52 = vpop.permute.xlu1 %8626  ;;  %v3812_v54 = vpop.f32.mrb[20].mxu1 }
 0x1ee   : > { %v8640_v55 = vsel %vm1784_vm6, %v8627_v52, %v8629_v45  ;;  %v8635_v56 = vpop.permute.xlu0 %8634  ;;  %v3822_v57 = vadd.f32 %v3812_v54, %v3477_v36  ;;  %v14574_v58 = vpop.f32.mrb[21].mxu1 }
 0x1ef   : > { %v8643_v59 = vsel %vm1784_vm6, %v8633_v49, %v8635_v56  ;;  %14086 = vmatpush1.msk.msra.mxu0 %vm477_vm1, %v8640_v55 }
 0x1f0   : > { %14088 = vmatprep.subr.msk.mxu1 %vm477_vm1, %v8643_v59  ;;  %14087 = vmatmul.mubr.msk.f32.vlgmr.msra.gmra.mrb[0].mxu0 %vm473_vm2, %v14084_v53 }
 0x1f1   : > { %14089 = vmatpush1.msk.msra.mxu1 %vm477_vm1, %v8642_v60  ;;  %v8639_v61 = vpop.permute.xlu1 %8638  ;;  %8869 = vmatprep.mubr.f32.mxu0 %v15859_v0 }
 0x1f2   : > { %14090 = vmatmul.mubr.msk.f32.vlgmr.msra.gmra.mrb[0].mxu1 %vm473_vm2, %v14084_v53  ;;  %v8637_v62 = vpop.permute.xlu0 %8636  ;;  %14645 = vmatprep.subr.mxu1 %v15859_v0 }
 0x1f3   : > { %v8644_v63 = vsel %vm1784_vm6, %v8635_v56, %v8637_v62  ;;  %v8645_v7 = vsel %vm1784_vm6, %v8637_v62, %v8639_v61  ;;  %14646 = vmatpush3.msk.msra.mxu1 %vm477_vm1, %v8639_v61  ;;  %14647 = vmatprep.mubr.msk.f32.mxu1 %vm15869_vm3, %v15859_v0 }
 0x1f4   : > { %14091 = vmatprep.subr.msk.mxu0 %vm477_vm1, %v8645_v7  ;;  %v9056_v7 = vld [vmem:[%s18704_s5 + $0x8] sm:$0xff] }
 0x1f5   : > { %14092 = vmatpush1.msk.msra.mxu0 %vm477_vm1, %v8644_v63 }
 0x1f6   : > { %14093 = vmatmul.mubr.msk.f32.vlgmr.msra.gmra.mrb[2].mxu0 %vm473_vm2, %v14084_v53  ;;  %14648 = vmatmul.mubr.msk.f32.vlgmr.msra.gmra.mrb[50].mxu1 %vm473_vm2, %v14084_v53  ;;  %vm15881_vm2 = vmmov 1  }
 0x1f7   : > { %9558 = vmatprep.mubr.f32.mxu1 %v15859_v0  ;;  %vm15132_vm14 = vmpackc.low %vm477_vm1, %vm15881_vm2  ;;  %vm9271_vm1 = vcmask 744448  }
 0x201   : > { %v4157_v8 = vpop.f32.mrb[22].mxu1 }
 0x202   : > { %v4167_v10 = vadd.f32 %v4157_v8, %v3822_v57  ;;  %v14579_v11 = vpop.f32.mrb[23].mxu1  ;;  %v9058_v8 = vld [vmem:[%s18704_s5 + $0x18] sm:$0xff] }
 0x203   : > { %v14919_v11 = vpack.c.bf16 %v9058_v8, %v9056_v7  ;;  %v9087_v7 = vld [vmem:[%s18704_s5 + $0x100] sm:$0xff]  ;;  %v9089_v8 = vld [vmem:[%s18704_s5 + $0x110] sm:$0xff] }
 0x205   : > { %14920 = vmatprep.subr.bf16.mxu0 %v14919_v11  ;;  %v9094_v11 = vld [vmem:[%s18704_s5 + $0x138] sm:$0xff] }
 0x211   : > { %v4502_v12 = vpop.f32.mrb[24].mxu1 }
 0x212   : > { %v4512_v13 = vadd.f32 %v4502_v12, %v4167_v10  ;;  %v14584_v14 = vpop.f32.mrb[25].mxu1  ;;  %v9055_v10 = vld [vmem:[%s18704_s5] sm:$0xff]  ;;  %v9057_v12 = vld [vmem:[%s18704_s5 + $0x10] sm:$0xff] }
 0x213   : > { %v9062_v14 = vld [vmem:[%s18704_s5 + $0x38] sm:$0xff] }
 0x21f   : > { %v16967_v44 = vpop.permute.xlu0 %8956 }
 0x221   : > { %v4847_v15 = vpop.f32.mrb[26].mxu1 }
 0x222   : > { %v4857_v16 = vadd.f32 %v4847_v15, %v4512_v13  ;;  %v14589_v17 = vpop.f32.mrb[27].mxu1  ;;  %v9060_v13 = vld [vmem:[%s18704_s5 + $0x28] sm:$0xff]  ;;  %v14921_v15 = vpack.c.bf16 %v9057_v12, %v9055_v10  ;;  %v14953_v12 = vpack.c.bf16 %v9089_v8, %v9087_v7 }
 0x223   : > { %v9059_v17 = vld [vmem:[%s18704_s5 + $0x20] sm:$0xff]  ;;  %v9092_v10 = vld [vmem:[%s18704_s5 + $0x128] sm:$0xff] }
 0x224   : > { %14922 = vmatpush1.bf16.msra.mxu0 %v14921_v15  ;;  %v9093_v15 = vld [vmem:[%s18704_s5 + $0x130] sm:$0xff] }
 0x231   : > { %v5192_v18 = vpop.f32.mrb[28].mxu1 }
 0x232   : > { %v5202_v19 = vadd.f32 %v5192_v18, %v4857_v16  ;;  %v14594_v20 = vpop.f32.mrb[29].mxu1  ;;  %v14923_v16 = vpack.c.bf16 %v9062_v14, %v9060_v13  ;;  %v9061_v18 = vld [vmem:[%s18704_s5 + $0x30] sm:$0xff]  ;;  %v14955_v13 = vpack.c.bf16 %v9094_v11, %v9092_v10  ;;  %v9091_v14 = vld [vmem:[%s18704_s5 + $0x120] sm:$0xff] }
 0x233   : > { %v9066_v20 = vld [vmem:[%s18704_s5 + $0x58] sm:$0xff] }
 0x234   : > { %14924 = vmatprep.subr.bf16.mxu0 %v14923_v16  ;;  %v9096_v16 = vld [vmem:[%s18704_s5 + $0x148] sm:$0xff] }
 0x241   : > { %v5537_v21 = vpop.f32.mrb[30].mxu1 }
 0x242   : > { %v5547_v22 = vadd.f32 %v5537_v21, %v5202_v19  ;;  %v14599_v23 = vpop.f32.mrb[31].mxu1  ;;  %v9064_v19 = vld [vmem:[%s18704_s5 + $0x48] sm:$0xff]  ;;  %v14925_v21 = vpack.c.bf16 %v9061_v18, %v9059_v17  ;;  %v9098_v17 = vld [vmem:[%s18704_s5 + $0x158] sm:$0xff]  ;;  %v14957_v18 = vpack.c.bf16 %v9093_v15, %v9091_v14 }
 0x243   : > { %v9063_v23 = vld [vmem:[%s18704_s5 + $0x40] sm:$0xff] }
 0x244   : > { %14926 = vmatpush1.bf16.msra.mxu0 %v14925_v21  ;;  %v9097_v21 = vld [vmem:[%s18704_s5 + $0x150] sm:$0xff] }
 0x251   : > { %v5882_v24 = vpop.f32.mrb[32].mxu1 }
 0x252   : > { %v5892_v25 = vadd.f32 %v5882_v24, %v5547_v22  ;;  %v14604_v26 = vpop.f32.mrb[33].mxu1  ;;  %v14927_v22 = vpack.c.bf16 %v9066_v20, %v9064_v19  ;;  %v9065_v24 = vld [vmem:[%s18704_s5 + $0x50] sm:$0xff]  ;;  %v14959_v19 = vpack.c.bf16 %v9098_v17, %v9096_v16  ;;  %v9095_v20 = vld [vmem:[%s18704_s5 + $0x140] sm:$0xff]  ;;  %v9250_v16 = vld [vmem:[%s18704_s5 + $0x618] sm:$0xff] }
 0x253   : > { %v9070_v26 = vld [vmem:[%s18704_s5 + $0x78] sm:$0xff] }
 0x254   : > { %14928 = vmatprep.subr.bf16.mxu0 %v14927_v22  ;;  %v9100_v22 = vld [vmem:[%s18704_s5 + $0x168] sm:$0xff] }
 0x260   : > { %v6227_v27 = vpop.f32.mrb[34].mxu1 }
 0x261   : > { %v6237_v28 = vadd.f32 %v6227_v27, %v5892_v25  ;;  %v14609_v29 = vpop.f32.mrb[35].mxu1  ;;  %v9068_v25 = vld [vmem:[%s18704_s5 + $0x68] sm:$0xff]  ;;  %v14929_v27 = vpack.c.bf16 %v9065_v24, %v9063_v23  ;;  %v9102_v23 = vld [vmem:[%s18704_s5 + $0x178] sm:$0xff]  ;;  %v14961_v24 = vpack.c.bf16 %v9097_v21, %v9095_v20 }
 0x262   : > { %v9067_v29 = vld [vmem:[%s18704_s5 + $0x60] sm:$0xff]  ;;  %v9252_v21 = vld [vmem:[%s18704_s5 + $0x628] sm:$0xff] }
 0x263   : > { %14930 = vmatpush1.bf16.msra.mxu0 %v14929_v27  ;;  %v9101_v27 = vld [vmem:[%s18704_s5 + $0x170] sm:$0xff] }
 0x270   : > { %v6572_v30 = vpop.f32.mrb[36].mxu1 }
 0x271   : > { %v6582_v31 = vadd.f32 %v6572_v30, %v6237_v28  ;;  %v14614_v3 = vpop.f32.mrb[37].mxu1  ;;  %v14931_v28 = vpack.c.bf16 %v9070_v26, %v9068_v25  ;;  %v9069_v30 = vld [vmem:[%s18704_s5 + $0x70] sm:$0xff]  ;;  %v14963_v25 = vpack.c.bf16 %v9102_v23, %v9100_v22  ;;  %v9099_v26 = vld [vmem:[%s18704_s5 + $0x160] sm:$0xff]  ;;  %v9254_v22 = vld [vmem:[%s18704_s5 + $0x638] sm:$0xff] }
 0x272   : > { %v9074_v3 = vld [vmem:[%s18704_s5 + $0x98] sm:$0xff]  ;;  %v15115_v23 = vpack.c.bf16 %v9254_v22, %v9252_v21 }
 0x273   : > { %14932 = vmatprep.subr.bf16.mxu0 %v14931_v28  ;;  %v9104_v28 = vld [vmem:[%s18704_s5 + $0x188] sm:$0xff] }
 0x280   : > { %v6917_v6 = vpop.f32.mrb[38].mxu1 }
 0x281   : > { %v6927_v2 = vadd.f32 %v6917_v6, %v6582_v31  ;;  %v14619_v32 = vpop.f32.mrb[39].mxu1  ;;  %v9072_v31 = vld [vmem:[%s18704_s5 + $0x88] sm:$0xff]  ;;  %v14933_v6 = vpack.c.bf16 %v9069_v30, %v9067_v29  ;;  %v9106_v29 = vld [vmem:[%s18704_s5 + $0x198] sm:$0xff]  ;;  %v14965_v30 = vpack.c.bf16 %v9101_v27, %v9099_v26 }
 0x282   : > { %v9071_v32 = vld [vmem:[%s18704_s5 + $0x80] sm:$0xff]  ;;  %v9256_v27 = vld [vmem:[%s18704_s5 + $0x648] sm:$0xff] }
 0x283   : > { %14934 = vmatpush1.bf16.msra.mxu0 %v14933_v6  ;;  %v9105_v6 = vld [vmem:[%s18704_s5 + $0x190] sm:$0xff] }
 0x290   : > { %v7262_v4 = vpop.f32.mrb[40].mxu1 }
 0x291   : > { %v7272_v33 = vadd.f32 %v7262_v4, %v6927_v2  ;;  %v14624_v5 = vpop.f32.mrb[41].mxu1  ;;  %v14935_v2 = vpack.c.bf16 %v9074_v3, %v9072_v31  ;;  %v9073_v4 = vld [vmem:[%s18704_s5 + $0x90] sm:$0xff]  ;;  %v14967_v31 = vpack.c.bf16 %v9106_v29, %v9104_v28  ;;  %v9103_v3 = vld [vmem:[%s18704_s5 + $0x180] sm:$0xff]  ;;  %v9258_v28 = vld [vmem:[%s18704_s5 + $0x658] sm:$0xff] }
 0x292   : > { %v9078_v5 = vld [vmem:[%s18704_s5 + $0xb8] sm:$0xff]  ;;  %v15119_v29 = vpack.c.bf16 %v9258_v28, %v9256_v27  ;;  %v9131_v28 = vld [vmem:[%s18704_s5 + $0x260] sm:$0xff] }
 0x293   : > { %14936 = vmatprep.subr.bf16.mxu0 %v14935_v2  ;;  %v9108_v2 = vld [vmem:[%s18704_s5 + $0x1a8] sm:$0xff] }
 0x299   : > { %v7582_v34 = vpop.f32.mrb[42].mxu1 }
 0x29a   : > { %v7592_v1 = vadd.f32 %v7582_v34, %v7272_v33  ;;  %v14629_v9 = vpop.f32.mrb[43].mxu1  ;;  %v9076_v33 = vld [vmem:[%s18704_s5 + $0xa8] sm:$0xff]  ;;  %v14937_v34 = vpack.c.bf16 %v9073_v4, %v9071_v32  ;;  %v9110_v32 = vld [vmem:[%s18704_s5 + $0x1b8] sm:$0xff]  ;;  %v14969_v4 = vpack.c.bf16 %v9105_v6, %v9103_v3 }
 0x29b   : > { %v9075_v9 = vld [vmem:[%s18704_s5 + $0xa0] sm:$0xff]  ;;  %v9260_v6 = vld [vmem:[%s18704_s5 + $0x668] sm:$0xff] }
 0x29c   : > { %14938 = vmatpush1.bf16.msra.mxu0 %v14937_v34  ;;  %v9109_v34 = vld [vmem:[%s18704_s5 + $0x1b0] sm:$0xff] }
 0x2a1   : > { %v7922_v35 = vpop.f32.mrb[44].mxu1 }
 0x2a2   : > { %v7932_v36 = vadd.f32 %v7922_v35, %v7592_v1  ;;  %v14634_v37 = vpop.f32.mrb[45].mxu1  ;;  %v14939_v1 = vpack.c.bf16 %v9078_v5, %v9076_v33  ;;  %v9077_v35 = vld [vmem:[%s18704_s5 + $0xb0] sm:$0xff]  ;;  %v14971_v33 = vpack.c.bf16 %v9110_v32, %v9108_v2  ;;  %v9107_v5 = vld [vmem:[%s18704_s5 + $0x1a0] sm:$0xff]  ;;  %v9262_v2 = vld [vmem:[%s18704_s5 + $0x678] sm:$0xff] }
 0x2a3   : > { %v9082_v37 = vld [vmem:[%s18704_s5 + $0xd8] sm:$0xff]  ;;  %v15123_v32 = vpack.c.bf16 %v9262_v2, %v9260_v6 }
 0x2a4   : > { %14940 = vmatprep.subr.bf16.mxu0 %v14939_v1  ;;  %v14973_v1 = vpack.c.bf16 %v9109_v34, %v9107_v5  ;;  %v9264_v34 = vld [vmem:[%s18704_s5 + $0x688] sm:$0xff] }
 0x2ad   : > { %v8262_v38 = vpop.f32.mrb[46].mxu1 }
 0x2ae   : > { %v8272_v39 = vadd.f32 %v8262_v38, %v7932_v36  ;;  %v14639_v40 = vpop.f32.mrb[47].mxu1  ;;  %v9080_v36 = vld [vmem:[%s18704_s5 + $0xc8] sm:$0xff]  ;;  %v14941_v38 = vpack.c.bf16 %v9077_v35, %v9075_v9  ;;  %v9114_v35 = vld [vmem:[%s18704_s5 + $0x1d8] sm:$0xff] }
 0x2af   : > { %v9079_v40 = vld [vmem:[%s18704_s5 + $0xc0] sm:$0xff]  ;;  %v9112_v9 = vld [vmem:[%s18704_s5 + $0x1c8] sm:$0xff] }
 0x2b0   : > { %14942 = vmatpush1.bf16.msra.mxu0 %v14941_v38  ;;  %v9113_v38 = vld [vmem:[%s18704_s5 + $0x1d0] sm:$0xff] }
 0x2bb   : > { %v8602_v41 = vpop.f32.mrb[48].mxu1 }
 0x2bc   : > { %v8612_v42 = vadd.f32 %v8602_v41, %v8272_v39  ;;  %v14644_v43 = vpop.f32.mrb[49].mxu1  ;;  %v14943_v39 = vpack.c.bf16 %v9082_v37, %v9080_v36  ;;  %v9081_v41 = vld [vmem:[%s18704_s5 + $0xd0] sm:$0xff]  ;;  %v9111_v36 = vld [vmem:[%s18704_s5 + $0x1c0] sm:$0xff]  ;;  %v14975_v37 = vpack.c.bf16 %v9114_v35, %v9112_v9 }
 0x2bd   : > { %v9086_v43 = vld [vmem:[%s18704_s5 + $0xf8] sm:$0xff]  ;;  %v9263_v35 = vld [vmem:[%s18704_s5 + $0x680] sm:$0xff] }
 0x2be   : > { %14944 = vmatprep.subr.bf16.mxu0 %v14943_v39  ;;  %v14977_v39 = vpack.c.bf16 %v9113_v38, %v9111_v36  ;;  %v9265_v36 = vld [vmem:[%s18704_s5 + $0x690] sm:$0xff]  ;;  %v9268_v38 = vld [vmem:[%s18704_s5 + $0x6a8] sm:$0xff] }
 0x2c3   : > { %v8729_v45 = vpop.f32.mrb[0].mxu0 }
 0x2c4   : > { %v8731_v46 = vpop.f32.mrb[1].mxu0  ;;  %v16981_v54 = vadd.f32 %v16967_v44, %v8729_v45  ;;  %v14945_v45 = vpack.c.bf16 %v9081_v41, %v9079_v40  ;;  %v9116_v41 = vld [vmem:[%s18704_s5 + $0x1e8] sm:$0xff] }
 0x2c5   : > { %v16970_v47 = vadd.f32 %v16967_v44, %v8731_v46  ;;  %v8800_v48 = vpop.f32.mrb[0].mxu1 }
 0x2c6   : > { %v16973_v49 = vadd.f32 %v16967_v44, %v8800_v48  ;;  %v8802_v50 = vpop.f32.mrb[1].mxu1  ;;  %v8966_v62 = vmax.f32 %v16981_v54, 0.0  ;;  %v9083_v48 = vld [vmem:[%s18704_s5 + $0xe0] sm:$0xff]  ;;  %14946 = vmatpush1.bf16.msra.mxu0 %v14945_v45  ;;  %v9122_v54 = vld [vmem:[%s18704_s5 + $0x218] sm:$0xff] }
 0x2c7   : > { %v8967_v51 = vmax.f32 %v16970_v47, 0.0  ;;  %v16977_v52 = vadd.f32 %v16967_v44, %v8802_v50  ;;  %v9085_v50 = vld [vmem:[%s18704_s5 + $0xf0] sm:$0xff] }
 0x2c8   : > { %v8968_v53 = vmax.f32 %v16973_v49, 0.0 }
 0x2c9   : > { %v16983_v55 = vpop.f32.mrb[2].mxu0  ;;  %v8942_v56 = vpop.f32.mrb[50].mxu1  ;;  %v8969_v58 = vmax.f32 %v16977_v52, 0.0  ;;  %v9129_v52 = vld [vmem:[%s18704_s5 + $0x250] sm:$0xff] }
 0x2ca   : > { %v15678_v57 = vpack.i.bf16 %v8968_v53, %v8967_v51  ;;  %v16990_v59 = vadd.f32 %v8942_v56, %v8612_v42  ;;  %v16992_v60 = vpop.f32.mrb[3].mxu0  ;;  %v14649_v61 = vpop.f32.mrb[51].mxu1  ;;  %v9084_v42 = vld [vmem:[%s18704_s5 + $0xe8] sm:$0xff]  ;;  %v17200_v8 = vadd.f32 %v16967_v44, %v16983_v55 }
 0x2cb   : > { %v15683_v63 = vpack.i.bf16 %v8966_v62, %v8969_v58  ;;  %v14947_v46 = vpack.c.bf16 %v9086_v43, %v9084_v42  ;;  %v9088_v56 = vld [vmem:[%s18704_s5 + $0x108] sm:$0xff]  ;;  %v14949_v61 = vpack.c.bf16 %v9085_v50, %v9083_v48  ;;  %v9118_v42 = vld [vmem:[%s18704_s5 + $0x1f8] sm:$0xff]  ;;  %v9115_v48 = vld [vmem:[%s18704_s5 + $0x1e0] sm:$0xff]  ;;  %v17204_v10 = vadd.f32 %v16967_v44, %v16992_v60 }
 0x2cc   : > { %15679 = vrot.lane.b32.xlu1 %v15678_v57, %s18721_s30  ;;  %v9090_v57 = vld [vmem:[%s18704_s5 + $0x118] sm:$0xff]  ;;  %v9117_v50 = vld [vmem:[%s18704_s5 + $0x1f0] sm:$0xff]  ;;  %v8970_v60 = vmax.f32 %v17200_v8, 0.0  ;;  %v9132_v8 = vld [vmem:[%s18704_s5 + $0x268] sm:$0xff] }
 0x2cd   : > { %14948 = vmatprep.subr.bf16.mxu0 %v14947_v46  ;;  %v14979_v46 = vpack.c.bf16 %v9118_v42, %v9116_v41  ;;  %v8971_v15 = vmax.f32 %v17204_v10, 0.0  ;;  %v9267_v41 = vld [vmem:[%s18704_s5 + $0x6a0] sm:$0xff]  ;;  %v9269_v42 = vld [vmem:[%s18704_s5 + $0x6b0] sm:$0x7] }
 0x2ce   : > { %14950 = vmatpush1.bf16.msra.mxu0 %v14949_v61  ;;  %v9135_v10 = vld [vmem:[%s18704_s5 + $0x280] sm:$0xff] }
 0x2cf   : > { %v15693_v49 = vpack.i.bf16 %v8971_v15, %v8970_v60 }
 0x2d0   : > { %15684 = vrot.lane.b32.xlu1 %v15683_v63, %s18721_s30  ;;  %v14951_v63 = vpack.c.bf16 %v9090_v57, %v9088_v56  ;;  %v14981_v56 = vpack.c.bf16 %v9117_v50, %v9115_v48  ;;  %v9119_v50 = vld [vmem:[%s18704_s5 + $0x200] sm:$0xff]  ;;  %s15887_s30 = smov 100  }
 0x2d2   : > { %14952 = vmatprep.subr.bf16.mxu0 %v14951_v63 }
 0x2d3   : > { %14954 = vmatpush1.bf16.msra.mxu0 %v14953_v12 }
 0x2d4   : > { %14956 = vmatprep.subr.bf16.mxu0 %v14955_v13 }
 0x2d7   : > { %14958 = vmatpush1.bf16.msra.mxu0 %v14957_v18  ;;  %v9247_v18 = vld [vmem:[%s18704_s5 + $0x600] sm:$0xff] }
 0x2d8   : > { %14960 = vmatprep.subr.bf16.mxu0 %v14959_v19  ;;  %v9249_v19 = vld [vmem:[%s18704_s5 + $0x610] sm:$0xff] }
 0x2d9   : > { %v15113_v20 = vpack.c.bf16 %v9249_v19, %v9247_v18  ;;  %v9123_v18 = vld [vmem:[%s18704_s5 + $0x220] sm:$0xff]  ;;  %v9125_v19 = vld [vmem:[%s18704_s5 + $0x230] sm:$0xff] }
 0x2db   : > { %14962 = vmatpush1.bf16.msra.mxu0 %v14961_v24  ;;  %v9251_v24 = vld [vmem:[%s18704_s5 + $0x620] sm:$0xff] }
 0x2dc   : > { %14964 = vmatprep.subr.bf16.mxu0 %v14963_v25  ;;  %v9253_v25 = vld [vmem:[%s18704_s5 + $0x630] sm:$0xff] }
 0x2dd   : > { %v15117_v26 = vpack.c.bf16 %v9253_v25, %v9251_v24  ;;  %v14989_v25 = vpack.c.bf16 %v9125_v19, %v9123_v18  ;;  %v9162_v18 = vld [vmem:[%s18704_s5 + $0x358] sm:$0xff] }
 0x2df   : > { %14966 = vmatpush1.bf16.msra.mxu0 %v14965_v30  ;;  %v9255_v30 = vld [vmem:[%s18704_s5 + $0x640] sm:$0xff] }
 0x2e0   : > { %14968 = vmatprep.subr.bf16.mxu0 %v14967_v31  ;;  %v9257_v31 = vld [vmem:[%s18704_s5 + $0x650] sm:$0xff] }
 0x2e1   : > { %v15121_v3 = vpack.c.bf16 %v9257_v31, %v9255_v30  ;;  %v9136_v31 = vld [vmem:[%s18704_s5 + $0x288] sm:$0xff] }
 0x2e3   : > { %14970 = vmatpush1.bf16.msra.mxu0 %v14969_v4  ;;  %v9259_v4 = vld [vmem:[%s18704_s5 + $0x660] sm:$0xff] }
 0x2e4   : > { %14972 = vmatprep.subr.bf16.mxu0 %v14971_v33  ;;  %v9261_v33 = vld [vmem:[%s18704_s5 + $0x670] sm:$0xff] }
 0x2e5   : > { %v15125_v5 = vpack.c.bf16 %v9261_v33, %v9259_v4  ;;  %v9142_v4 = vld [vmem:[%s18704_s5 + $0x2b8] sm:$0xff] }
 0x2e7   : > { %14974 = vmatpush1.bf16.msra.mxu0 %v14973_v1  ;;  %v9266_v1 = vld [vmem:[%s18704_s5 + $0x698] sm:$0xff] }
 0x2e8   : > { %14976 = vmatprep.subr.bf16.mxu0 %v14975_v37  ;;  %v15127_v9 = vpack.c.bf16 %v9266_v1, %v9264_v34  ;;  %v15129_v37 = vpack.c.bf16 %v9265_v36, %v9263_v35  ;;  %v9139_v34 = vld [vmem:[%s18704_s5 + $0x2a0] sm:$0xff]  ;;  %v9141_v1 = vld [vmem:[%s18704_s5 + $0x2b0] sm:$0xff]  ;;  %v9146_v35 = vld [vmem:[%s18704_s5 + $0x2d8] sm:$0xff] }
 0x2e9   : > { %v15005_v36 = vpack.c.bf16 %v9141_v1, %v9139_v34  ;;  %v9180_v34 = vld [vmem:[%s18704_s5 + $0x3e8] sm:$0xff]  ;;  %v9182_v1 = vld [vmem:[%s18704_s5 + $0x3f8] sm:$0xff] }
 0x2eb   : > { %14978 = vmatpush1.bf16.msra.mxu0 %v14977_v39  ;;  %v9270_v39 = vld [vmem:[%s18704_s5 + $0x6b8] sm:$0x7] }
 0x2ec   : > { %14980 = vmatprep.subr.bf16.mxu0 %v14979_v46 }
 0x2ef   : > { %14982 = vmatpush1.bf16.msra.mxu0 %v14981_v56  ;;  %v9121_v56 = vld [vmem:[%s18704_s5 + $0x210] sm:$0xff] }
 0x33e   : > { %v15680_v40 = vpop.permute.xlu1 %15679 }
 0x33f   : > { %v15682_v43 = vunpack.i.h.bf16 %v15680_v40  ;;  %v15681_v45 = vunpack.i.l.bf16 %v15680_v40  ;;  %v15131_v40 = vpack.c.bf16 %v9270_v39, %v9268_v38  ;;  %v9143_v38 = vld [vmem:[%s18704_s5 + $0x2c0] sm:$0xff]  ;;  %v9145_v39 = vld [vmem:[%s18704_s5 + $0x2d0] sm:$0xff] }
 0x341   : > { %v8995_v61 = vsel %vm466_vm0, %v15681_v45, %v15682_v43 }
 0x342   : > { %v17193_v57 = vpop.permute.xlu1 %15684  ;;  %v17212_v13 = vmax.f32 %v8967_v51, %v8995_v61  ;;  %v17231_v51 = vadd.f32 %v16967_v44, %v16990_v59  ;;  %v9248_v59 = vld [vmem:[%s18704_s5 + $0x608] sm:$0xff] }
 0x343   : > { %v15687_v63 = vunpack.i.h.bf16 %v17193_v57  ;;  %v15686_v7 = vunpack.i.l.bf16 %v17193_v57  ;;  %v15111_v17 = vpack.c.bf16 %v9250_v16, %v9248_v59 }
 0x344   : > { %v8972_v44 = vmax.f32 %v17231_v51, 0.0 }
 0x345   : > { %v8994_v11 = vsel %vm466_vm0, %v15687_v63, %v15681_v45  ;;  %v8996_v12 = vsel %vm466_vm0, %v15682_v43, %v15686_v7  ;;  %15112 = vmatprep.subr.bf16.mxu1 %v15111_v17  ;;  %v15134_v43 = vpack.c.bf16 %v9269_v42, %v9267_v41  ;;  %v9124_v63 = vld [vmem:[%s18704_s5 + $0x228] sm:$0xff]  ;;  %v9150_v41 = vld [vmem:[%s18704_s5 + $0x2f8] sm:$0xff]  ;;  %v15009_v42 = vpack.c.bf16 %v9145_v39, %v9143_v38 }
 0x346   : > { %v17216_v14 = vmax.f32 %v8966_v62, %v8994_v11  ;;  %v17220_v55 = vmax.f32 %v8968_v53, %v8996_v12  ;;  %v9120_v53 = vld [vmem:[%s18704_s5 + $0x208] sm:$0xff]  ;;  %15114 = vmatpush1.bf16.msra.mxu1 %v15113_v20  ;;  %v9126_v11 = vld [vmem:[%s18704_s5 + $0x238] sm:$0xff] }
 0x347   : > { %v14983_v62 = vpack.c.bf16 %v9122_v54, %v9120_v53  ;;  %15116 = vmatprep.subr.bf16.mxu1 %v15115_v23  ;;  %v14987_v17 = vpack.c.bf16 %v9126_v11, %v9124_v63  ;;  %v9184_v38 = vld [vmem:[%s18704_s5 + $0x408] sm:$0xff]  ;;  %v9186_v39 = vld [vmem:[%s18704_s5 + $0x418] sm:$0xff] }
 0x348   : > { %9021 = vrot.lane.b32.xlu1 %v17216_v14, %s18735_s2  ;;  %v15688_v47 = vpack.i.bf16 %v17220_v55, %v17212_v13 }
 0x349   : > { %14984 = vmatprep.subr.bf16.mxu0 %v14983_v62  ;;  %v14985_v62 = vpack.c.bf16 %v9121_v56, %v9119_v50  ;;  %v9149_v50 = vld [vmem:[%s18704_s5 + $0x2f0] sm:$0xff]  ;;  %v9152_v56 = vld [vmem:[%s18704_s5 + $0x308] sm:$0xff] }
 0x34a   : > { %15689 = vrot.lane.b32.xlu0 %v15688_v47, %s18735_s2  ;;  %15118 = vmatpush1.bf16.msra.mxu1 %v15117_v26 }
 0x34b   : > { %15120 = vmatprep.subr.bf16.mxu1 %v15119_v29  ;;  %v9133_v29 = vld [vmem:[%s18704_s5 + $0x270] sm:$0xff] }
 0x34c   : > { %v14997_v6 = vpack.c.bf16 %v9133_v29, %v9131_v28  ;;  %v9172_v28 = vld [vmem:[%s18704_s5 + $0x3a8] sm:$0xff]  ;;  %v9174_v29 = vld [vmem:[%s18704_s5 + $0x3b8] sm:$0xff] }
 0x34e   : > { %15694 = vrot.lane.b32.xlu0 %v15693_v49, %s18736_s22  ;;  %15122 = vmatpush1.bf16.msra.mxu1 %v15121_v3  ;;  %v9138_v3 = vld [vmem:[%s18704_s5 + $0x298] sm:$0xff] }
 0x34f   : > { %15124 = vmatprep.subr.bf16.mxu1 %v15123_v32  ;;  %v14999_v2 = vpack.c.bf16 %v9138_v3, %v9136_v31  ;;  %v9140_v32 = vld [vmem:[%s18704_s5 + $0x2a8] sm:$0xff]  ;;  %v15035_v3 = vpack.c.bf16 %v9174_v29, %v9172_v28 }
 0x352   : > { %8992 = vrot.lane.b32.xlu0 %v8972_v44, %s18736_s22  ;;  %15126 = vmatpush1.bf16.msra.mxu1 %v15125_v5  ;;  %v15003_v5 = vpack.c.bf16 %v9142_v4, %v9140_v32 }
 0x353   : > { %15128 = vmatprep.subr.bf16.mxu1 %v15127_v9  ;;  %v9144_v9 = vld [vmem:[%s18704_s5 + $0x2c8] sm:$0xff] }
 0x356   : > { %15130 = vmatpush1.bf16.msra.mxu1 %v15129_v37  ;;  %v15007_v37 = vpack.c.bf16 %v9146_v35, %v9144_v9  ;;  %v15043_v35 = vpack.c.bf16 %v9182_v1, %v9180_v34 }
 0x357   : > { %15133 = vmatprep.subr.msk.bf16.mxu1 %vm15132_vm14, %v15131_v40  ;;  %v9148_v40 = vld [vmem:[%s18704_s5 + $0x2e8] sm:$0xff] }
 0x35a   : > { %15136 = vmatpush1.bf16.msk.msra.mxu1 %vm15132_vm14, %v15134_v43  ;;  %v15011_v43 = vpack.c.bf16 %v9150_v41, %v9148_v40  ;;  %v15047_v41 = vpack.c.bf16 %v9186_v39, %v9184_v38  ;;  %vm10857_vm14 = vcmask 793600  }
 0x3ba   : > { %v9022_v61 = vpop.permute.xlu1 %9021 }
 0x3bc   : > { %v17322_v45 = vpop.permute.xlu0 %15689 }
 0x3bd   : > { %v15692_v46 = vunpack.i.h.bf16 %v17322_v45  ;;  %v15691_v48 = vunpack.i.l.bf16 %v17322_v45  ;;  %v9187_v45 = vld [vmem:[%s18704_s5 + $0x420] sm:$0xff] }
 0x3bf   : > { %v9035_v12 = vsel %vm2128_vm7, %v9022_v61, %v15691_v48  ;;  %v9036_v47 = vsel %vm2128_vm7, %v15691_v48, %v15692_v46  ;;  %v9147_v48 = vld [vmem:[%s18704_s5 + $0x2e0] sm:$0xff]  ;;  %v9154_v61 = vld [vmem:[%s18704_s5 + $0x318] sm:$0xff] }
 0x3c0   : > { %v9048_v49 = vmax.f32 %v17216_v14, %v9035_v12  ;;  %v15695_v53 = vpop.permute.xlu0 %15694  ;;  %v9049_v54 = vmax.f32 %v17212_v13, %v9036_v47  ;;  %v9128_v14 = vld [vmem:[%s18704_s5 + $0x248] sm:$0xff]  ;;  %v9130_v13 = vld [vmem:[%s18704_s5 + $0x258] sm:$0xff]  ;;  %v15013_v63 = vpack.c.bf16 %v9149_v50, %v9147_v48  ;;  %v15015_v11 = vpack.c.bf16 %v9154_v61, %v9152_v56  ;;  %v9151_v12 = vld [vmem:[%s18704_s5 + $0x300] sm:$0xff] }
 0x3c1   : > { %v15697_v59 = vunpack.i.h.bf16 %v15695_v53  ;;  %v15696_v16 = vunpack.i.l.bf16 %v15695_v53  ;;  %v14991_v57 = vpack.c.bf16 %v9130_v13, %v9128_v14  ;;  %v9153_v47 = vld [vmem:[%s18704_s5 + $0x310] sm:$0xff]  ;;  %v9158_v53 = vld [vmem:[%s18704_s5 + $0x338] sm:$0xff]  ;;  %v9159_v13 = vld [vmem:[%s18704_s5 + $0x340] sm:$0xff] }
 0x3c2   : > { %9345 = vmatprep.mubr.f32.mxu0 %v9049_v54  ;;  %v15017_v54 = vpack.c.bf16 %v9153_v47, %v9151_v12  ;;  %v9183_v61 = vld [vmem:[%s18704_s5 + $0x400] sm:$0xff] }
 0x3c3   : > { %v8997_v20 = vsel %vm466_vm0, %v15686_v7, %v15696_v16  ;;  %v8998_v21 = vsel %vm466_vm0, %v15696_v16, %v15697_v59  ;;  %9346 = vmatmul.mubr.f32.vlgmr.msra.gmra.mrb[4].mxu0 %v9048_v49  ;;  %v9127_v7 = vld [vmem:[%s18704_s5 + $0x240] sm:$0xff]  ;;  %v9156_v49 = vld [vmem:[%s18704_s5 + $0x328] sm:$0xff]  ;;  %v9157_v16 = vld [vmem:[%s18704_s5 + $0x330] sm:$0xff] }
 0x3c4   : > { %v17362_v22 = vmax.f32 %v8969_v58, %v8997_v20  ;;  %v17366_v23 = vmax.f32 %v8970_v60, %v8998_v21  ;;  %v8993_v24 = vpop.permute.xlu0 %8992  ;;  %14986 = vmatpush1.bf16.msra.mxu0 %v14985_v62  ;;  %v9134_v60 = vld [vmem:[%s18704_s5 + $0x278] sm:$0xff]  ;;  %v15019_v62 = vpack.c.bf16 %v9158_v53, %v9156_v49  ;;  %v9161_v20 = vld [vmem:[%s18704_s5 + $0x350] sm:$0xff]  ;;  %v9164_v21 = vld [vmem:[%s18704_s5 + $0x368] sm:$0xff] }
 0x3c5   : > { %v17370_v26 = vmax.f32 %v8972_v44, %v8993_v24  ;;  %14988 = vmatprep.subr.bf16.mxu0 %v14987_v17  ;;  %v8999_v51 = vsel %vm466_vm0, %v15697_v59, %v8993_v24  ;;  %v14993_v44 = vpack.c.bf16 %v9129_v52, %v9127_v7  ;;  %v14995_v27 = vpack.c.bf16 %v9134_v60, %v9132_v8  ;;  %v9155_v59 = vld [vmem:[%s18704_s5 + $0x320] sm:$0xff]  ;;  %v9160_v17 = vld [vmem:[%s18704_s5 + $0x348] sm:$0xff]  ;;  %v9166_v24 = vld [vmem:[%s18704_s5 + $0x378] sm:$0xff] }
 0x3c6   : > { %v15698_v58 = vpack.i.bf16 %v17366_v23, %v17362_v22  ;;  %v17398_v30 = vmax.f32 %v8971_v15, %v8999_v51  ;;  %v9137_v15 = vld [vmem:[%s18704_s5 + $0x290] sm:$0xff]  ;;  %v15021_v19 = vpack.c.bf16 %v9157_v16, %v9155_v59  ;;  %v15023_v14 = vpack.c.bf16 %v9162_v18, %v9160_v17  ;;  %v9163_v7 = vld [vmem:[%s18704_s5 + $0x360] sm:$0xff]  ;;  %v9170_v8 = vld [vmem:[%s18704_s5 + $0x398] sm:$0xff] }
 0x3c7   : > { %9033 = vrot.lane.b32.xlu0 %v17370_v26, %s18735_s2  ;;  %v15001_v33 = vpack.c.bf16 %v9137_v15, %v9135_v10  ;;  %v9165_v52 = vld [vmem:[%s18704_s5 + $0x370] sm:$0xff]  ;;  %v9176_v10 = vld [vmem:[%s18704_s5 + $0x3c8] sm:$0xff]  ;;  %v9178_v15 = vld [vmem:[%s18704_s5 + $0x3d8] sm:$0xff] }
 0x3c8   : > { %15699 = vrot.lane.b32.xlu1 %v15698_v58, %s18735_s2  ;;  %14990 = vmatpush1.bf16.msra.mxu0 %v14989_v25  ;;  %v15025_v25 = vpack.c.bf16 %v9161_v20, %v9159_v13  ;;  %v9168_v58 = vld [vmem:[%s18704_s5 + $0x388] sm:$0xff]  ;;  %v15029_v60 = vpack.c.bf16 %v9165_v52, %v9163_v7  ;;  %v15039_v4 = vpack.c.bf16 %v9178_v15, %v9176_v10  ;;  %v9198_v20 = vld [vmem:[%s18704_s5 + $0x478] sm:$0xff] }
 0x3c9   : > { %14992 = vmatprep.subr.bf16.mxu0 %v14991_v57  ;;  %v15027_v57 = vpack.c.bf16 %v9166_v24, %v9164_v21  ;;  %v15031_v51 = vpack.c.bf16 %v9170_v8, %v9168_v58  ;;  %v9196_v13 = vld [vmem:[%s18704_s5 + $0x468] sm:$0xff]  ;;  %v9202_v52 = vld [vmem:[%s18704_s5 + $0x498] sm:$0xff] }
 0x3ca   : > { %v15059_v24 = vpack.c.bf16 %v9198_v20, %v9196_v13  ;;  %v9200_v7 = vld [vmem:[%s18704_s5 + $0x488] sm:$0xff]  ;;  %v9233_v13 = vld [vmem:[%s18704_s5 + $0x590] sm:$0xff] }
 0x3cb   : > { %v15063_v8 = vpack.c.bf16 %v9202_v52, %v9200_v7  ;;  %v9236_v20 = vld [vmem:[%s18704_s5 + $0x5a8] sm:$0xff]  ;;  %v9237_v7 = vld [vmem:[%s18704_s5 + $0x5b0] sm:$0xff] }
 0x3cc   : > { %9031 = vrot.lane.b32.xlu1 %v17398_v30, %s18735_s2  ;;  %14994 = vmatpush1.bf16.msra.mxu0 %v14993_v44  ;;  %v9167_v44 = vld [vmem:[%s18704_s5 + $0x380] sm:$0xff]  ;;  %v9240_v52 = vld [vmem:[%s18704_s5 + $0x5c8] sm:$0xff] }
 0x3cd   : > { %14996 = vmatprep.subr.bf16.mxu0 %v14995_v27  ;;  %v9169_v27 = vld [vmem:[%s18704_s5 + $0x390] sm:$0xff] }
 0x3ce   : > { %v15033_v31 = vpack.c.bf16 %v9169_v27, %v9167_v44  ;;  %v9204_v44 = vld [vmem:[%s18704_s5 + $0x4a8] sm:$0xff]  ;;  %v9206_v27 = vld [vmem:[%s18704_s5 + $0x4b8] sm:$0xff] }
 0x3cf   : > { %v15067_v29 = vpack.c.bf16 %v9206_v27, %v9204_v44  ;;  %v9241_v44 = vld [vmem:[%s18704_s5 + $0x5d0] sm:$0xff]  ;;  %v9244_v27 = vld [vmem:[%s18704_s5 + $0x5e8] sm:$0xff] }
 0x3d0   : > { %14998 = vmatpush1.bf16.msra.mxu0 %v14997_v6  ;;  %v9171_v6 = vld [vmem:[%s18704_s5 + $0x3a0] sm:$0xff] }
 0x3d1   : > { %15000 = vmatprep.subr.bf16.mxu0 %v14999_v2  ;;  %v9173_v2 = vld [vmem:[%s18704_s5 + $0x3b0] sm:$0xff] }
 0x3d2   : > { %v15037_v32 = vpack.c.bf16 %v9173_v2, %v9171_v6  ;;  %v9208_v6 = vld [vmem:[%s18704_s5 + $0x4c8] sm:$0xff]  ;;  %v9210_v2 = vld [vmem:[%s18704_s5 + $0x4d8] sm:$0xff] }
 0x3d3   : > { %v15071_v15 = vpack.c.bf16 %v9210_v2, %v9208_v6  ;;  %v9245_v6 = vld [vmem:[%s18704_s5 + $0x5f0] sm:$0xff] }
 0x3d4   : > { %15002 = vmatpush1.bf16.msra.mxu0 %v15001_v33  ;;  %v9175_v33 = vld [vmem:[%s18704_s5 + $0x3c0] sm:$0xff] }
 0x3d5   : > { %15004 = vmatprep.subr.bf16.mxu0 %v15003_v5  ;;  %v9177_v5 = vld [vmem:[%s18704_s5 + $0x3d0] sm:$0xff] }
 0x3d6   : > { %v15041_v9 = vpack.c.bf16 %v9177_v5, %v9175_v33  ;;  %v9212_v33 = vld [vmem:[%s18704_s5 + $0x4e8] sm:$0xff]  ;;  %v9214_v5 = vld [vmem:[%s18704_s5 + $0x4f8] sm:$0xff] }
 0x3d7   : > { %v15075_v1 = vpack.c.bf16 %v9214_v5, %v9212_v33 }
 0x3d8   : > { %15006 = vmatpush1.bf16.msra.mxu0 %v15005_v36  ;;  %v9179_v36 = vld [vmem:[%s18704_s5 + $0x3e0] sm:$0xff] }
 0x3d9   : > { %15008 = vmatprep.subr.bf16.mxu0 %v15007_v37  ;;  %v9181_v37 = vld [vmem:[%s18704_s5 + $0x3f0] sm:$0xff] }
 0x3da   : > { %v15045_v40 = vpack.c.bf16 %v9181_v37, %v9179_v36  ;;  %v9216_v36 = vld [vmem:[%s18704_s5 + $0x508] sm:$0xff]  ;;  %v9218_v37 = vld [vmem:[%s18704_s5 + $0x518] sm:$0xff] }
 0x3db   : > { %v15079_v39 = vpack.c.bf16 %v9218_v37, %v9216_v36  ;;  %v14100_v36 = vld [vmem:[%s18702_s3 + $0x18] sm:$0xff] }
 0x3dc   : > { %15010 = vmatpush1.bf16.msra.mxu0 %v15009_v42 }
 0x3dd   : > { %15012 = vmatprep.subr.bf16.mxu0 %v15011_v43 }
 0x3e0   : > { %15014 = vmatpush1.bf16.msra.mxu0 %v15013_v63  ;;  %v9185_v63 = vld [vmem:[%s18704_s5 + $0x410] sm:$0xff] }
 0x3e1   : > { %15016 = vmatprep.subr.bf16.mxu0 %v15015_v11  ;;  %v9188_v11 = vld [vmem:[%s18704_s5 + $0x428] sm:$0xff] }
 0x3e4   : > { %15018 = vmatpush1.bf16.msra.mxu0 %v15017_v54 }
 0x3e5   : > { %15020 = vmatprep.subr.bf16.mxu0 %v15019_v62  ;;  %v15049_v62 = vpack.c.bf16 %v9185_v63, %v9183_v61  ;;  %v9219_v63 = vld [vmem:[%s18704_s5 + $0x520] sm:$0xff] }
 0x3e8   : > { %15022 = vmatpush1.bf16.msra.mxu0 %v15021_v19 }
 0x3e9   : > { %15024 = vmatprep.subr.bf16.mxu0 %v15023_v14  ;;  %v9191_v14 = vld [vmem:[%s18704_s5 + $0x440] sm:$0xff] }
 0x3ec   : > { %15026 = vmatpush1.bf16.msra.mxu0 %v15025_v25  ;;  %v9195_v25 = vld [vmem:[%s18704_s5 + $0x460] sm:$0xff] }
 0x3ed   : > { %15028 = vmatprep.subr.bf16.mxu0 %v15027_v57  ;;  %v9197_v57 = vld [vmem:[%s18704_s5 + $0x470] sm:$0xff] }
 0x3ee   : > { %v15061_v58 = vpack.c.bf16 %v9197_v57, %v9195_v25  ;;  %v9235_v57 = vld [vmem:[%s18704_s5 + $0x5a0] sm:$0xff] }
 0x3f0   : > { %15030 = vmatpush1.bf16.msra.mxu0 %v15029_v60  ;;  %v9199_v60 = vld [vmem:[%s18704_s5 + $0x480] sm:$0xff] }
 0x3f1   : > { %15032 = vmatprep.subr.bf16.mxu0 %v15031_v51  ;;  %v9201_v51 = vld [vmem:[%s18704_s5 + $0x490] sm:$0xff] }
 0x3f2   : > { %v15065_v28 = vpack.c.bf16 %v9201_v51, %v9199_v60  ;;  %v9239_v51 = vld [vmem:[%s18704_s5 + $0x5c0] sm:$0xff] }
 0x3f4   : > { %15034 = vmatpush1.bf16.msra.mxu0 %v15033_v31  ;;  %v9203_v31 = vld [vmem:[%s18704_s5 + $0x4a0] sm:$0xff] }
 0x3f5   : > { %15036 = vmatprep.subr.bf16.mxu0 %v15035_v3  ;;  %v9205_v3 = vld [vmem:[%s18704_s5 + $0x4b0] sm:$0xff] }
 0x3f6   : > { %v15069_v10 = vpack.c.bf16 %v9205_v3, %v9203_v31  ;;  %v9243_v3 = vld [vmem:[%s18704_s5 + $0x5e0] sm:$0xff] }
 0x3f7   : > { %v15109_v2 = vpack.c.bf16 %v9245_v6, %v9243_v3  ;;  %v14152_v3 = vld [vmem:[%s18702_s3 + $0x98] sm:$0xff] }
 0x3f8   : > { %15038 = vmatpush1.bf16.msra.mxu0 %v15037_v32  ;;  %v9207_v32 = vld [vmem:[%s18704_s5 + $0x4c0] sm:$0xff] }
 0x3f9   : > { %15040 = vmatprep.subr.bf16.mxu0 %v15039_v4  ;;  %v9209_v4 = vld [vmem:[%s18704_s5 + $0x4d0] sm:$0xff] }
 0x3fa   : > { %v15073_v34 = vpack.c.bf16 %v9209_v4, %v9207_v32 }
 0x3fc   : > { %15042 = vmatpush1.bf16.msra.mxu0 %v15041_v9  ;;  %v9211_v9 = vld [vmem:[%s18704_s5 + $0x4e0] sm:$0xff] }
 0x3fd   : > { %15044 = vmatprep.subr.bf16.mxu0 %v15043_v35  ;;  %v9213_v35 = vld [vmem:[%s18704_s5 + $0x4f0] sm:$0xff] }
 0x3fe   : > { %v15077_v38 = vpack.c.bf16 %v9213_v35, %v9211_v9 }
 0x400   : > { %15046 = vmatpush1.bf16.msra.mxu0 %v15045_v40  ;;  %v9215_v40 = vld [vmem:[%s18704_s5 + $0x500] sm:$0xff] }
 0x401   : > { %15048 = vmatprep.subr.bf16.mxu0 %v15047_v41  ;;  %v9217_v41 = vld [vmem:[%s18704_s5 + $0x510] sm:$0xff] }
 0x439   : > { %v9034_v42 = vpop.permute.xlu0 %9033 }
 0x43a   : > { %v9054_v43 = vmax.f32 %v17370_v26, %v9034_v42  ;;  %v17553_v48 = vpop.permute.xlu1 %15699  ;;  %v9190_v26 = vld [vmem:[%s18704_s5 + $0x438] sm:$0xff] }
 0x43b   : > { %v15702_v50 = vunpack.i.h.bf16 %v17553_v48  ;;  %v15701_v56 = vunpack.i.l.bf16 %v17553_v48  ;;  %v15051_v16 = vpack.c.bf16 %v9190_v26, %v9188_v11  ;;  %v9221_v11 = vld [vmem:[%s18704_s5 + $0x530] sm:$0xff]  ;;  %v9224_v26 = vld [vmem:[%s18704_s5 + $0x548] sm:$0xff] }
 0x43c   : > { %14098 = vmatmul.mubr.msk.f32.vlgmr.msra.gmra.mrb[52].mxu1 %vm9271_vm1, %v9054_v43  ;;  %v9222_v43 = vld [vmem:[%s18704_s5 + $0x538] sm:$0xff]  ;;  %vm11056_vm1 = vcmask 703488  }
 0x43d   : > { %v9037_v12 = vsel %vm2128_vm7, %v15692_v46, %v15701_v56  ;;  %v9038_v47 = vsel %vm2128_vm7, %v15701_v56, %v15702_v50  ;;  %9653 = vmatprep.mubr.f32.mxu1 %v15859_v0  ;;  %v9189_v46 = vld [vmem:[%s18704_s5 + $0x430] sm:$0xff]  ;;  %v15081_v56 = vpack.c.bf16 %v9217_v41, %v9215_v40  ;;  %v9566_v41 = vld [vmem:[%s18702_s3 + $0x8] sm:$0xff] }
 0x43e   : > { %v9050_v49 = vmax.f32 %v17220_v55, %v9037_v12  ;;  %v17577_v53 = vpop.permute.xlu1 %9031  ;;  %v9051_v54 = vmax.f32 %v17362_v22, %v9038_v47  ;;  %v9192_v55 = vld [vmem:[%s18704_s5 + $0x448] sm:$0xff]  ;;  %v9194_v22 = vld [vmem:[%s18704_s5 + $0x458] sm:$0xff]  ;;  %v15053_v18 = vpack.c.bf16 %v9189_v46, %v9187_v45  ;;  %v15085_v47 = vpack.c.bf16 %v9221_v11, %v9219_v63 }
 0x43f   : > { %v9040_v59 = vsel %vm2128_vm7, %v17577_v53, %v9034_v42  ;;  %v15055_v19 = vpack.c.bf16 %v9194_v22, %v9192_v55  ;;  %v9220_v42 = vld [vmem:[%s18704_s5 + $0x528] sm:$0xff]  ;;  %v9226_v12 = vld [vmem:[%s18704_s5 + $0x558] sm:$0xff]  ;;  %v9229_v55 = vld [vmem:[%s18704_s5 + $0x570] sm:$0xff] }
 0x440   : > { %v9053_v17 = vmax.f32 %v17398_v30, %v9040_v59  ;;  %9416 = vmatprep.mubr.f32.mxu0 %v9051_v54  ;;  %v9193_v30 = vld [vmem:[%s18704_s5 + $0x450] sm:$0xff]  ;;  %v15083_v61 = vpack.c.bf16 %v9222_v43, %v9220_v42  ;;  %v9223_v54 = vld [vmem:[%s18704_s5 + $0x540] sm:$0xff]  ;;  %v9228_v59 = vld [vmem:[%s18704_s5 + $0x568] sm:$0xff] }
 0x441   : > { %9417 = vmatmul.mubr.f32.vlgmr.msra.gmra.mrb[4].mxu0 %v9050_v49  ;;  %v15057_v21 = vpack.c.bf16 %v9193_v30, %v9191_v14  ;;  %v15087_v49 = vpack.c.bf16 %v9226_v12, %v9224_v26  ;;  %v9232_v22 = vld [vmem:[%s18704_s5 + $0x588] sm:$0xff]  ;;  %v9231_v30 = vld [vmem:[%s18704_s5 + $0x580] sm:$0xff]  ;;  %v14115_v26 = vld [vmem:[%s18702_s3 + $0x30] sm:$0xff] }
 0x442   : > { %15050 = vmatpush1.bf16.msra.mxu0 %v15049_v62  ;;  %9487 = vmatprep.mubr.f32.mxu0 %v9053_v17  ;;  %v9225_v62 = vld [vmem:[%s18704_s5 + $0x550] sm:$0xff]  ;;  %v9227_v17 = vld [vmem:[%s18704_s5 + $0x560] sm:$0xff]  ;;  %v14110_v63 = vld [vmem:[%s18702_s3 + $0x28] sm:$0xff] }
 0x443   : > { %15052 = vmatprep.subr.bf16.mxu0 %v15051_v16  ;;  %v9230_v16 = vld [vmem:[%s18704_s5 + $0x578] sm:$0xff]  ;;  %v15089_v45 = vpack.c.bf16 %v9225_v62, %v9223_v54  ;;  %v14109_v43 = vld [vmem:[%s18702_s3 + $0x20] sm:$0xff] }
 0x444   : > { %v15091_v46 = vpack.c.bf16 %v9230_v16, %v9228_v59  ;;  %v14121_v62 = vld [vmem:[%s18702_s3 + $0x40] sm:$0xff] }
 0x446   : > { %15054 = vmatpush1.bf16.msra.mxu0 %v15053_v18  ;;  %v9234_v18 = vld [vmem:[%s18704_s5 + $0x598] sm:$0xff] }
 0x447   : > { %15056 = vmatprep.subr.bf16.mxu0 %v15055_v19  ;;  %v15093_v19 = vpack.c.bf16 %v9229_v55, %v9227_v17  ;;  %v15095_v14 = vpack.c.bf16 %v9234_v18, %v9232_v22  ;;  %v14127_v17 = vld [vmem:[%s18702_s3 + $0x50] sm:$0xff]  ;;  %v14128_v18 = vld [vmem:[%s18702_s3 + $0x58] sm:$0xff] }
 0x44a   : > { %15058 = vmatpush1.bf16.msra.mxu0 %v15057_v21  ;;  %v9238_v21 = vld [vmem:[%s18704_s5 + $0x5b8] sm:$0xff] }
 0x44b   : > { %15060 = vmatprep.subr.bf16.mxu0 %v15059_v24  ;;  %v15097_v24 = vpack.c.bf16 %v9233_v13, %v9231_v30  ;;  %v15099_v25 = vpack.c.bf16 %v9238_v21, %v9236_v20  ;;  %v14134_v20 = vld [vmem:[%s18702_s3 + $0x68] sm:$0xff] }
 0x44e   : > { %15062 = vmatpush1.bf16.msra.mxu0 %v15061_v58  ;;  %v9242_v58 = vld [vmem:[%s18704_s5 + $0x5d8] sm:$0xff] }
 0x44f   : > { %15064 = vmatprep.subr.bf16.mxu0 %v15063_v8  ;;  %v15101_v8 = vpack.c.bf16 %v9237_v7, %v9235_v57  ;;  %v15103_v60 = vpack.c.bf16 %v9242_v58, %v9240_v52  ;;  %v14140_v7 = vld [vmem:[%s18702_s3 + $0x78] sm:$0xff]  ;;  %v14145_v58 = vld [vmem:[%s18702_s3 + $0x80] sm:$0xff] }
 0x452   : > { %15066 = vmatpush1.bf16.msra.mxu0 %v15065_v28  ;;  %v9246_v28 = vld [vmem:[%s18704_s5 + $0x5f8] sm:$0xff] }
 0x453   : > { %15068 = vmatprep.subr.bf16.mxu0 %v15067_v29  ;;  %v15105_v29 = vpack.c.bf16 %v9241_v44, %v9239_v51  ;;  %v15107_v31 = vpack.c.bf16 %v9246_v28, %v9244_v27  ;;  %v14146_v51 = vld [vmem:[%s18702_s3 + $0x88] sm:$0xff]  ;;  %v12049_v44 = vld [vmem:[%s18703_s4] sm:$0xff]  ;;  %v14151_v28 = vld [vmem:[%s18702_s3 + $0x90] sm:$0xff] }
 0x456   : > { %15070 = vmatpush1.bf16.msra.mxu0 %v15069_v10  ;;  %v9039_v10 = vsel %vm2128_vm7, %v15702_v50, %v17577_v53  ;;  %v14099_v53 = vld [vmem:[%s18702_s3 + $0x10] sm:$0xff] }
 0x457   : > { %15072 = vmatprep.subr.bf16.mxu0 %v15071_v15  ;;  %v9052_v15 = vmax.f32 %v17366_v23, %v9039_v10  ;;  %v12050_v23 = vld [vmem:[%s18703_s4 + $0x8] sm:$0xff] }
 0x45a   : > { %15074 = vmatpush1.bf16.msra.mxu0 %v15073_v34 }
 0x45b   : > { %15076 = vmatprep.subr.bf16.mxu0 %v15075_v1 }
 0x45e   : > { %15078 = vmatpush1.bf16.msra.mxu0 %v15077_v38  ;;  %v9565_v38 = vld [vmem:[%s18702_s3] sm:$0xff] }
 0x45f   : > { %15080 = vmatprep.subr.bf16.mxu0 %v15079_v39 }
 0x462   : > { %15082 = vmatpush1.bf16.msra.mxu0 %v15081_v56 }
 0x463   : > { %15084 = vmatprep.subr.bf16.mxu0 %v15083_v61 }
 0x466   : > { %15086 = vmatpush1.bf16.msra.mxu0 %v15085_v47 }
 0x467   : > { %15088 = vmatprep.subr.bf16.mxu0 %v15087_v49  ;;  %v14116_v49 = vld [vmem:[%s18702_s3 + $0x38] sm:$0xff] }
 0x46a   : > { %15090 = vmatpush1.bf16.msra.mxu0 %v15089_v45  ;;  %v14122_v45 = vld [vmem:[%s18702_s3 + $0x48] sm:$0xff] }
 0x46b   : > { %15092 = vmatprep.subr.bf16.mxu0 %v15091_v46 }
 0x46e   : > { %15094 = vmatpush1.bf16.msra.mxu0 %v15093_v19 }
 0x46f   : > { %15096 = vmatprep.subr.bf16.mxu0 %v15095_v14  ;;  %v14133_v14 = vld [vmem:[%s18702_s3 + $0x60] sm:$0xff] }
 0x472   : > { %15098 = vmatpush1.bf16.msra.mxu0 %v15097_v24  ;;  %v14139_v24 = vld [vmem:[%s18702_s3 + $0x70] sm:$0xff] }
 0x473   : > { %15100 = vmatprep.subr.bf16.mxu0 %v15099_v25 }
 0x476   : > { %15102 = vmatpush1.bf16.msra.mxu0 %v15101_v8 }
 0x477   : > { %15104 = vmatprep.subr.bf16.mxu0 %v15103_v60 }
 0x47a   : > { %15106 = vmatpush1.bf16.msra.mxu0 %v15105_v29 }
 0x47b   : > { %15108 = vmatprep.subr.bf16.mxu0 %v15107_v31 }
 0x47e   : > { %15110 = vmatpush1.bf16.msra.mxu0 %v15109_v2  ;;  %v14157_v2 = vld [vmem:[%s18702_s3 + $0xa0] sm:$0xff] }
 0x481   : > { %9488 = vmatmul.mubr.f32.vlgmr.msra.gmra.mrb[4].mxu0 %v9052_v15 }
 0x482   : > { %14704 = vmatprep.mubr.msk.f32.mxu0 %vm15869_vm3, %v15859_v0 }
 0x50f   : > { %v9560_v32 = vpop.f32.mrb[52].mxu1 }
 0x510   : > { %v9562_v4 = vpop.f32.mrb[53].mxu1 }
 0x554   : > { %v9489_v33 = vpop.f32.mrb[4].mxu0 }
 0x555   : > { %v17764_v5 = vadd.f32 %v9560_v32, %v9489_v33  ;;  %v9491_v34 = vpop.f32.mrb[5].mxu0  ;;  %v14158_v32 = vld [vmem:[%s18702_s3 + $0xa8] sm:$0xff]  ;;  %v14163_v33 = vld [vmem:[%s18702_s3 + $0xb0] sm:$0xff] }
 0x556   : > { %v17766_v1 = vadd.f32 %v9562_v4, %v9491_v34 }
 0x557   : > { %9572 = vrot.lane.b32.xlu1 %v17764_v5, %s18736_s22 }
 0x558   : > { %9574 = vrot.lane.b32.xlu0 %v17766_v1, %s18736_s22 }
 0x55b   : > { %9756 = vrot.lane.b32.xlu1 %v17764_v5, %s18737_s24 }
 0x55c   : > { %9758 = vrot.lane.b32.xlu0 %v17766_v1, %s18737_s24  ;;  %s15891_s24 = smov 86  }
 0x55f   : > { %9855 = vrot.lane.b32.xlu1 %v17764_v5, %s18738_s15 }
 0x560   : > { %9857 = vrot.lane.b32.xlu0 %v17766_v1, %s18738_s15  ;;  %s15892_s15 = smov 85  }
 0x563   : > { %9954 = vrot.lane.b32.xlu1 %v17764_v5, %s18733_s23 }
 0x564   : > { %9956 = vrot.lane.b32.xlu0 %v17766_v1, %s18733_s23  ;;  %s15886_s23 = smov 110  }
 0x567   : > { %10053 = vrot.lane.b32.xlu1 %v17764_v5, %s15882_s16 }
 0x568   : > { %10055 = vrot.lane.b32.xlu0 %v17766_v1, %s15882_s16 }
 0x56b   : > { %10153 = vrot.lane.b32.xlu1 %v17764_v5, %s15883_s0 }
 0x56c   : > { %10155 = vrot.lane.b32.xlu0 %v17766_v1, %s15883_s0  ;;  %s15893_s0 = smov 84  }
 0x56f   : > { %10253 = vrot.lane.b32.xlu1 %v17764_v5, %s15884_s1 }
 0x570   : > { %10255 = vrot.lane.b32.xlu0 %v17766_v1, %s15884_s1  ;;  %s15894_s1 = smov 83  }
 0x573   : > { %10353 = vrot.lane.b32.xlu1 %v17764_v5, %s15885_s17 }
 0x574   : > { %10355 = vrot.lane.b32.xlu0 %v17766_v1, %s15885_s17  ;;  %s15896_s17 = smov 72  }
 0x577   : > { %10453 = vrot.lane.b32.xlu1 %v17764_v5, %s15886_s23 }
 0x578   : > { %10455 = vrot.lane.b32.xlu0 %v17766_v1, %s15886_s23  ;;  %s15897_s23 = smov 71  }
 0x57b   : > { %10553 = vrot.lane.b32.xlu1 %v17764_v5, %s15887_s30 }
 0x57c   : > { %10555 = vrot.lane.b32.xlu0 %v17766_v1, %s15887_s30  ;;  %s15898_s30 = smov 70  }
 0x57f   : > { %10653 = vrot.lane.b32.xlu1 %v17764_v5, %s15888_s21 }
 0x580   : > { %10655 = vrot.lane.b32.xlu0 %v17766_v1, %s15888_s21  ;;  %s15899_s21 = smov 69  }
 0x583   : > { %10753 = vrot.lane.b32.xlu1 %v17764_v5, %s15889_s27 }
 0x584   : > { %10755 = vrot.lane.b32.xlu0 %v17766_v1, %s15889_s27  ;;  %s15900_s27 = smov 68  }
 0x587   : > { %10853 = vrot.lane.b32.xlu1 %v17764_v5, %s15890_s20 }
 0x588   : > { %10855 = vrot.lane.b32.xlu0 %v17766_v1, %s15890_s20 }
 0x58b   : > { %10953 = vrot.lane.b32.xlu1 %v17764_v5, %s18735_s2 }
 0x58c   : > { %10955 = vrot.lane.b32.xlu0 %v17766_v1, %s18735_s2  ;;  %s15895_s2 = smov 82  }
 0x58f   : > { %11052 = vrot.lane.b32.xlu1 %v17764_v5, %s15891_s24 }
 0x590   : > { %11054 = vrot.lane.b32.xlu0 %v17766_v1, %s15891_s24 }
 0x593   : > { %11152 = vrot.lane.b32.xlu1 %v17764_v5, %s15892_s15 }
 0x594   : > { %11154 = vrot.lane.b32.xlu0 %v17766_v1, %s15892_s15 }
 0x597   : > { %11252 = vrot.lane.b32.xlu1 %v17764_v5, %s15893_s0 }
 0x598   : > { %11254 = vrot.lane.b32.xlu0 %v17766_v1, %s15893_s0 }
 0x59b   : > { %11352 = vrot.lane.b32.xlu1 %v17764_v5, %s15894_s1 }
 0x59c   : > { %11354 = vrot.lane.b32.xlu0 %v17766_v1, %s15894_s1 }
 0x59f   : > { %11452 = vrot.lane.b32.xlu1 %v17764_v5, %s15895_s2 }
 0x5a0   : > { %11454 = vrot.lane.b32.xlu0 %v17766_v1, %s15895_s2 }
 0x5a3   : > { %11552 = vrot.lane.b32.xlu1 %v17764_v5, %s15896_s17 }
 0x5a4   : > { %11554 = vrot.lane.b32.xlu0 %v17766_v1, %s15896_s17 }
 0x5a7   : > { %11652 = vrot.lane.b32.xlu1 %v17764_v5, %s15897_s23 }
 0x5a8   : > { %11654 = vrot.lane.b32.xlu0 %v17766_v1, %s15897_s23  ;;  %s14345_s23 = sshll.u32 %s15994_s29, 4  ;;  %s15902_s29 = smov [#allocation2]  }
 0x5a9   : > { %s18656_s20 = scalar_lea.hbm %s18712_s13, %s14345_s23  ;;  %s15799_s0 = sshll.u32 %s15902_s29, 4  ;;  %s15800_s0 = int_to_ptr.vmem [resolvable:$false] %s15799_s0 }
 0x5aa   : > { %s15801_s1 = scalar_lea.vmem %s15800_s0, 32 }
 0x5ab   : > { %11752 = vrot.lane.b32.xlu1 %v17764_v5, %s15898_s30 }
 0x5ac   : > { %11754 = vrot.lane.b32.xlu0 %v17766_v1, %s15898_s30 }
 0x5af   : > { %11852 = vrot.lane.b32.xlu1 %v17764_v5, %s15899_s21 }
 0x5b0   : > { %11854 = vrot.lane.b32.xlu0 %v17766_v1, %s15899_s21 }
 0x5b3   : > { %11952 = vrot.lane.b32.xlu1 %v17764_v5, %s15900_s27 }
 0x5b4   : > { %11954 = vrot.lane.b32.xlu0 %v17766_v1, %s15900_s27 }
 0x5b7   : > { %12053 = vperm.xlu1 %15703, %v12049_v44  }
 0x5b8   : > { %12058 = vperm.xlu0 %15677, %v12050_v23  }
 0x5c9   : > { %v9573_v48 = vpop.permute.xlu1 %9572 }
 0x5ca   : > { %v9575_v50 = vpop.permute.xlu0 %9574 }
 0x5cb   : > { %v9576_v9 = vsel %vm466_vm0, %v9573_v48, %v9575_v50  ;;  %14101 = vmatprep.subr.msk.mxu1 %vm9584_vm15, %v9575_v50  ;;  %v14169_v48 = vld [vmem:[%s18702_s3 + $0xc0] sm:$0xff] }
 0x5cc   : > { %14102 = vmatpush1.msk.msra.mxu1 %vm9584_vm15, %v9576_v9  ;;  %v14170_v9 = vld [vmem:[%s18702_s3 + $0xc8] sm:$0xff] }
 0x5cd   : > { %14103 = vmatmul.mubr.msk.f32.vlgmr.msra.gmra.mrb[54].mxu1 %vm9577_vm8, %v14099_v53  ;;  %14105 = vmatprep.subr.msk.mxu1 %vm9584_vm15, %v17766_v1  ;;  %v9757_v37 = vpop.permute.xlu1 %9756  ;;  %v14164_v1 = vld [vmem:[%s18702_s3 + $0xb8] sm:$0xff] }
 0x5ce   : > { %14106 = vmatpush1.msk.msra.mxu1 %vm9584_vm15, %v17764_v5  ;;  %v9759_v35 = vpop.permute.xlu0 %9758  ;;  %9659 = vmatprep.mubr.f32.mxu1 %v15859_v0 }
 0x5cf   : > { %14111 = vmatprep.subr.msk.mxu1 %vm9584_vm15, %v9759_v35  ;;  %v9760_v39 = vsel %vm1102_vm4, %v9757_v37, %v9759_v35  ;;  %vm10057_vm4 = vcmask 932864  }
 0x5d1   : > { %14104 = vmatmul.mubr.msk.f32.gmra.mrb[56].mxu1 %vm9577_vm8, %v14100_v36  ;;  %v9856_v42 = vpop.permute.xlu1 %9855  ;;  %v14175_v36 = vld [vmem:[%s18702_s3 + $0xd0] sm:$0xff] }
 0x5d2   : > { %9740 = vmatprep.mubr.f32.mxu1 %v15859_v0  ;;  %v9858_v40 = vpop.permute.xlu0 %9857 }
 0x5d3   : > { %v9859_v56 = vsel %vm1443_vm5, %v9856_v42, %v9858_v40  ;;  %vm10157_vm5 = vcmask 924672  }
 0x5d5   : > { %14107 = vmatmul.mubr.msk.f32.vlgmr.msra.gmra.mrb[54].mxu1 %vm9577_vm8, %v9565_v38  ;;  %v9955_v11 = vpop.permute.xlu1 %9954 }
 0x5d6   : > { %14112 = vmatpush1.msk.msra.mxu1 %vm9584_vm15, %v9760_v39  ;;  %9746 = vmatprep.mubr.f32.mxu1 %v15859_v0  ;;  %v9957_v61 = vpop.permute.xlu0 %9956  ;;  %v14176_v39 = vld [vmem:[%s18702_s3 + $0xd8] sm:$0xff] }
 0x5d7   : > { %14117 = vmatprep.subr.msk.mxu1 %vm9584_vm15, %v9858_v40  ;;  %v9958_v12 = vsel %vm1784_vm6, %v9955_v11, %v9957_v61  ;;  %vm10257_vm6 = vcmask 916480  }
 0x5d9   : > { %14108 = vmatmul.mubr.msk.f32.gmra.mrb[56].mxu1 %vm9577_vm8, %v9566_v41  ;;  %v10054_v54 = vpop.permute.xlu1 %10053  ;;  %v14181_v41 = vld [vmem:[%s18702_s3 + $0xe0] sm:$0xff] }
 0x5da   : > { %9835 = vmatprep.mubr.f32.mxu1 %v15859_v0  ;;  %v10056_v47 = vpop.permute.xlu0 %10055 }
 0x5db   : > { %v10058_v59 = vsel %vm10057_vm4, %v10054_v54, %v10056_v47 }
 0x5dd   : > { %14113 = vmatmul.mubr.msk.f32.vlgmr.msra.gmra.mrb[54].mxu1 %vm9577_vm8, %v14109_v43  ;;  %v10154_v46 = vpop.permute.xlu1 %10153 }
 0x5de   : > { %14118 = vmatpush1.msk.msra.mxu1 %vm9584_vm15, %v9859_v56  ;;  %9841 = vmatprep.mubr.f32.mxu1 %v15859_v0  ;;  %v10156_v16 = vpop.permute.xlu0 %10155  ;;  %v14182_v56 = vld [vmem:[%s18702_s3 + $0xe8] sm:$0xff] }
 0x5df   : > { %14123 = vmatprep.subr.msk.mxu1 %vm9584_vm15, %v9957_v61  ;;  %v10158_v55 = vsel %vm10157_vm5, %v10154_v46, %v10156_v16  ;;  %vm11256_vm5 = vcmask 687104  }
 0x5e1   : > { %14114 = vmatmul.mubr.msk.f32.gmra.mrb[56].mxu1 %vm9577_vm8, %v14110_v63  ;;  %v10254_v19 = vpop.permute.xlu1 %10253  ;;  %v14187_v63 = vld [vmem:[%s18702_s3 + $0xf0] sm:$0xff] }
 0x5e2   : > { %9934 = vmatprep.mubr.f32.mxu1 %v15859_v0  ;;  %v10256_v22 = vpop.permute.xlu0 %10255 }
 0x5e3   : > { %v10258_v30 = vsel %vm10257_vm6, %v10254_v19, %v10256_v22  ;;  %vm11356_vm6 = vcmask 678912  }
 0x5e5   : > { %14119 = vmatmul.mubr.msk.f32.vlgmr.msra.gmra.mrb[54].mxu1 %vm9577_vm8, %v14115_v26  ;;  %v10354_v21 = vpop.permute.xlu1 %10353 }
 0x5e6   : > { %14124 = vmatpush1.msk.msra.mxu1 %vm9584_vm15, %v9958_v12  ;;  %9940 = vmatprep.mubr.f32.mxu1 %v15859_v0  ;;  %v10356_v13 = vpop.permute.xlu0 %10355  ;;  %v14188_v12 = vld [vmem:[%s18702_s3 + $0xf8] sm:$0xff] }
 0x5e7   : > { %14129 = vmatprep.subr.msk.mxu1 %vm9584_vm15, %v10056_v47  ;;  %v10358_v25 = vsel %vm10357_vm9, %v10354_v21, %v10356_v13  ;;  %vm11456_vm9 = vcmask 670720  }
 0x5e9   : > { %14120 = vmatmul.mubr.msk.f32.gmra.mrb[56].mxu1 %vm9577_vm8, %v14116_v49  ;;  %v10454_v52 = vpop.permute.xlu1 %10453  ;;  %v14193_v49 = vld [vmem:[%s18702_s3 + $0x100] sm:$0xff] }
 0x5ea   : > { %10033 = vmatprep.mubr.f32.mxu1 %v15859_v0  ;;  %v10456_v57 = vpop.permute.xlu0 %10455 }
 0x5eb   : > { %v10458_v8 = vsel %vm10457_vm10, %v10454_v52, %v10456_v57  ;;  %vm11556_vm10 = vcmask 588800  }
 0x5ed   : > { %14125 = vmatmul.mubr.msk.f32.vlgmr.msra.gmra.mrb[54].mxu1 %vm9577_vm8, %v14121_v62  ;;  %v10554_v27 = vpop.permute.xlu1 %10553 }
 0x5ee   : > { %14130 = vmatpush1.msk.msra.mxu1 %vm9584_vm15, %v10058_v59  ;;  %10039 = vmatprep.mubr.f32.mxu1 %v15859_v0  ;;  %v10556_v60 = vpop.permute.xlu0 %10555  ;;  %v14194_v59 = vld [vmem:[%s18702_s3 + $0x108] sm:$0xff] }
 0x5ef   : > { %14135 = vmatprep.subr.msk.mxu1 %vm9584_vm15, %v10156_v16  ;;  %v10558_v29 = vsel %vm10557_vm11, %v10554_v27, %v10556_v60  ;;  %vm11656_vm11 = vcmask 580608  }
 0x5f1   : > { %14126 = vmatmul.mubr.msk.f32.gmra.mrb[56].mxu1 %vm9577_vm8, %v14122_v45  ;;  %v10654_v6 = vpop.permute.xlu1 %10653  ;;  %v14199_v45 = vld [vmem:[%s18702_s3 + $0x110] sm:$0xff] }
 0x5f2   : > { %10133 = vmatprep.mubr.f32.mxu1 %v15859_v0  ;;  %v10656_v31 = vpop.permute.xlu0 %10655 }
 0x5f3   : > { %v10658_v10 = vsel %vm10657_vm12, %v10654_v6, %v10656_v31  ;;  %vm11756_vm12 = vcmask 572416  }
 0x5f5   : > { %14131 = vmatmul.mubr.msk.f32.vlgmr.msra.gmra.mrb[54].mxu1 %vm9577_vm8, %v14127_v17  ;;  %v10754_v4 = vpop.permute.xlu1 %10753 }
 0x5f6   : > { %14136 = vmatpush1.msk.msra.mxu1 %vm9584_vm15, %v10158_v55  ;;  %10139 = vmatprep.mubr.f32.mxu1 %v15859_v0  ;;  %v10756_v15 = vpop.permute.xlu0 %10755  ;;  %v14200_v55 = vld [vmem:[%s18702_s3 + $0x118] sm:$0xff] }
 0x5f7   : > { %14141 = vmatprep.subr.msk.mxu1 %vm9584_vm15, %v10256_v22  ;;  %v10758_v5 = vsel %vm10757_vm13, %v10754_v4, %v10756_v15  ;;  %vm11856_vm13 = vcmask 564224   ;;  %v14236_v4 = vld [vmem:[%s18702_s3 + $0x178] sm:$0xff] }
 0x5f9   : > { %14132 = vmatmul.mubr.msk.f32.gmra.mrb[56].mxu1 %vm9577_vm8, %v14128_v18  ;;  %v10854_v23 = vpop.permute.xlu1 %10853  ;;  %v14205_v18 = vld [vmem:[%s18702_s3 + $0x120] sm:$0xff] }
 0x5fa   : > { %10233 = vmatprep.mubr.f32.mxu1 %v15859_v0  ;;  %v10856_v34 = vpop.permute.xlu0 %10855 }
 0x5fb   : > { %v10858_v50 = vsel %vm10857_vm14, %v10854_v23, %v10856_v34  ;;  %vm11956_vm14 = vcmask 556032   ;;  %v12113_v23 = vld [vmem:[%s18705_s6] sm:$0xff] }
 0x5fd   : > { %14137 = vmatmul.mubr.msk.f32.vlgmr.msra.gmra.mrb[54].mxu1 %vm9577_vm8, %v14133_v14  ;;  %v10954_v35 = vpop.permute.xlu1 %10953 }
 0x5fe   : > { %14142 = vmatpush1.msk.msra.mxu1 %vm9584_vm15, %v10258_v30  ;;  %10239 = vmatprep.mubr.f32.mxu1 %v15859_v0  ;;  %v10956_v53 = vpop.permute.xlu0 %10955  ;;  %v14206_v30 = vld [vmem:[%s18702_s3 + $0x128] sm:$0xff] }
 0x5ff   : > { %14147 = vmatprep.subr.msk.mxu1 %vm9584_vm15, %v10356_v13  ;;  %v10957_v37 = vsel %vm2128_vm7, %v10954_v35, %v10956_v53  ;;  %vm11156_vm7 = vcmask 695296  }
 0x601   : > { %14138 = vmatmul.mubr.msk.f32.gmra.mrb[56].mxu1 %vm9577_vm8, %v14134_v20  ;;  %v11053_v40 = vpop.permute.xlu1 %11052  ;;  %v14211_v20 = vld [vmem:[%s18702_s3 + $0x130] sm:$0xff] }
 0x602   : > { %10333 = vmatprep.mubr.f32.mxu1 %v15859_v0  ;;  %v11055_v38 = vpop.permute.xlu0 %11054 }
 0x603   : > { %v11057_v42 = vsel %vm11056_vm1, %v11053_v40, %v11055_v38  ;;  %v12118_v40 = vld [vmem:[%s18705_s6 + $0x28] sm:$0xff]  ;;  %vm13709_vm1 = vcmask 73728  }
 0x605   : > { %14143 = vmatmul.mubr.msk.f32.vlgmr.msra.gmra.mrb[54].mxu1 %vm9577_vm8, %v14139_v24  ;;  %v11153_v61 = vpop.permute.xlu1 %11152 }
 0x606   : > { %14148 = vmatpush1.msk.msra.mxu1 %vm9584_vm15, %v10358_v25  ;;  %10339 = vmatprep.mubr.f32.mxu1 %v15859_v0  ;;  %v11155_v43 = vpop.permute.xlu0 %11154  ;;  %v14212_v25 = vld [vmem:[%s18702_s3 + $0x138] sm:$0xff] }
 0x607   : > { %14153 = vmatprep.subr.msk.mxu1 %vm9584_vm15, %v10456_v57  ;;  %v11157_v11 = vsel %vm11156_vm7, %v11153_v61, %v11155_v43 }
 0x609   : > { %14144 = vmatmul.mubr.msk.f32.gmra.mrb[56].mxu1 %vm9577_vm8, %v14140_v7  ;;  %v11253_v47 = vpop.permute.xlu1 %11252  ;;  %v14217_v7 = vld [vmem:[%s18702_s3 + $0x140] sm:$0xff] }
 0x60a   : > { %10433 = vmatprep.mubr.f32.mxu1 %v15859_v0  ;;  %v11255_v26 = vpop.permute.xlu0 %11254 }
 0x60b   : > { %v11257_v54 = vsel %vm11256_vm5, %v11253_v47, %v11255_v26  ;;  %v12120_v47 = vld [vmem:[%s18705_s6 + $0x38] sm:$0xff] }
 0x60d   : > { %14149 = vmatmul.mubr.msk.f32.vlgmr.msra.gmra.mrb[54].mxu1 %vm9577_vm8, %v14145_v58  ;;  %v11353_v16 = vpop.permute.xlu1 %11352 }
 0x60e   : > { %14154 = vmatpush1.msk.msra.mxu1 %vm9584_vm15, %v10458_v8  ;;  %10439 = vmatprep.mubr.f32.mxu1 %v15859_v0  ;;  %v11355_v62 = vpop.permute.xlu0 %11354  ;;  %v14218_v8 = vld [vmem:[%s18702_s3 + $0x148] sm:$0xff] }
 0x60f   : > { %14159 = vmatprep.subr.msk.mxu1 %vm9584_vm15, %v10556_v60  ;;  %v11357_v46 = vsel %vm11356_vm6, %v11353_v16, %v11355_v62  ;;  %v12122_v16 = vld [vmem:[%s18705_s6 + $0x48] sm:$0xff] }
 0x611   : > { %14150 = vmatmul.mubr.msk.f32.gmra.mrb[56].mxu1 %vm9577_vm8, %v14146_v51  ;;  %v11453_v22 = vpop.permute.xlu1 %11452  ;;  %v14223_v51 = vld [vmem:[%s18702_s3 + $0x150] sm:$0xff] }
 0x612   : > { %10533 = vmatprep.mubr.f32.mxu1 %v15859_v0  ;;  %v11455_v17 = vpop.permute.xlu0 %11454 }
 0x613   : > { %v11457_v19 = vsel %vm11456_vm9, %v11453_v22, %v11455_v17  ;;  %v12125_v22 = vld [vmem:[%s18705_s6 + $0x60] sm:$0xff] }
 0x615   : > { %14155 = vmatmul.mubr.msk.f32.vlgmr.msra.gmra.mrb[54].mxu1 %vm9577_vm8, %v14151_v28  ;;  %v11553_v13 = vpop.permute.xlu1 %11552  ;;  %v14224_v28 = vld [vmem:[%s18702_s3 + $0x158] sm:$0xff] }
 0x616   : > { %14160 = vmatpush1.msk.msra.mxu1 %vm9584_vm15, %v10558_v29  ;;  %10539 = vmatprep.mubr.f32.mxu1 %v15859_v0  ;;  %v11555_v14 = vpop.permute.xlu0 %11554 }
 0x617   : > { %14165 = vmatprep.subr.msk.mxu1 %vm9584_vm15, %v10656_v31  ;;  %v11557_v21 = vsel %vm11556_vm10, %v11553_v13, %v11555_v14  ;;  %v14229_v31 = vld [vmem:[%s18702_s3 + $0x160] sm:$0xff]  ;;  %v12128_v13 = vld [vmem:[%s18705_s6 + $0x78] sm:$0x1] }
 0x619   : > { %14156 = vmatmul.mubr.msk.f32.gmra.mrb[56].mxu1 %vm9577_vm8, %v14152_v3  ;;  %v11653_v57 = vpop.permute.xlu1 %11652 }
 0x61a   : > { %10633 = vmatprep.mubr.f32.mxu1 %v15859_v0  ;;  %v11655_v24 = vpop.permute.xlu0 %11654 }
 0x61b   : > { %v11657_v52 = vsel %vm11656_vm11, %v11653_v57, %v11655_v24  ;;  %v14253_v57 = vld [vmem:[%s18706_s7 + $0x28] sm:$0xff] }
 0x61d   : > { %14161 = vmatmul.mubr.msk.f32.vlgmr.msra.gmra.mrb[54].mxu1 %vm9577_vm8, %v14157_v2  ;;  %v11753_v60 = vpop.permute.xlu1 %11752  ;;  %v14230_v2 = vld [vmem:[%s18702_s3 + $0x168] sm:$0xff] }
 0x61e   : > { %14166 = vmatpush1.msk.msra.mxu1 %vm9584_vm15, %v10658_v10  ;;  %10639 = vmatprep.mubr.f32.mxu1 %v15859_v0  ;;  %v11755_v58 = vpop.permute.xlu0 %11754 }
 0x61f   : > { %14171 = vmatprep.subr.msk.mxu1 %vm9584_vm15, %v10756_v15  ;;  %v11757_v44 = vsel %vm11756_vm12, %v11753_v60, %v11755_v58  ;;  %v14235_v15 = vld [vmem:[%s18702_s3 + $0x170] sm:$0xff] }
 0x621   : > { %14162 = vmatmul.mubr.msk.f32.gmra.mrb[56].mxu1 %vm9577_vm8, %v14158_v32  ;;  %v11853_v29 = vpop.permute.xlu1 %11852 }
 0x622   : > { %10733 = vmatprep.mubr.f32.mxu1 %v15859_v0  ;;  %v11855_v27 = vpop.permute.xlu0 %11854 }
 0x623   : > { %v11857_v3 = vsel %vm11856_vm13, %v11853_v29, %v11855_v27 }
 0x625   : > { %14167 = vmatmul.mubr.msk.f32.vlgmr.msra.gmra.mrb[54].mxu1 %vm9577_vm8, %v14163_v33  ;;  %v11953_v10 = vpop.permute.xlu1 %11952  ;;  %v14241_v33 = vld [vmem:[%s18702_s3 + $0x180] sm:$0xff] }
 0x626   : > { %14172 = vmatpush1.msk.msra.mxu1 %vm9584_vm15, %v10758_v5  ;;  %10739 = vmatprep.mubr.f32.mxu1 %v15859_v0  ;;  %v11955_v6 = vpop.permute.xlu0 %11954  ;;  %v14242_v5 = vld [vmem:[%s18702_s3 + $0x188] sm:$0xff] }
 0x627   : > { %14177 = vmatprep.subr.msk.mxu1 %vm9584_vm15, %v10856_v34  ;;  %v11957_v32 = vsel %vm11956_vm14, %v11953_v10, %v11955_v6 }
 0x629   : > { %14168 = vmatmul.mubr.msk.f32.gmra.mrb[56].mxu1 %vm9577_vm8, %v14164_v1 }
 0x62a   : > { %10833 = vmatprep.mubr.f32.mxu1 %v15859_v0 }
 0x62d   : > { %14173 = vmatmul.mubr.msk.f32.vlgmr.msra.gmra.mrb[54].mxu1 %vm9577_vm8, %v14169_v48  ;;  %v12114_v48 = vld [vmem:[%s18705_s6 + $0x8] sm:$0xff] }
 0x62e   : > { %14178 = vmatpush1.msk.msra.mxu1 %vm9584_vm15, %v10858_v50  ;;  %10839 = vmatprep.mubr.f32.mxu1 %v15859_v0  ;;  %v12115_v50 = vld [vmem:[%s18705_s6 + $0x10] sm:$0xff]  ;;  %v15137_v35 = vpack.c.bf16 %v12114_v48, %v12113_v23 }
 0x62f   : > { %14183 = vmatprep.subr.msk.mxu1 %vm9584_vm15, %v10956_v53  ;;  %v12218_v48 = vld [vmem:[%s18706_s7 + $0x10] sm:$0xff] }
 0x631   : > { %14174 = vmatmul.mubr.msk.f32.gmra.mrb[56].mxu1 %vm9577_vm8, %v14170_v9 }
 0x632   : > { %10933 = vmatprep.mubr.f32.mxu1 %v15859_v0 }
 0x635   : > { %14179 = vmatmul.mubr.msk.f32.vlgmr.msra.gmra.mrb[54].mxu1 %vm9577_vm8, %v14175_v36  ;;  %v12116_v36 = vld [vmem:[%s18705_s6 + $0x18] sm:$0xff] }
 0x636   : > { %14184 = vmatpush1.msk.msra.mxu1 %vm9584_vm15, %v10957_v37  ;;  %10939 = vmatprep.mubr.f32.mxu1 %v15859_v0  ;;  %v12054_v34 = vpop.permute.xlu1 %12053 }
 0x637   : > { %14189 = vmatprep.subr.msk.mxu1 %vm9584_vm15, %v11055_v38  ;;  %v15141_v38 = vpack.c.bf16 %v12116_v36, %v12115_v50  ;;  %v12219_v50 = vld [vmem:[%s18706_s7 + $0x18] sm:$0x1] }
 0x639   : > { %14180 = vmatmul.mubr.msk.f32.gmra.mrb[56].mxu1 %vm9577_vm8, %v14176_v39  ;;  %v12117_v39 = vld [vmem:[%s18705_s6 + $0x20] sm:$0xff] }
 0x63a   : > { %11032 = vmatprep.mubr.f32.mxu1 %v15859_v0 }
 0x63d   : > { %14185 = vmatmul.mubr.msk.f32.vlgmr.msra.gmra.mrb[54].mxu1 %vm9577_vm8, %v14181_v41 }
 0x63e   : > { %14190 = vmatpush1.msk.msra.mxu1 %vm9584_vm15, %v11057_v42  ;;  %11038 = vmatprep.mubr.f32.mxu1 %v15859_v0  ;;  %v12059_v42 = vpop.permute.xlu0 %12058 }
 0x63f   : > { %14195 = vmatprep.subr.msk.mxu1 %vm9584_vm15, %v11155_v43 }
 0x641   : > { %14186 = vmatmul.mubr.msk.f32.gmra.mrb[56].mxu1 %vm9577_vm8, %v14182_v56 }
 0x642   : > { %11132 = vmatprep.mubr.f32.mxu1 %v15859_v0 }
 0x645   : > { %14191 = vmatmul.mubr.msk.f32.vlgmr.msra.gmra.mrb[54].mxu1 %vm9577_vm8, %v14187_v63 }
 0x646   : > { %14196 = vmatpush1.msk.msra.mxu1 %vm9584_vm15, %v11157_v11  ;;  %11138 = vmatprep.mubr.f32.mxu1 %v15859_v0  ;;  %v15145_v11 = vpack.c.bf16 %v12118_v40, %v12117_v39 }
 0x647   : > { %14201 = vmatprep.subr.msk.mxu1 %vm9584_vm15, %v11255_v26 }
 0x649   : > { %14192 = vmatmul.mubr.msk.f32.gmra.mrb[56].mxu1 %vm9577_vm8, %v14188_v12  ;;  %v12119_v12 = vld [vmem:[%s18705_s6 + $0x30] sm:$0xff] }
 0x64a   : > { %11232 = vmatprep.mubr.f32.mxu1 %v15859_v0 }
 0x64d   : > { %14197 = vmatmul.mubr.msk.f32.vlgmr.msra.gmra.mrb[54].mxu1 %vm9577_vm8, %v14193_v49 }
 0x64e   : > { %14202 = vmatpush1.msk.msra.mxu1 %vm9584_vm15, %v11257_v54  ;;  %11238 = vmatprep.mubr.f32.mxu1 %v15859_v0 }
 0x64f   : > { %14207 = vmatprep.subr.msk.mxu1 %vm9584_vm15, %v11355_v62  ;;  %v15149_v62 = vpack.c.bf16 %v12120_v47, %v12119_v12  ;;  %v14266_v47 = vld [vmem:[%s18706_s7 + $0x70] sm:$0xff] }
 0x651   : > { %14198 = vmatmul.mubr.msk.f32.gmra.mrb[56].mxu1 %vm9577_vm8, %v14194_v59  ;;  %v12121_v59 = vld [vmem:[%s18705_s6 + $0x40] sm:$0xff] }
 0x652   : > { %11332 = vmatprep.mubr.f32.mxu1 %v15859_v0 }
 0x655   : > { %14203 = vmatmul.mubr.msk.f32.vlgmr.msra.gmra.mrb[54].mxu1 %vm9577_vm8, %v14199_v45  ;;  %v15153_v45 = vpack.c.bf16 %v12122_v16, %v12121_v59  ;;  %v14271_v59 = vld [vmem:[%s18706_s7 + $0x88] sm:$0xff] }
 0x656   : > { %14208 = vmatpush1.msk.msra.mxu1 %vm9584_vm15, %v11357_v46  ;;  %11338 = vmatprep.mubr.f32.mxu1 %v15859_v0  ;;  %v12123_v46 = vld [vmem:[%s18705_s6 + $0x50] sm:$0xff] }
 0x657   : > { %14213 = vmatprep.subr.msk.mxu1 %vm9584_vm15, %v11455_v17  ;;  %v12124_v17 = vld [vmem:[%s18705_s6 + $0x58] sm:$0xff] }
 0x659   : > { %14204 = vmatmul.mubr.msk.f32.gmra.mrb[56].mxu1 %vm9577_vm8, %v14200_v55  ;;  %v15157_v55 = vpack.c.bf16 %v12124_v17, %v12123_v46  ;;  %v14272_v46 = vld [vmem:[%s18706_s7 + $0x90] sm:$0xff]  ;;  %v14273_v17 = vld [vmem:[%s18706_s7 + $0x98] sm:$0x1] }
 0x65a   : > { %11432 = vmatprep.mubr.f32.mxu1 %v15859_v0 }
 0x65d   : > { %14209 = vmatmul.mubr.msk.f32.vlgmr.msra.gmra.mrb[54].mxu1 %vm9577_vm8, %v14205_v18  ;;  %v12126_v18 = vld [vmem:[%s18705_s6 + $0x68] sm:$0xff] }
 0x65e   : > { %14214 = vmatpush1.msk.msra.mxu1 %vm9584_vm15, %v11457_v19  ;;  %11438 = vmatprep.mubr.f32.mxu1 %v15859_v0  ;;  %v15161_v19 = vpack.c.bf16 %v12126_v18, %v12125_v22  ;;  %v14276_v22 = vld [vmem:[%s18706_s7 + $0xa0] sm:$0xff]  ;;  %v14277_v18 = vld [vmem:[%s18706_s7 + $0xa8] sm:$0xff] }
 0x65f   : > { %14219 = vmatprep.subr.msk.mxu1 %vm9584_vm15, %v11555_v14  ;;  %v13543_v14 = vld [vmem:[%s18708_s9 + $0x70] sm:$0xff] }
 0x661   : > { %14210 = vmatmul.mubr.msk.f32.gmra.mrb[56].mxu1 %vm9577_vm8, %v14206_v30  ;;  %v12127_v30 = vld [vmem:[%s18705_s6 + $0x70] sm:$0xff] }
 0x662   : > { %11532 = vmatprep.mubr.f32.mxu1 %v15859_v0 }
 0x665   : > { %14215 = vmatmul.mubr.msk.f32.vlgmr.msra.gmra.mrb[54].mxu1 %vm9577_vm8, %v14211_v20  ;;  %v15165_v20 = vpack.c.bf16 %v12128_v13, %v12127_v30  ;;  %v14278_v13 = vld [vmem:[%s18706_s7 + $0xb0] sm:$0xff] }
 0x666   : > { %14220 = vmatpush1.msk.msra.mxu1 %vm9584_vm15, %v11557_v21  ;;  %11538 = vmatprep.mubr.f32.mxu1 %v15859_v0 }
 0x667   : > { %14225 = vmatprep.subr.msk.mxu1 %vm9584_vm15, %v11655_v24  ;;  %v15901_v24 = vmov 0.0|0.0  }
 0x668   : > { %15178 = vmatprep.subr.bf16.mxu0 %v15901_v24 }
 0x669   : > { %14216 = vmatmul.mubr.msk.f32.gmra.mrb[56].mxu1 %vm9577_vm8, %v14212_v25  ;;  %v14252_v25 = vld [vmem:[%s18706_s7 + $0x20] sm:$0xff] }
 0x66a   : > { %11632 = vmatprep.mubr.f32.mxu1 %v15859_v0 }
 0x66d   : > { %14221 = vmatmul.mubr.msk.f32.vlgmr.msra.gmra.mrb[54].mxu1 %vm9577_vm8, %v14217_v7 }
 0x66e   : > { %14226 = vmatpush1.msk.msra.mxu1 %vm9584_vm15, %v11657_v52  ;;  %11638 = vmatprep.mubr.f32.mxu1 %v15859_v0  ;;  %v15179_v52 = vpack.c.bf16 %v14253_v57, %v14252_v25  ;;  %v14282_v25 = vld [vmem:[%s18706_s7 + $0xc0] sm:$0xff]  ;;  %v14283_v57 = vld [vmem:[%s18706_s7 + $0xc8] sm:$0xff] }
 0x66f   : > { %14231 = vmatprep.subr.msk.mxu1 %vm9584_vm15, %v11755_v58 }
 0x670   : > { %15180 = vmatpush3.bf16.msra.mxu0 %v15179_v52 }
 0x671   : > { %14222 = vmatmul.mubr.msk.f32.gmra.mrb[56].mxu1 %vm9577_vm8, %v14218_v8  ;;  %15181 = vmatprep.subr.bf16.mxu0 %v15901_v24 }
 0x672   : > { %11732 = vmatprep.mubr.f32.mxu1 %v15859_v0 }
 0x675   : > { %14227 = vmatmul.mubr.msk.f32.vlgmr.msra.gmra.mrb[54].mxu1 %vm9577_vm8, %v14223_v51 }
 0x676   : > { %14232 = vmatpush1.msk.msra.mxu1 %vm9584_vm15, %v11757_v44  ;;  %11738 = vmatprep.mubr.f32.mxu1 %v15859_v0 }
 0x677   : > { %14237 = vmatprep.subr.msk.mxu1 %vm9584_vm15, %v11855_v27 }
 0x679   : > { %14228 = vmatmul.mubr.msk.f32.gmra.mrb[56].mxu1 %vm9577_vm8, %v14224_v28 }
 0x67a   : > { %11832 = vmatprep.mubr.f32.mxu1 %v15859_v0 }
 0x67d   : > { %14233 = vmatmul.mubr.msk.f32.vlgmr.msra.gmra.mrb[54].mxu1 %vm9577_vm8, %v14229_v31 }
 0x67e   : > { %14238 = vmatpush1.msk.msra.mxu1 %vm9584_vm15, %v11857_v3  ;;  %11838 = vmatprep.mubr.f32.mxu1 %v15859_v0 }
 0x67f   : > { %14243 = vmatprep.subr.msk.mxu1 %vm9584_vm15, %v11955_v6 }
 0x681   : > { %14234 = vmatmul.mubr.msk.f32.gmra.mrb[56].mxu1 %vm9577_vm8, %v14230_v2 }
 0x682   : > { %11932 = vmatprep.mubr.f32.mxu1 %v15859_v0 }
 0x685   : > { %14239 = vmatmul.mubr.msk.f32.vlgmr.msra.gmra.mrb[54].mxu1 %vm9577_vm8, %v14235_v15  ;;  %v12216_v15 = vld [vmem:[%s18706_s7] sm:$0xff] }
 0x686   : > { %14244 = vmatpush1.msk.msra.mxu1 %vm9584_vm15, %v11957_v32  ;;  %11938 = vmatprep.mubr.f32.mxu1 %v15859_v0  ;;  %vm12136_vm15 = vcmask 1040384   ;;  %v12217_v32 = vld [vmem:[%s18706_s7 + $0x8] sm:$0xff] }
 0x687   : > { %15138 = vmatprep.subr.bf16.mxu1 %v15137_v35 }
 0x689   : > { %14240 = vmatmul.mubr.msk.f32.gmra.mrb[56].mxu1 %vm9577_vm8, %v14236_v4 }
 0x68a   : > { %12032 = vmatprep.mubr.f32.mxu1 %v15859_v0 }
 0x68d   : > { %14245 = vmatmul.mubr.msk.f32.vlgmr.msra.gmra.mrb[54].mxu1 %vm9577_vm8, %v14241_v33 }
 0x68e   : > { %12038 = vmatprep.mubr.f32.mxu1 %v15859_v0  ;;  %15140 = vmatpush3.bf16.msra.mxu1 %v15137_v35  ;;  %v14255_v35 = vld [vmem:[%s18706_s7 + $0x38] sm:$0x1] }
 0x68f   : > { %15142 = vmatprep.subr.bf16.mxu1 %v15141_v38 }
 0x691   : > { %14246 = vmatmul.mubr.msk.f32.gmra.mrb[56].mxu1 %vm9577_vm8, %v14242_v5  ;;  %vm18195_vm8 = vmpackc.low %vm12136_vm15, %vm15881_vm2  ;;  %vm12129_vm2 = vcmask 990208  }
 0x692   : > { %15144 = vmatpush3.bf16.msra.mxu1 %v15141_v38  ;;  %v14259_v38 = vld [vmem:[%s18706_s7 + $0x48] sm:$0xff] }
 0x693   : > { %15146 = vmatprep.subr.bf16.mxu1 %v15145_v11 }
 0x696   : > { %15148 = vmatpush3.bf16.msra.mxu1 %v15145_v11  ;;  %v14265_v11 = vld [vmem:[%s18706_s7 + $0x68] sm:$0xff] }
 0x697   : > { %15150 = vmatprep.subr.bf16.mxu1 %v15149_v62 }
 0x69a   : > { %15152 = vmatpush3.bf16.msra.mxu1 %v15149_v62  ;;  %v14270_v62 = vld [vmem:[%s18706_s7 + $0x80] sm:$0xff] }
 0x69b   : > { %15154 = vmatprep.subr.bf16.mxu1 %v15153_v45  ;;  %v15200_v16 = vpack.c.bf16 %v14271_v59, %v14270_v62  ;;  %v14321_v62 = vld [vmem:[%s18706_s7 + $0x198] sm:$0x1] }
 0x69e   : > { %15156 = vmatpush3.bf16.msra.mxu1 %v15153_v45 }
 0x69f   : > { %15158 = vmatprep.subr.bf16.mxu1 %v15157_v55 }
 0x6a2   : > { %15160 = vmatpush3.bf16.msra.mxu1 %v15157_v55  ;;  %v15203_v55 = vpack.c.bf16 %v14273_v17, %v14272_v46  ;;  %v13529_v46 = vld [vmem:[%s18708_s9] sm:$0xff]  ;;  %v13530_v17 = vld [vmem:[%s18708_s9 + $0x8] sm:$0xff] }
 0x6a3   : > { %15162 = vmatprep.subr.bf16.mxu1 %v15161_v19 }
 0x6a6   : > { %15164 = vmatpush3.bf16.msra.mxu1 %v15161_v19  ;;  %v15207_v19 = vpack.c.bf16 %v14277_v18, %v14276_v22  ;;  %v13531_v22 = vld [vmem:[%s18708_s9 + $0x10] sm:$0xff]  ;;  %v13532_v18 = vld [vmem:[%s18708_s9 + $0x18] sm:$0xff] }
 0x6a7   : > { %15167 = vmatprep.subr.msk.bf16.mxu1 %vm18195_vm8, %v15165_v20 }
 0x6aa   : > { %15170 = vmatpush3.bf16.msk.msra.mxu1 %vm18195_vm8, %v15165_v20  ;;  %v14279_v20 = vld [vmem:[%s18706_s7 + $0xb8] sm:$0x1] }
 0x6ab   : > { %15171 = vmatprep.subr.bf16.mxu1 %v15901_v24 }
 0x760   : > { %v12034_v1 = vpop.f32.mrb[54].mxu1 }
 0x761   : > { %v12061_v53 = vadd.f32 %v12054_v34, %v12034_v1  ;;  %v12036_v9 = vpop.f32.mrb[55].mxu1  ;;  %v15172_v1 = vpack.c.bf16 %v12217_v32, %v12216_v15  ;;  %v14296_v32 = vld [vmem:[%s18706_s7 + $0x110] sm:$0xff] }
 0x762   : > { %v12062_v37 = vadd.f32 %v12054_v34, %v12036_v9  ;;  %v14254_v9 = vld [vmem:[%s18706_s7 + $0x30] sm:$0xff] }
 0x763   : > { %v18160_v41 = vmax.f32 %v12061_v53, 0.0  ;;  %v15175_v53 = vpack.c.bf16 %v12219_v50, %v12218_v48  ;;  %v15182_v36 = vpack.c.bf16 %v14255_v35, %v14254_v9  ;;  %v14303_v48 = vld [vmem:[%s18706_s7 + $0x138] sm:$0x1]  ;;  %v14307_v9 = vld [vmem:[%s18706_s7 + $0x148] sm:$0xff] }
 0x764   : > { %v12066_v43 = vmax.f32 %v12062_v37, 0.0  ;;  %v12040_v56 = vpop.f32.mrb[56].mxu1  ;;  %v14258_v37 = vld [vmem:[%s18706_s7 + $0x40] sm:$0xff] }
 0x765   : > { %v12063_v61 = vadd.f32 %v12059_v42, %v12040_v56  ;;  %12071 = vrot.lane.b32.xlu1 %v18160_v41, %s18736_s22  ;;  %v12042_v63 = vpop.f32.mrb[57].mxu1  ;;  %15184 = vmatpush3.bf16.msk.msra.mxu0 %vm18195_vm8, %v15182_v36  ;;  %v14261_v56 = vld [vmem:[%s18706_s7 + $0x58] sm:$0x1] }
 0x766   : > { %v12064_v26 = vadd.f32 %v12059_v42, %v12042_v63  ;;  %12081 = vrot.lane.b32.xlu0 %v12066_v43, %s18736_s22  ;;  %15185 = vmatprep.subr.bf16.mxu0 %v15901_v24  ;;  %v14264_v63 = vld [vmem:[%s18706_s7 + $0x60] sm:$0xff] }
 0x767   : > { %v18171_v49 = vmax.f32 %v12063_v61, 0.0 }
 0x768   : > { %v12068_v54 = vmax.f32 %v12064_v26, 0.0  ;;  %v15193_v26 = vpack.c.bf16 %v14265_v11, %v14264_v63  ;;  %v14315_v63 = vld [vmem:[%s18706_s7 + $0x178] sm:$0x1] }
 0x769   : > { %12073 = vrot.lane.b32.xlu1 %v18171_v49, %s18736_s22 }
 0x76a   : > { %12083 = vrot.lane.b32.xlu0 %v12068_v54, %s18736_s22  ;;  %s431_s22 = sand.u32 1, %s15849_s26  }
 0x76b   : > { %s432_s30 = scalar_lea.vmem [#allocation2], %s431_s22  ;;  %s13724_s24 = scalar_lea.sflag [#allocation3], %s431_s22 }
 0x76c   : > { %s13736_s21 = sshll.u32 %s432_s30, 4  ;;  %s18658_s21 = int_to_ptr.vmem [resolvable:$true] %s13736_s21 }
 0x76d   : > { %s15795_s15 = scalar_lea.vmem %s18658_s21, 16  ;;  %p15802_p0 = scmp.lt.s32.totalorder %s18658_s21, %s15800_s0 }
 0x76e   : > { %p15796_p11 = scmp.ne.s32.totalorder %s18658_s21, %s15795_s15  ;;  %p15803_p1 = scmp.lt.s32.totalorder %s15801_s1, %s15795_s15 }
 0x770   : > { %p15797_p12 = pnand %p15796_p11, %p16011_p5  ;;  %p15804_p2 = por %p15803_p1, %p15802_p0 }
 0x772   : > { %p15798_p13 = pneg %p15797_p12 }
 0x774   : > { %p15805_p3 = pnand %p15804_p2, %p15798_p13 }
 0x7d7   : > { %v12072_v21 = vpop.permute.xlu1 %12071 }
 0x7d8   : > { %v12082_v7 = vpop.permute.xlu0 %12081  ;;  %v12077_v3 = vmax.f32 %v18160_v41, %v12072_v21 }
 0x7d9   : > { %v12085_v58 = vsel %vm466_vm0, %v12072_v21, %v12082_v7  ;;  %v12092_v8 = vmax.f32 %v12066_v43, %v12082_v7  ;;  %v14260_v43 = vld [vmem:[%s18706_s7 + $0x50] sm:$0xff]  ;;  %v15210_v21 = vpack.c.bf16 %v14279_v20, %v14278_v13  ;;  %v15214_v7 = vpack.c.bf16 %v14283_v57, %v14282_v25  ;;  %v14327_v20 = vld [vmem:[%s18706_s7 + $0x1b8] sm:$0x1]  ;;  %v13533_v25 = vld [vmem:[%s18708_s9 + $0x20] sm:$0xff] }
 0x7da   : > { %v12091_v60 = vmax.f32 %v18160_v41, %v12085_v58  ;;  %v15186_v41 = vpack.c.bf16 %v14259_v38, %v14258_v37  ;;  %v15189_v61 = vpack.c.bf16 %v14261_v56, %v14260_v43  ;;  %v14284_v58 = vld [vmem:[%s18706_s7 + $0xd0] sm:$0xff]  ;;  %v14309_v38 = vld [vmem:[%s18706_s7 + $0x158] sm:$0x1]  ;;  %v13534_v57 = vld [vmem:[%s18708_s9 + $0x28] sm:$0xff] }
 0x7db   : > { %v12074_v51 = vpop.permute.xlu1 %12073  ;;  %12101 = vrot.lane.b32.xlu0 %v12092_v8, %s15882_s16  ;;  %v14285_v8 = vld [vmem:[%s18706_s7 + $0xd8] sm:$0x1]  ;;  %v14308_v37 = vld [vmem:[%s18706_s7 + $0x150] sm:$0xff] }
 0x7dc   : > { %12099 = vrot.lane.b32.xlu1 %v12091_v60, %s15882_s16  ;;  %v12084_v44 = vpop.permute.xlu0 %12083  ;;  %v12078_v33 = vmax.f32 %v18171_v49, %v12074_v51  ;;  %v15217_v60 = vpack.c.bf16 %v14285_v8, %v14284_v58  ;;  %v14326_v13 = vld [vmem:[%s18706_s7 + $0x1b0] sm:$0xff]  ;;  %v14331_v58 = vld [vmem:[%s18706_s7 + $0x1c8] sm:$0xff]  ;;  %v15290_v8 = vpack.c.bf16 %v13534_v57, %v13533_v25 }
 0x7dd   : > { %v12086_v27 = vsel %vm466_vm0, %v12074_v51, %v12084_v44  ;;  %v12094_v28 = vmax.f32 %v12068_v54, %v12084_v44  ;;  %vm12220_vm0 = vcmask 203776   ;;  %v14288_v51 = vld [vmem:[%s18706_s7 + $0xe0] sm:$0xff]  ;;  %v14289_v44 = vld [vmem:[%s18706_s7 + $0xe8] sm:$0xff] }
 0x7de   : > { %v12093_v29 = vmax.f32 %v18171_v49, %v12086_v27  ;;  %v14267_v49 = vld [vmem:[%s18706_s7 + $0x78] sm:$0x1]  ;;  %v15221_v27 = vpack.c.bf16 %v14289_v44, %v14288_v51 }
 0x7df   : > { %12105 = vrot.lane.b32.xlu0 %v12094_v28, %s15882_s16  ;;  %v15196_v54 = vpack.c.bf16 %v14267_v49, %v14266_v47  ;;  %v13536_v51 = vld [vmem:[%s18708_s9 + $0x38] sm:$0xff] }
 0x7e0   : > { %12103 = vrot.lane.b32.xlu1 %v12093_v29, %s15882_s16  ;;  %v14290_v29 = vld [vmem:[%s18706_s7 + $0xf0] sm:$0xff] }
 0x84d   : > { %v12102_v31 = vpop.permute.xlu0 %12101 }
 0x84e   : > { %v12100_v6 = vpop.permute.xlu1 %12099 }
 0x84f   : > { %v12107_v2 = vsel %vm10057_vm4, %v12100_v6, %v12102_v31  ;;  %v14291_v31 = vld [vmem:[%s18706_s7 + $0xf8] sm:$0x1]  ;;  %v14294_v6 = vld [vmem:[%s18706_s7 + $0x100] sm:$0xff] }
 0x850   : > { %v12111_v10 = vmax.f32 %v12077_v3, %v12107_v2  ;;  %v15224_v3 = vpack.c.bf16 %v14291_v31, %v14290_v29  ;;  %v14295_v2 = vld [vmem:[%s18706_s7 + $0x108] sm:$0xff]  ;;  %v14333_v29 = vld [vmem:[%s18706_s7 + $0x1d8] sm:$0x1] }
 0x851   : > { %v12106_v4 = vpop.permute.xlu0 %12105 }
 0x852   : > { %v12104_v5 = vpop.permute.xlu1 %12103  ;;  %14682 = vmatprep.mubr.msk.f32.mxu1 %vm12129_vm2, %v12111_v10  ;;  %v15228_v10 = vpack.c.bf16 %v14295_v2, %v14294_v6  ;;  %v13538_v6 = vld [vmem:[%s18708_s9 + $0x48] sm:$0xff] }
 0x853   : > { %v12108_v34 = vsel %vm10057_vm4, %v12104_v5, %v12106_v4  ;;  %v14297_v4 = vld [vmem:[%s18706_s7 + $0x118] sm:$0x1]  ;;  %v14300_v5 = vld [vmem:[%s18706_s7 + $0x120] sm:$0xff]  ;;  %vm13545_vm4 = vcmask 982016  }
 0x854   : > { %v12112_v23 = vmax.f32 %v12078_v33, %v12108_v34  ;;  %v15231_v33 = vpack.c.bf16 %v14297_v4, %v14296_v32  ;;  %v14301_v34 = vld [vmem:[%s18706_s7 + $0x128] sm:$0xff]  ;;  %v13539_v4 = vld [vmem:[%s18708_s9 + $0x50] sm:$0xff] }
 0x856   : > { %14683 = vmatmul.mubr.msk.f32.vlgmr.msra.gmra.mrb[58].mxu1 %vm12129_vm2, %v12112_v23  ;;  %v14302_v23 = vld [vmem:[%s18706_s7 + $0x130] sm:$0xff] }
 0x857   : > { %15173 = vmatpush3.bf16.msra.mxu1 %v15172_v1  ;;  %14693 = vmatprep.mubr.msk.f32.mxu1 %vm15869_vm3, %v15859_v0  ;;  %v15235_v1 = vpack.c.bf16 %v14301_v34, %v14300_v5  ;;  %v15238_v50 = vpack.c.bf16 %v14303_v48, %v14302_v23  ;;  %v14339_v23 = vld [vmem:[%s18706_s7 + $0x1f8] sm:$0x1] }
 0x858   : > { %15174 = vmatprep.subr.bf16.mxu1 %v15901_v24 }
 0x85b   : > { %15177 = vmatpush3.bf16.msk.msra.mxu1 %vm18195_vm8, %v15175_v53  ;;  %v14306_v53 = vld [vmem:[%s18706_s7 + $0x140] sm:$0xff] }
 0x85c   : > { %15283 = vmatprep.subr.bf16.mxu1 %v15901_v24  ;;  %v15242_v35 = vpack.c.bf16 %v14307_v9, %v14306_v53  ;;  %v13541_v9 = vld [vmem:[%s18708_s9 + $0x60] sm:$0xff] }
 0x929   : > { %v18263_v39 = vpop.f32.mrb[58].mxu1 }
 0x92a   : > { %v18265_v40 = vpop.f32.mrb[59].mxu1  ;;  %v12959_v36 = vrot.slane %v18263_v39, 1  ;;  %v13041_v56 = vrot.slane %v18263_v39, 2  ;;  %v13123_v49 = vrot.slane %v18263_v39, 3  ;;  %v13369_v34 = vrot.slane %v18263_v39, 6 }
 0x92b   : > { %14694 = vmatmul.mubr.msk.f32.vlgmr.msra.gmra.mrb[60].mxu1 %vm12220_vm0, %v18265_v40  ;;  %v12303_v42 = vrot.slane %v18265_v40, 1  ;;  %v12385_v12 = vrot.slane %v18265_v40, 2  ;;  %v12467_v45 = vrot.slane %v18265_v40, 3  ;;  %v12549_v30 = vrot.slane %v18265_v40, 4 }
 0x92c   : > { %14891 = vmatprep.mubr.msk.f32.mxu1 %vm15869_vm3, %v15859_v0  ;;  %v12631_v52 = vrot.slane %v18265_v40, 5  ;;  %v12713_v28 = vrot.slane %v18265_v40, 6  ;;  %v12795_v15 = vrot.slane %v18265_v40, 7  ;;  %v15245_v40 = vpack.c.bf16 %v14309_v38, %v14308_v37  ;;  %v12215_v38 = vld [vmem:[%s18707_s8] sm:$0x1] }
 0x92d   : > { %14705 = vmatmul.mubr.msk.f32.vlgmr.msra.gmra.mrb[6].mxu0 %vm12220_vm0, %v12303_v42  ;;  %v14313_v42 = vld [vmem:[%s18706_s7 + $0x168] sm:$0xff]  ;;  %v13451_v53 = vrot.slane %v18263_v39, 7 }
 0x92e   : > { %15187 = vmatpush3.bf16.msra.mxu0 %v15186_v41  ;;  %14715 = vmatprep.mubr.msk.f32.mxu0 %vm15869_vm3, %v15859_v0  ;;  %v14312_v41 = vld [vmem:[%s18706_s7 + $0x160] sm:$0xff] }
 0x92f   : > { %15188 = vmatprep.subr.bf16.mxu0 %v15901_v24  ;;  %v15249_v43 = vpack.c.bf16 %v14313_v42, %v14312_v41  ;;  %v13620_v41 = vld [vmem:[%s18710_s11] sm:$0xff]  ;;  %v13621_v42 = vld [vmem:[%s18710_s11 + $0x8] sm:$0xff] }
 0x932   : > { %15191 = vmatpush3.bf16.msk.msra.mxu0 %vm18195_vm8, %v15189_v61  ;;  %v14314_v61 = vld [vmem:[%s18706_s7 + $0x170] sm:$0xff] }
 0x933   : > { %15192 = vmatprep.subr.bf16.mxu0 %v15901_v24  ;;  %v15252_v11 = vpack.c.bf16 %v14315_v63, %v14314_v61  ;;  %v15305_v63 = vpack.c.bf16 %v13621_v42, %v13620_v41 }
 0x935   : > { %14716 = vmatmul.mubr.msk.f32.vlgmr.msra.gmra.mrb[6].mxu0 %vm12220_vm0, %v12385_v12  ;;  %v14319_v12 = vld [vmem:[%s18706_s7 + $0x188] sm:$0xff] }
 0x936   : > { %15194 = vmatpush3.bf16.msra.mxu0 %v15193_v26  ;;  %14726 = vmatprep.mubr.msk.f32.mxu0 %vm15869_vm3, %v15859_v0  ;;  %v14318_v26 = vld [vmem:[%s18706_s7 + $0x180] sm:$0xff] }
 0x937   : > { %15195 = vmatprep.subr.bf16.mxu0 %v15901_v24  ;;  %v15256_v47 = vpack.c.bf16 %v14319_v12, %v14318_v26  ;;  %v13622_v26 = vld [vmem:[%s18710_s11 + $0x10] sm:$0xff]  ;;  %v13623_v12 = vld [vmem:[%s18710_s11 + $0x18] sm:$0xff] }
 0x93a   : > { %15198 = vmatpush3.bf16.msk.msra.mxu0 %vm18195_vm8, %v15196_v54  ;;  %v14320_v54 = vld [vmem:[%s18706_s7 + $0x190] sm:$0xff] }
 0x93b   : > { %15199 = vmatprep.subr.bf16.mxu0 %v15901_v24  ;;  %v15259_v59 = vpack.c.bf16 %v14321_v62, %v14320_v54  ;;  %v13625_v54 = vld [vmem:[%s18710_s11 + $0x28] sm:$0xff] }
 0x93d   : > { %14727 = vmatmul.mubr.msk.f32.vlgmr.msra.gmra.mrb[6].mxu0 %vm12220_vm0, %v12467_v45  ;;  %v14325_v45 = vld [vmem:[%s18706_s7 + $0x1a8] sm:$0xff] }
 0x93e   : > { %15201 = vmatpush3.bf16.msra.mxu0 %v15200_v16  ;;  %14737 = vmatprep.mubr.msk.f32.mxu0 %vm15869_vm3, %v15859_v0  ;;  %v14324_v16 = vld [vmem:[%s18706_s7 + $0x1a0] sm:$0xff] }
 0x93f   : > { %15202 = vmatprep.subr.bf16.mxu0 %v15901_v24 }
 0x942   : > { %15205 = vmatpush3.bf16.msk.msra.mxu0 %vm18195_vm8, %v15203_v55  ;;  %v15284_v55 = vpack.c.bf16 %v13530_v17, %v13529_v46  ;;  %v13628_v46 = vld [vmem:[%s18710_s11 + $0x40] sm:$0xff]  ;;  %v13629_v17 = vld [vmem:[%s18710_s11 + $0x48] sm:$0xff] }
 0x943   : > { %15206 = vmatprep.subr.bf16.mxu0 %v15901_v24 }
 0x944   : > { %15285 = vmatpush3.bf16.msra.mxu1 %v15284_v55  ;;  %v15317_v55 = vpack.c.bf16 %v13629_v17, %v13628_v46 }
 0x945   : > { %14738 = vmatmul.mubr.msk.f32.vlgmr.msra.gmra.mrb[6].mxu0 %vm12220_vm0, %v12549_v30  ;;  %v13205_v30 = vrot.slane %v18263_v39, 4  ;;  %15286 = vmatprep.subr.bf16.mxu1 %v15901_v24 }
 0x946   : > { %15208 = vmatpush3.bf16.msra.mxu0 %v15207_v19  ;;  %14748 = vmatprep.mubr.msk.f32.mxu0 %vm15869_vm3, %v15859_v0  ;;  %v15263_v19 = vpack.c.bf16 %v14325_v45, %v14324_v16  ;;  %v13627_v16 = vld [vmem:[%s18710_s11 + $0x38] sm:$0xff] }
 0x947   : > { %15209 = vmatprep.subr.bf16.mxu0 %v15901_v24 }
 0x94a   : > { %15212 = vmatpush3.bf16.msk.msra.mxu0 %vm18195_vm8, %v15210_v21  ;;  %v15287_v21 = vpack.c.bf16 %v13532_v18, %v13531_v22  ;;  %v13630_v22 = vld [vmem:[%s18710_s11 + $0x50] sm:$0xf] }
 0x94b   : > { %15213 = vmatprep.subr.bf16.mxu0 %v15901_v24 }
 0x94c   : > { %15288 = vmatpush3.bf16.msra.mxu1 %v15287_v21 }
 0x94d   : > { %14749 = vmatmul.mubr.msk.f32.vlgmr.msra.gmra.mrb[6].mxu0 %vm12220_vm0, %v12631_v52  ;;  %v14330_v52 = vld [vmem:[%s18706_s7 + $0x1c0] sm:$0xff]  ;;  %15289 = vmatprep.subr.bf16.mxu1 %v15901_v24 }
 0x94e   : > { %15215 = vmatpush3.bf16.msra.mxu0 %v15214_v7  ;;  %14759 = vmatprep.mubr.msk.f32.mxu0 %vm15869_vm3, %v15859_v0  ;;  %v15266_v7 = vpack.c.bf16 %v14327_v20, %v14326_v13  ;;  %v15270_v44 = vpack.c.bf16 %v14331_v58, %v14330_v52 }
 0x94f   : > { %15216 = vmatprep.subr.bf16.mxu0 %v15901_v24 }
 0x950   : > { %15291 = vmatpush3.bf16.msra.mxu1 %v15290_v8 }
 0x951   : > { %15292 = vmatprep.subr.bf16.mxu1 %v15901_v24 }
 0x952   : > { %15219 = vmatpush3.bf16.msk.msra.mxu0 %vm18195_vm8, %v15217_v60  ;;  %v13535_v60 = vld [vmem:[%s18708_s9 + $0x30] sm:$0xff] }
 0x953   : > { %15220 = vmatprep.subr.bf16.mxu0 %v15901_v24  ;;  %v15293_v31 = vpack.c.bf16 %v13536_v51, %v13535_v60 }
 0x955   : > { %14760 = vmatmul.mubr.msk.f32.vlgmr.msra.gmra.mrb[6].mxu0 %vm12220_vm0, %v12713_v28  ;;  %v14332_v28 = vld [vmem:[%s18706_s7 + $0x1d0] sm:$0xff]  ;;  %15294 = vmatpush3.bf16.msra.mxu1 %v15293_v31 }
 0x956   : > { %15222 = vmatpush3.bf16.msra.mxu0 %v15221_v27  ;;  %14770 = vmatprep.mubr.msk.f32.mxu0 %vm15869_vm3, %v15859_v0  ;;  %v13287_v27 = vrot.slane %v18263_v39, 5  ;;  %v15273_v2 = vpack.c.bf16 %v14333_v29, %v14332_v28 }
 0x957   : > { %15223 = vmatprep.subr.bf16.mxu0 %v15901_v24  ;;  %15295 = vmatprep.subr.bf16.mxu1 %v15901_v24 }
 0x95a   : > { %15226 = vmatpush3.bf16.msk.msra.mxu0 %vm18195_vm8, %v15224_v3  ;;  %v13537_v3 = vld [vmem:[%s18708_s9 + $0x40] sm:$0xff] }
 0x95b   : > { %15227 = vmatprep.subr.bf16.mxu0 %v15901_v24  ;;  %v15296_v32 = vpack.c.bf16 %v13538_v6, %v13537_v3 }
 0x95d   : > { %14771 = vmatmul.mubr.msk.f32.vlgmr.msra.gmra.mrb[6].mxu0 %vm12220_vm0, %v12795_v15  ;;  %v14337_v15 = vld [vmem:[%s18706_s7 + $0x1e8] sm:$0xff]  ;;  %15297 = vmatpush3.bf16.msra.mxu1 %v15296_v32 }
 0x95e   : > { %15229 = vmatpush3.bf16.msra.mxu0 %v15228_v10  ;;  %14781 = vmatprep.mubr.msk.f32.mxu0 %vm15869_vm3, %v15859_v0  ;;  %v14336_v10 = vld [vmem:[%s18706_s7 + $0x1e0] sm:$0xff] }
 0x95f   : > { %15230 = vmatprep.subr.bf16.mxu0 %v15901_v24  ;;  %v15277_v5 = vpack.c.bf16 %v14337_v15, %v14336_v10  ;;  %15298 = vmatprep.subr.bf16.mxu1 %v15901_v24 }
 0x962   : > { %15233 = vmatpush3.bf16.msk.msra.mxu0 %vm18195_vm8, %v15231_v33  ;;  %v13540_v33 = vld [vmem:[%s18708_s9 + $0x58] sm:$0xff] }
 0x963   : > { %15234 = vmatprep.subr.bf16.mxu0 %v15901_v24  ;;  %v15299_v48 = vpack.c.bf16 %v13540_v33, %v13539_v4 }
 0x965   : > { %14782 = vmatmul.mubr.msk.f32.vlgmr.msra.gmra.mrb[6].mxu0 %vm12220_vm0, %v18263_v39  ;;  %15300 = vmatpush3.bf16.msra.mxu1 %v15299_v48 }
 0x966   : > { %15236 = vmatpush3.bf16.msra.mxu0 %v15235_v1  ;;  %14792 = vmatprep.mubr.msk.f32.mxu0 %vm15869_vm3, %v15859_v0  ;;  %v14338_v1 = vld [vmem:[%s18706_s7 + $0x1f0] sm:$0xff] }
 0x967   : > { %15237 = vmatprep.subr.bf16.mxu0 %v15901_v24  ;;  %15301 = vmatprep.subr.bf16.mxu1 %v15901_v24 }
 0x96a   : > { %15240 = vmatpush3.bf16.msk.msra.mxu0 %vm18195_vm8, %v15238_v50  ;;  %v15280_v50 = vpack.c.bf16 %v14339_v23, %v14338_v1 }
 0x96b   : > { %15241 = vmatprep.subr.bf16.mxu0 %v15901_v24 }
 0x96d   : > { %14793 = vmatmul.mubr.msk.f32.vlgmr.msra.gmra.mrb[6].mxu0 %vm12220_vm0, %v12959_v36 }
 0x96e   : > { %15243 = vmatpush3.bf16.msra.mxu0 %v15242_v35  ;;  %14803 = vmatprep.mubr.msk.f32.mxu0 %vm15869_vm3, %v15859_v0  ;;  %v13542_v35 = vld [vmem:[%s18708_s9 + $0x68] sm:$0xff] }
 0x96f   : > { %15244 = vmatprep.subr.bf16.mxu0 %v15901_v24  ;;  %v15302_v36 = vpack.c.bf16 %v13542_v35, %v13541_v9 }
 0x971   : > { %15303 = vmatpush3.bf16.msra.mxu1 %v15302_v36 }
 0x972   : > { %15247 = vmatpush3.bf16.msk.msra.mxu0 %vm18195_vm8, %v15245_v40  ;;  %14889 = vmatprep.subr.mxu1 %v15859_v0 }
 0x973   : > { %15248 = vmatprep.subr.bf16.mxu0 %v15901_v24 }
 0x975   : > { %14804 = vmatmul.mubr.msk.f32.vlgmr.msra.gmra.mrb[6].mxu0 %vm12220_vm0, %v13041_v56  ;;  %14890 = vmatpush3.msra.mxu1 %v13543_v14 }
 0x976   : > { %15250 = vmatpush3.bf16.msra.mxu0 %v15249_v43  ;;  %14814 = vmatprep.mubr.msk.f32.mxu0 %vm15869_vm3, %v15859_v0 }
 0x977   : > { %15251 = vmatprep.subr.bf16.mxu0 %v15901_v24  ;;  %15304 = vmatprep.subr.bf16.mxu1 %v15901_v24 }
 0x97a   : > { %15254 = vmatpush3.bf16.msk.msra.mxu0 %vm18195_vm8, %v15252_v11 }
 0x97b   : > { %15255 = vmatprep.subr.bf16.mxu0 %v15901_v24 }
 0x97d   : > { %14815 = vmatmul.mubr.msk.f32.vlgmr.msra.gmra.mrb[6].mxu0 %vm12220_vm0, %v13123_v49  ;;  %v13624_v49 = vld [vmem:[%s18710_s11 + $0x20] sm:$0xff] }
 0x97e   : > { %15257 = vmatpush3.bf16.msra.mxu0 %v15256_v47  ;;  %14825 = vmatprep.mubr.msk.f32.mxu0 %vm15869_vm3, %v15859_v0  ;;  %v15308_v47 = vpack.c.bf16 %v13623_v12, %v13622_v26  ;;  %v15311_v62 = vpack.c.bf16 %v13625_v54, %v13624_v49 }
 0x97f   : > { %15258 = vmatprep.subr.bf16.mxu0 %v15901_v24 }
 0x982   : > { %15261 = vmatpush3.bf16.msk.msra.mxu0 %vm18195_vm8, %v15259_v59  ;;  %v13626_v59 = vld [vmem:[%s18710_s11 + $0x30] sm:$0xff] }
 0x983   : > { %15262 = vmatprep.subr.bf16.mxu0 %v15901_v24  ;;  %v15314_v45 = vpack.c.bf16 %v13627_v16, %v13626_v59 }
 0x985   : > { %14826 = vmatmul.mubr.msk.f32.vlgmr.msra.gmra.mrb[6].mxu0 %vm12220_vm0, %v13205_v30 }
 0x986   : > { %15264 = vmatpush3.bf16.msra.mxu0 %v15263_v19  ;;  %14836 = vmatprep.mubr.msk.f32.mxu0 %vm15869_vm3, %v15859_v0 }
 0x987   : > { %15265 = vmatprep.subr.bf16.mxu0 %v15901_v24 }
 0x98a   : > { %15268 = vmatpush3.bf16.msk.msra.mxu0 %vm18195_vm8, %v15266_v7 }
 0x98b   : > { %15269 = vmatprep.subr.bf16.mxu0 %v15901_v24 }
 0x98d   : > { %14837 = vmatmul.mubr.msk.f32.vlgmr.msra.gmra.mrb[6].mxu0 %vm12220_vm0, %v13287_v27 }
 0x98e   : > { %15271 = vmatpush3.bf16.msra.mxu0 %v15270_v44  ;;  %14847 = vmatprep.mubr.msk.f32.mxu0 %vm15869_vm3, %v15859_v0 }
 0x98f   : > { %15272 = vmatprep.subr.bf16.mxu0 %v15901_v24 }
 0x992   : > { %15275 = vmatpush3.bf16.msk.msra.mxu0 %vm18195_vm8, %v15273_v2 }
 0x993   : > { %15276 = vmatprep.subr.bf16.mxu0 %v15901_v24 }
 0x995   : > { %14848 = vmatmul.mubr.msk.f32.vlgmr.msra.gmra.mrb[6].mxu0 %vm12220_vm0, %v13369_v34 }
 0x996   : > { %15278 = vmatpush3.bf16.msra.mxu0 %v15277_v5  ;;  %14858 = vmatprep.mubr.msk.f32.mxu0 %vm15869_vm3, %v15859_v0 }
 0x997   : > { %15279 = vmatprep.subr.bf16.mxu0 %v15901_v24 }
 0x99a   : > { %15282 = vmatpush3.bf16.msk.msra.mxu0 %vm18195_vm8, %v15280_v50 }
 0x99d   : > { %14859 = vmatmul.mubr.msk.f32.vlgmr.msra.gmra.mrb[6].mxu0 %vm12220_vm0, %v13451_v53 }
 0x9fe   : > { %v12293_v39 = vpop.f32.mrb[60].mxu1 }
 0x9ff   : > { %v14695_v37 = vpop.f32.mrb[61].mxu1  ;;  %v12297_v40 = vadd.f32 %v12293_v39, %v12215_v38 }
 0xa70   : > { %v13523_v43 = vpop.f32.mrb[6].mxu0 }
 0xa71   : > { %v15322_v56 = vadd.f32 %v13523_v43, %v12297_v40  ;;  %v14860_v61 = vpop.f32.mrb[7].mxu0 }
 0xa73   : > { %v13528_v11 = vmax.f32 %v15322_v56, 0.0 }
 0xa75   : > { %14892 = vmatmul.mubr.msk.f32.vlgmr.msra.gmra.mrb[62].mxu1 %vm13545_vm4, %v13528_v11 }
 0xa76   : > { %15306 = vmatpush3.bf16.msra.mxu1 %v15305_v63  ;;  %14916 = vmatprep.mubr.msk.f32.mxu1 %vm15869_vm3, %v15859_v0  ;;  %vm13635_vm3 = vcmask 1043456  }
 0xa77   : > { %15307 = vmatprep.subr.bf16.mxu1 %v15901_v24 }
 0xa7a   : > { %15309 = vmatpush3.bf16.msra.mxu1 %v15308_v47 }
 0xa7b   : > { %15310 = vmatprep.subr.bf16.mxu1 %v15901_v24 }
 0xa7e   : > { %15312 = vmatpush3.bf16.msra.mxu1 %v15311_v62 }
 0xa7f   : > { %15313 = vmatprep.subr.bf16.mxu1 %v15901_v24 }
 0xa82   : > { %15315 = vmatpush3.bf16.msra.mxu1 %v15314_v45 }
 0xa83   : > { %15316 = vmatprep.subr.bf16.mxu1 %v15901_v24  ;;  %v13544_v24 = vld [vmem:[%s18709_s10] sm:$0x1] }
 0xa86   : > { %15318 = vmatpush3.bf16.msra.mxu1 %v15317_v55 }
 0xa87   : > { %14914 = vmatprep.subr.mxu1 %v15859_v0  ;;  %v13631_v0 = vld [vmem:[%s18711_s12] sm:$0x1] }
 0xa8a   : > { %14915 = vmatpush3.msk.msra.mxu1 %vm13635_vm3, %v13630_v22 }
 0xb48   : > { %v13615_v18 = vpop.f32.mrb[62].mxu1 }
 0xb49   : > { %v13616_v19 = vadd.f32 %v13615_v18, %v13544_v24  ;;  %v14893_v30 = vpop.f32.mrb[63].mxu1 }
 0xb4b   : > { %v13619_v13 = vmax.f32 %v13616_v19, 0.0 }
 0xb4d   : > { %14917 = vmatmul.mubr.msk.f32.vlgmr.msra.gmra.mrb[64].mxu1 %vm11256_vm5, %v13619_v13 }
 0xc20   : > { %v13705_v20 = vpop.f32.mrb[64].mxu1 }
 0xc21   : > { %v13706_v21 = vadd.f32 %v13705_v20, %v13631_v0  ;;  %v14918_v25 = vpop.f32.mrb[65].mxu1 }
 0xc23   : > { %v13710_v57 = vsel %vm13709_vm1, %v13706_v21, -inf }
 0xc24   : > { %13711 = vmax.xlane.f32.xlu1 %v13710_v57 }
 0xcb1   : > { %v13712_v7 = vpop.xlane.xlu1 %13711 }
 0xcb2   : > { %v13713_v52 = vsub.f32 %v13706_v21, %v13712_v7 }
 0xcb4   : > { %v13714_v58 = vmul.f32 1.442695, %v13713_v52 }
 0xcb6   : > { %15791 = vpow2.f32 %v13714_v58 }
 0xcc0   : > { %v15792_v8 = vpop.eup %15791 }
 0xcc1   : > { %v13716_v60 = vsel %vm13709_vm1, %v15792_v8, 0.0 }
 0xcc2   : > { %13717 = vadd.xlane.f32.xlu0 %v13716_v60 }
 0xd4f   : > { %v13718_v51 = vpop.xlane.xlu0 %13717 }
 0xd50   : > { %15793 = vlog2.f32 %v13718_v51 }
 0xd5a   : > { %v15794_v44 = vpop.eup %15793 }
 0xd5b   : > { %v13720_v27 = vmul.f32 0.6931472, %v15794_v44 }
 0xd5d   : > { %v13721_v28 = vsub.f32 %v13713_v52, %v13720_v27 }
 0xd5f   : > { %13722 = vst.msk [vmem:[%s432_s30] sm:$0x1] %vm13709_vm1, %v13721_v28 }
 0xd60   : > { %15808 = shalt.err (!%p15805_p3)
}
 0xd61   : > { %s15809_s2 = scalar_lea.hbm %s18656_s20, 16  ;;  %s15813_s23 = scalar_lea.hbm %s18712_s13, 32 }
 0xd62   : > { %p15810_p4 = scmp.ne.s32.totalorder %s18656_s20, %s15809_s2  ;;  %p15814_p9 = scmp.lt.u32.totalorder %s18656_s20, %s18712_s13 }
 0xd63   : > { %p15815_p10 = scmp.lt.u32.totalorder %s15813_s23, %s15809_s2  ;;  %p15817_p12 = scmp.lt.u32.totalorder %s15809_s2, %s18656_s20 }
 0xd64   : > { %p15811_p7 = pnand %p15810_p4, %p16011_p5 }
 0xd65   : > { %p15816_p11 = por %p15815_p10, %p15814_p9 }
 0xd66   : > { %p15812_p8 = pneg %p15811_p7 }
 0xd67   : > { %p15818_p13 = por %p15817_p12, %p15816_p11 }
 0xd69   : > { %p15819_p0 = pnand %p15818_p13, %p15812_p8 }
 0xd6b   : > { %15822 = shalt.err (!%p15819_p0)
}
 0xd6c   : > { %15595 = dma.vmem_to_hbm [thread:$0]  (%p16011_p5), %s18658_s21, 16, %s18656_s20, %s13724_s24  }
 0xd6d PF: > { %p15601_p1 = scmp.ge.s32.totalorder %s15857_s28, 2  ;;  %s13748_s27 = sand.u32 1, %s15845_s25  }
 0xd6e   : > { %s13749_s15 = scalar_lea.sflag [#allocation3], %s13748_s27 }
 0xd6f   : > { %p15598_p2 = pnand %p15601_p1, %p16015_p6 }
 0xd71   : > { %15840 = dma.done.wait (!%p15598_p2), %s13749_s15, 16  }
 0xd72   : > { %15842 = vsyncadd (!%p15598_p2), %s13749_s15, 4294967280  ;;  %s18741_s29 = sld [smem:[#allocation5_spill]]  ;;  %s18742_s27 = sld [smem:[#allocation6_spill]] }
 0xd73   : > { %p23_p3 = scmp.ge.s32.totalorder %s15998_s14, 4   ;;  %s18743_s25 = smov %s15849_s26 }
 0xd74   : > { %s18745_s28 = smov %s15998_s14 }
 0xd75   :  { %25 = sbr.rel (!%p23_p3) target bundleno = 7 (0x7), region = 170 }
 0xd78   : > { %s18744_s26 = smov %s18741_s29 }
 0xd7c   :  { %13753 = vsyncpa [#allocation3], 1 }
 0xd7d   :  { %13755 = vsyncpa [#allocation3 + $0x1], 1 }

</bundles_post_ra>
